<compile_context>
chip_gen: v7x
topology: tpu7x:2x2x1
jax: 0.10.0
libtpu: 0.0.40
codegen_flags: <defaults>
</compile_context>

<pallas_src>
import jax
import jax.numpy as jnp
from jax.experimental import pallas as pl
from jax.experimental.pallas import tpu as pltpu

CIN = 3
KSIZE = 32
UPS = 16
COUT = CIN * UPS * UPS          # 768
K_DIM = CIN * KSIZE * KSIZE     # 3072
MAX_TILE_M = 1024


# ----------------------------- Pallas kernel -----------------------------

def _patch_conv_kernel(p_ref, w_ref, b_ref, o_ref):
    # p_ref: (TILE_M, K)   bf16 im2col patches
    # w_ref: (K, COUT)     bf16 weights (resident across the grid; constant index_map)
    # b_ref: (1, COUT)     f32 bias
    # o_ref: (TILE_M, COUT) f32
    acc = jnp.dot(p_ref[...], w_ref[...], preferred_element_type=jnp.float32)
    o_ref[...] = acc + b_ref[...]


# ----------------------------- wrapper -----------------------------

def _pick_tile_m(m):
    # Split M into the fewest tiles of size <= MAX_TILE_M, rounded up to a multiple of 8,
    # minimising padded (wasted) rows.
    num_tiles = -(-m // MAX_TILE_M)          # ceil
    tile = -(-m // num_tiles)                # ceil
    tile = ((tile + 7) // 8) * 8
    return max(8, tile)


def cs_downsample_x2(x_nchw, w_oihw, b):
    """x: (B, 3, H, W) f32 with H, W multiples of 32. Returns (B, 3, H//2, W//2) f32."""
    B, C, H, W = x_nchw.shape
    assert C == CIN and H % KSIZE == 0 and W % KSIZE == 0
    Hp, Wp = H // KSIZE, W // KSIZE
    M = B * Hp * Wp

    # im2col of non-overlapping 32x32 patches; K ordering (cin, ky, kx) matches the
    # flattening of the PyTorch conv weight (Cout, Cin, KH, KW).
    patches = (x_nchw.reshape(B, CIN, Hp, KSIZE, Wp, KSIZE)
               .transpose(0, 2, 4, 1, 3, 5)
               .reshape(M, K_DIM))
    w_mat = jnp.transpose(w_oihw.reshape(COUT, K_DIM))          # (K_DIM, COUT)
    b2 = b.reshape(1, COUT).astype(jnp.float32)

    # bf16 operands for the MXU; accumulation stays f32 inside the kernel.
    patches = patches.astype(jnp.bfloat16)
    w_mat = w_mat.astype(jnp.bfloat16)

    tile_m = _pick_tile_m(M)
    m_pad = pl.cdiv(M, tile_m) * tile_m
    if m_pad != M:
        patches = jnp.pad(patches, ((0, m_pad - M), (0, 0)))

    flops = 2 * m_pad * K_DIM * COUT
    bytes_accessed = (m_pad * K_DIM * 2          # patches (bf16)
                      + K_DIM * COUT * 2         # weight  (bf16)
                      + COUT * 4                 # bias
                      + m_pad * COUT * 4)        # output  (f32)

    y = pl.pallas_call(
        _patch_conv_kernel,
        out_shape=jax.ShapeDtypeStruct((m_pad, COUT), jnp.float32),
        grid=(m_pad // tile_m,),
        in_specs=[
            pl.BlockSpec((tile_m, K_DIM), lambda i: (i, 0)),
            pl.BlockSpec((K_DIM, COUT), lambda i: (0, 0)),      # weight stays resident
            pl.BlockSpec((1, COUT), lambda i: (0, 0)),
        ],
        out_specs=pl.BlockSpec((tile_m, COUT), lambda i: (i, 0)),
        compiler_params=pltpu.CompilerParams(
            dimension_semantics=("parallel",),                  # shards tiles across TCs on v7x
            vmem_limit_bytes=48 * 1024 * 1024,
        ),
        cost_estimate=pl.CostEstimate(
            flops=flops, transcendentals=0, bytes_accessed=bytes_accessed),
    )(patches, w_mat, b2)
    y = y[:M]                                                   # drop M padding

    # rearrange 'b (c a1 a2) h w -> b c (h a1) (w a2)' with c=3, a1=a2=16 (c most-significant).
    y = y.reshape(B, Hp, Wp, CIN, UPS, UPS)
    y = y.transpose(0, 3, 1, 4, 2, 5)
    return y.reshape(B, CIN, Hp * UPS, Wp * UPS)


# ----------------------------- reference / params / main -----------------------------

def _reference(x, w, b):
    y = jax.lax.conv_general_dilated(
        x, w, window_strides=(KSIZE, KSIZE), padding="VALID",
        dimension_numbers=("NCHW", "OIHW", "NCHW")) + b.reshape(1, -1, 1, 1)
    B, _, Hp, Wp = y.shape
    y = y.reshape(B, CIN, UPS, UPS, Hp, Wp).transpose(0, 1, 4, 2, 5, 3)
    return y.reshape(B, CIN, Hp * UPS, Wp * UPS)


def build_params(key):
    kw, kb = jax.random.split(key)
    fan_in = CIN * KSIZE * KSIZE
    bound = 1.0 / (fan_in ** 0.5)
    w = jax.random.uniform(kw, (COUT, CIN, KSIZE, KSIZE), jnp.float32, -bound, bound)
    b = jax.random.uniform(kb, (COUT,), jnp.float32, -bound, bound)
    return w, b


if __name__ == "__main__":
    key = jax.random.PRNGKey(0)
    pkey, xkey = jax.random.split(key)
    w, b = build_params(pkey)
    # Smallest non-trivial input the module admits: spatial must be a multiple of 32.
    x = jax.random.uniform(xkey, (2, 3, 64, 64), jnp.float32)

    fwd = jax.jit(lambda a: cs_downsample_x2(a, w, b))
    out = fwd(x)
    jax.block_until_ready(out)

    assert out.shape == (2, 3, 32, 32), out.shape   # 64 -> conv/32 -> x16 shuffle == /2
    assert bool(jnp.all(jnp.isfinite(out)))
    ref = _reference(x, w, b)
    # bf16 MXU operands vs f32 reference: errors are ~1e-3 for K=3072; 5e-2 is generous.
    assert bool(jnp.max(jnp.abs(out - ref)) < 5e-2)
    print("KERNEL_OK")
</pallas_src>

<mosaic_0001>
module attributes {stable_mosaic.version = 11 : i64} {
  func.func @_patch_conv_kernel(%arg0: i32, %arg1: memref<8x3072xbf16, #tpu.memory_space<vmem>>, %arg2: memref<3072x768xbf16, #tpu.memory_space<vmem>>, %arg3: memref<1x768xf32, #tpu.memory_space<vmem>>, %arg4: memref<8x768xf32, #tpu.memory_space<vmem>>) attributes {dimension_semantics = [#tpu.dimension_semantics<parallel>], iteration_bounds = array<i64: 1>, scalar_prefetch = 0 : i64, scratch_operands = 0 : i64, tpu.core_type = #tpu.core_type<tc>, window_params = [{transform_indices = @transform_0, window_bounds = array<i64: 8, 3072>}, {pipeline_mode = #tpu.pipeline_mode<synchronous>, transform_indices = @transform_1, window_bounds = array<i64: 3072, 768>}, {pipeline_mode = #tpu.pipeline_mode<synchronous>, transform_indices = @transform_2, window_bounds = array<i64: 1, 768>}, {transform_indices = @transform_3, window_bounds = array<i64: 8, 768>}]} {
    %c0 = arith.constant 0 : index
    %c0_0 = arith.constant 0 : index
    %0 = vector.load %arg1[%c0, %c0_0] : memref<8x3072xbf16, #tpu.memory_space<vmem>>, vector<8x3072xbf16>
    %c0_1 = arith.constant 0 : index
    %c0_2 = arith.constant 0 : index
    %1 = vector.load %arg2[%c0_1, %c0_2] : memref<3072x768xbf16, #tpu.memory_space<vmem>>, vector<3072x768xbf16>
    %cst = arith.constant dense<0.000000e+00> : vector<8x768xf32>
    %2 = tpu.matmul %0, %1, %cst {dimension_numbers = #tpu.dot_dimension_numbers<[1], [0], [0], [1], [0, 0, 1, 1], [], []>} : vector<8x3072xbf16>, vector<3072x768xbf16>, vector<8x768xf32> -> vector<8x768xf32>
    %c0_3 = arith.constant 0 : index
    %c0_4 = arith.constant 0 : index
    %3 = vector.load %arg3[%c0_3, %c0_4] : memref<1x768xf32, #tpu.memory_space<vmem>>, vector<1x768xf32>
    %4 = vector.broadcast %3 : vector<1x768xf32> to vector<8x768xf32>
    %5 = arith.addf %2, %4 : vector<8x768xf32>
    %c0_5 = arith.constant 0 : index
    %c0_6 = arith.constant 0 : index
    %6 = vector.load %arg4[%c0_5, %c0_6] : memref<8x768xf32, #tpu.memory_space<vmem>>, vector<8x768xf32>
    tpu.vector_store %arg4[%c0_5, %c0_6], %5 {strides = array<i32>} : memref<8x768xf32, #tpu.memory_space<vmem>>, vector<8x768xf32>,
    return
  }
  func.func @transform_0(%arg0: i32) -> (i32, i32) {
    %c0_i32 = arith.constant 0 : i32
    %c0_i32_0 = arith.constant 0 : i32
    return %arg0, %c0_i32 : i32, i32
  }
  func.func @transform_1(%arg0: i32) -> (i32, i32) {
    %c0_i32 = arith.constant 0 : i32
    %c0_i32_0 = arith.constant 0 : i32
    %c0_i32_1 = arith.constant 0 : i32
    return %c0_i32, %c0_i32_0 : i32, i32
  }
  func.func @transform_2(%arg0: i32) -> (i32, i32) {
    %c0_i32 = arith.constant 0 : i32
    %c0_i32_0 = arith.constant 0 : i32
    %c0_i32_1 = arith.constant 0 : i32
    return %c0_i32, %c0_i32_0 : i32, i32
  }
  func.func @transform_3(%arg0: i32) -> (i32, i32) {
    %c0_i32 = arith.constant 0 : i32
    %c0_i32_0 = arith.constant 0 : i32
    return %arg0, %c0_i32 : i32, i32
  }
}

</mosaic_0001>

<bundles_post_ra>
// kernel: _lambda_.1
= control target key start
LH: loop header
LB: loop body
LE: loop exit
PB: predicated region body
PF: predicated region fallthrough
CT: control target
= control target key end

     0   :  { %s15329_s1 = inlined_call_operand.vmem [shape: bf16[3072,768], index: 1, kind: input, shape index: {}]   ;;  %s15330_s0 = inlined_call_operand.vmem [shape: bf16[8,3072], index: 0, kind: input, shape index: {}]   ;;  %s15331_s2 = inlined_call_operand.vmem [shape: f32[1,768], index: 2, kind: input, shape index: {}]   ;;  %s15332_s3 = inlined_call_operand.vmem [shape: f32[8,768], index: 3, kind: output, shape index: {}]  }
   0x1   :  { %v9852_v0 = vld [vmem:[%s15329_s1 + $0x4] ss:$24 sps:$4 sm:$0xff]   ;;  %v9856_v2 = vld [vmem:[%s15329_s1] ss:$24 sps:$4 sm:$0xff]   ;;  %v9858_v4 = vld [vmem:[%s15329_s1 + $0x34] ss:$24 sps:$4 sm:$0xff]  }
   0x2   :  { %v9854_v1 = vld [vmem:[%s15329_s1 + $0x1204] ss:$24 sps:$4 sm:$0xff]   ;;  %7054 = vmatprep.subr.bf16.mxu1 %v9852_v0  ;;  %v9857_v3 = vld [vmem:[%s15329_s1 + $0x1200] ss:$24 sps:$4 sm:$0xff]   ;;  %v9860_v5 = vld [vmem:[%s15329_s1 + $0x1234] ss:$24 sps:$4 sm:$0xff]  }
   0x3   :  { %7300 = vmatprep.subr.bf16.mxu0 %v9854_v1  ;;  %7055 = vmatpush1.bf16.msra.mxu1 %v9856_v2  ;;  %v9862_v6 = vld [vmem:[%s15329_s1 + $0x30] ss:$24 sps:$4 sm:$0xff]   ;;  %v9864_v8 = vld [vmem:[%s15329_s1 + $0x64] ss:$24 sps:$4 sm:$0xff]   ;;  %v9868_v10 = vld [vmem:[%s15329_s1 + $0x60] ss:$24 sps:$4 sm:$0xff]  }
   0x4   :  { %7301 = vmatpush1.bf16.msra.mxu0 %v9857_v3  ;;  %7056 = vmatprep.subr.bf16.mxu1 %v9858_v4  ;;  %v9863_v7 = vld [vmem:[%s15329_s1 + $0x1230] ss:$24 sps:$4 sm:$0xff]   ;;  %v9866_v9 = vld [vmem:[%s15329_s1 + $0x1264] ss:$24 sps:$4 sm:$0xff]   ;;  %v9869_v11 = vld [vmem:[%s15329_s1 + $0x1260] ss:$24 sps:$4 sm:$0xff]  }
   0x5   :  { %7302 = vmatprep.subr.bf16.mxu0 %v9860_v5  ;;  %v9870_v12 = vld [vmem:[%s15329_s1 + $0x94] ss:$24 sps:$4 sm:$0xff]   ;;  %v9874_v14 = vld [vmem:[%s15329_s1 + $0x90] ss:$24 sps:$4 sm:$0xff]   ;;  %v9876_v16 = vld [vmem:[%s15329_s1 + $0xc4] ss:$24 sps:$4 sm:$0xff]  }
   0x6   :  { %v9872_v13 = vld [vmem:[%s15329_s1 + $0x1294] ss:$24 sps:$4 sm:$0xff]   ;;  %v9875_v15 = vld [vmem:[%s15329_s1 + $0x1290] ss:$24 sps:$4 sm:$0xff]   ;;  %v9878_v17 = vld [vmem:[%s15329_s1 + $0x12c4] ss:$24 sps:$4 sm:$0xff]  }
   0x7   :  { %7057 = vmatpush1.bf16.msra.mxu1 %v9862_v6  ;;  %v9880_v18 = vld [vmem:[%s15329_s1 + $0xc0] ss:$24 sps:$4 sm:$0xff]   ;;  %v9882_v20 = vld [vmem:[%s15329_s1 + $0xf4] ss:$24 sps:$4 sm:$0xff]   ;;  %v9886_v22 = vld [vmem:[%s15329_s1 + $0xf0] ss:$24 sps:$4 sm:$0xff]  }
   0x8   :  { %7303 = vmatpush1.bf16.msra.mxu0 %v9863_v7  ;;  %7058 = vmatprep.subr.bf16.mxu1 %v9864_v8  ;;  %v9881_v19 = vld [vmem:[%s15329_s1 + $0x12c0] ss:$24 sps:$4 sm:$0xff]   ;;  %v9884_v21 = vld [vmem:[%s15329_s1 + $0x12f4] ss:$24 sps:$4 sm:$0xff]   ;;  %v9887_v23 = vld [vmem:[%s15329_s1 + $0x12f0] ss:$24 sps:$4 sm:$0xff]  }
   0x9   :  { %7304 = vmatprep.subr.bf16.mxu0 %v9866_v9  ;;  %v9888_v24 = vld [vmem:[%s15329_s1 + $0x124] ss:$24 sps:$4 sm:$0xff]   ;;  %v9892_v26 = vld [vmem:[%s15329_s1 + $0x120] ss:$24 sps:$4 sm:$0xff]   ;;  %v9894_v28 = vld [vmem:[%s15329_s1 + $0x154] ss:$24 sps:$4 sm:$0xff]  }
   0xa   :  { %v9890_v25 = vld [vmem:[%s15329_s1 + $0x1324] ss:$24 sps:$4 sm:$0xff]   ;;  %v9893_v27 = vld [vmem:[%s15329_s1 + $0x1320] ss:$24 sps:$4 sm:$0xff]   ;;  %v9896_v29 = vld [vmem:[%s15329_s1 + $0x1354] ss:$24 sps:$4 sm:$0xff]  }
   0xb   :  { %7059 = vmatpush1.bf16.msra.mxu1 %v9868_v10  ;;  %v9898_v30 = vld [vmem:[%s15329_s1 + $0x150] ss:$24 sps:$4 sm:$0xff]   ;;  %v9900_v32 = vld [vmem:[%s15329_s1 + $0x184] ss:$24 sps:$4 sm:$0xff]   ;;  %v9904_v34 = vld [vmem:[%s15329_s1 + $0x180] ss:$24 sps:$4 sm:$0xff]  }
   0xc   :  { %7305 = vmatpush1.bf16.msra.mxu0 %v9869_v11  ;;  %7060 = vmatprep.subr.bf16.mxu1 %v9870_v12  ;;  %v9899_v31 = vld [vmem:[%s15329_s1 + $0x1350] ss:$24 sps:$4 sm:$0xff]   ;;  %v9902_v33 = vld [vmem:[%s15329_s1 + $0x1384] ss:$24 sps:$4 sm:$0xff]   ;;  %v9905_v35 = vld [vmem:[%s15329_s1 + $0x1380] ss:$24 sps:$4 sm:$0xff]  }
   0xd   :  { %7306 = vmatprep.subr.bf16.mxu0 %v9872_v13  ;;  %v9906_v36 = vld [vmem:[%s15329_s1 + $0x1b4] ss:$24 sps:$4 sm:$0xff]   ;;  %v9910_v38 = vld [vmem:[%s15329_s1 + $0x1b0] ss:$24 sps:$4 sm:$0xff]   ;;  %v9912_v40 = vld [vmem:[%s15329_s1 + $0x1e4] ss:$24 sps:$4 sm:$0xff]  }
   0xe   :  { %v9908_v37 = vld [vmem:[%s15329_s1 + $0x13b4] ss:$24 sps:$4 sm:$0xff]   ;;  %v9911_v39 = vld [vmem:[%s15329_s1 + $0x13b0] ss:$24 sps:$4 sm:$0xff]   ;;  %v9914_v41 = vld [vmem:[%s15329_s1 + $0x13e4] ss:$24 sps:$4 sm:$0xff]  }
   0xf   :  { %7061 = vmatpush1.bf16.msra.mxu1 %v9874_v14  ;;  %v9916_v42 = vld [vmem:[%s15329_s1 + $0x1e0] ss:$24 sps:$4 sm:$0xff]   ;;  %v9918_v44 = vld [vmem:[%s15329_s1 + $0x214] ss:$24 sps:$4 sm:$0xff]   ;;  %v9922_v47 = vld [vmem:[%s15329_s1 + $0x210] ss:$24 sps:$4 sm:$0xff]  }
  0x10   :  { %7307 = vmatpush1.bf16.msra.mxu0 %v9875_v15  ;;  %7062 = vmatprep.subr.bf16.mxu1 %v9876_v16  ;;  %v9917_v43 = vld [vmem:[%s15329_s1 + $0x13e0] ss:$24 sps:$4 sm:$0xff]   ;;  %v9920_v45 = vld [vmem:[%s15329_s1 + $0x1414] ss:$24 sps:$4 sm:$0xff]   ;;  %v9923_v49 = vld [vmem:[%s15329_s1 + $0x1410] ss:$24 sps:$4 sm:$0xff]  }
  0x11   :  { %7308 = vmatprep.subr.bf16.mxu0 %v9878_v17  ;;  %v14_v46 = vld [vmem:[%s15330_s0] sm:$0xff]  ;;  %v20_v50 = vld [vmem:[%s15330_s0 + $0x30] sm:$0xff] }
  0x12   :  { %v11769_v48 = vcombine.high %v14_v46, %v14_v46  ;;  %v9924_v51 = vld [vmem:[%s15329_s1 + $0x244] ss:$24 sps:$4 sm:$0xff]   ;;  %v11783_v53 = vcombine.high %v20_v50, %v20_v50  ;;  %v9928_v54 = vld [vmem:[%s15329_s1 + $0x240] ss:$24 sps:$4 sm:$0xff]   ;;  %v9930_v56 = vld [vmem:[%s15329_s1 + $0x274] ss:$24 sps:$4 sm:$0xff]   ;;  %v11835_v6 = vcombine.low %v14_v46, %v14_v46  ;;  %v11837_v7 = vcombine.low %v20_v50, %v20_v50 }
  0x13   :  { %7063 = vmatpush1.bf16.msra.mxu1 %v9880_v18  ;;  %v9926_v52 = vld [vmem:[%s15329_s1 + $0x1444] ss:$24 sps:$4 sm:$0xff]   ;;  %v9929_v55 = vld [vmem:[%s15329_s1 + $0x1440] ss:$24 sps:$4 sm:$0xff]   ;;  %v9932_v57 = vld [vmem:[%s15329_s1 + $0x1474] ss:$24 sps:$4 sm:$0xff]  }
  0x14   :  { %7309 = vmatpush1.bf16.msra.mxu0 %v9881_v19  ;;  %7064 = vmatprep.subr.bf16.mxu1 %v9882_v20  ;;  %v9934_v58 = vld [vmem:[%s15329_s1 + $0x270] ss:$24 sps:$4 sm:$0xff]   ;;  %v9936_v60 = vld [vmem:[%s15329_s1 + $0x2a4] ss:$24 sps:$4 sm:$0xff]   ;;  %v9940_v62 = vld [vmem:[%s15329_s1 + $0x2a0] ss:$24 sps:$4 sm:$0xff]  }
  0x15   :  { %7310 = vmatprep.subr.bf16.mxu0 %v9884_v21  ;;  %7086 = vmatprep.mubr.bf16.mxu1 %v11769_v48  ;;  %v9935_v59 = vld [vmem:[%s15329_s1 + $0x1470] ss:$24 sps:$4 sm:$0xff]   ;;  %v9938_v61 = vld [vmem:[%s15329_s1 + $0x14a4] ss:$24 sps:$4 sm:$0xff]   ;;  %v9941_v63 = vld [vmem:[%s15329_s1 + $0x14a0] ss:$24 sps:$4 sm:$0xff]  }
  0x16   :  { %7332 = vmatprep.mubr.bf16.mxu0 %v11783_v53  ;;  %v9942_v0 = vld [vmem:[%s15329_s1 + $0x2d4] ss:$24 sps:$4 sm:$0xff]   ;;  %v9946_v2 = vld [vmem:[%s15329_s1 + $0x2d0] ss:$24 sps:$4 sm:$0xff]   ;;  %v9951_v4 = vld [vmem:[%s15329_s1 + $0x304] ss:$24 sps:$4 sm:$0xff]  }
  0x17   :  { %7065 = vmatpush1.bf16.msra.mxu1 %v9886_v22  ;;  %v9944_v1 = vld [vmem:[%s15329_s1 + $0x14d4] ss:$24 sps:$4 sm:$0xff]   ;;  %v9947_v3 = vld [vmem:[%s15329_s1 + $0x14d0] ss:$24 sps:$4 sm:$0xff]   ;;  %v9955_v5 = vld [vmem:[%s15329_s1 + $0x1504] ss:$24 sps:$4 sm:$0xff]  }
  0x18   :  { %7311 = vmatpush1.bf16.msra.mxu0 %v9887_v23  ;;  %7066 = vmatprep.subr.bf16.mxu1 %v9888_v24  ;;  %v9949_v8 = vld [vmem:[%s15329_s1 + $0x300] ss:$24 sps:$4 sm:$0xff]   ;;  %v9960_v10 = vld [vmem:[%s15329_s1 + $0x334] ss:$24 sps:$4 sm:$0xff]   ;;  %v9958_v12 = vld [vmem:[%s15329_s1 + $0x330] ss:$24 sps:$4 sm:$0xff]  }
  0x19   :  { %7312 = vmatprep.subr.bf16.mxu0 %v9890_v25  ;;  %v9953_v9 = vld [vmem:[%s15329_s1 + $0x1500] ss:$24 sps:$4 sm:$0xff]   ;;  %v9963_v11 = vld [vmem:[%s15329_s1 + $0x1534] ss:$24 sps:$4 sm:$0xff]   ;;  %v9961_v13 = vld [vmem:[%s15329_s1 + $0x1530] ss:$24 sps:$4 sm:$0xff]  }
  0x1a   :  { %v9966_v14 = vld [vmem:[%s15329_s1 + $0x364] ss:$24 sps:$4 sm:$0xff]   ;;  %v9964_v16 = vld [vmem:[%s15329_s1 + $0x360] ss:$24 sps:$4 sm:$0xff]   ;;  %v9972_v18 = vld [vmem:[%s15329_s1 + $0x394] ss:$24 sps:$4 sm:$0xff]  }
  0x1b   :  { %7067 = vmatpush1.bf16.msra.mxu1 %v9892_v26  ;;  %v9969_v15 = vld [vmem:[%s15329_s1 + $0x1564] ss:$24 sps:$4 sm:$0xff]   ;;  %v9967_v17 = vld [vmem:[%s15329_s1 + $0x1560] ss:$24 sps:$4 sm:$0xff]   ;;  %v9975_v19 = vld [vmem:[%s15329_s1 + $0x1594] ss:$24 sps:$4 sm:$0xff]  }
  0x1c   :  { %7313 = vmatpush1.bf16.msra.mxu0 %v9893_v27  ;;  %7068 = vmatprep.subr.bf16.mxu1 %v9894_v28  ;;  %v9970_v20 = vld [vmem:[%s15329_s1 + $0x390] ss:$24 sps:$4 sm:$0xff]   ;;  %v9978_v22 = vld [vmem:[%s15329_s1 + $0x3c4] ss:$24 sps:$4 sm:$0xff]   ;;  %v9976_v24 = vld [vmem:[%s15329_s1 + $0x3c0] ss:$24 sps:$4 sm:$0xff]  }
  0x1d   :  { %7314 = vmatprep.subr.bf16.mxu0 %v9896_v29  ;;  %v9973_v21 = vld [vmem:[%s15329_s1 + $0x1590] ss:$24 sps:$4 sm:$0xff]   ;;  %v9981_v23 = vld [vmem:[%s15329_s1 + $0x15c4] ss:$24 sps:$4 sm:$0xff]   ;;  %v9979_v25 = vld [vmem:[%s15329_s1 + $0x15c0] ss:$24 sps:$4 sm:$0xff]  }
  0x1e   :  { %v9984_v26 = vld [vmem:[%s15329_s1 + $0x3f4] ss:$24 sps:$4 sm:$0xff]   ;;  %v9982_v28 = vld [vmem:[%s15329_s1 + $0x3f0] ss:$24 sps:$4 sm:$0xff]  }
  0x1f   :  { %7069 = vmatpush1.bf16.msra.mxu1 %v9898_v30  ;;  %v9987_v27 = vld [vmem:[%s15329_s1 + $0x15f4] ss:$24 sps:$4 sm:$0xff]   ;;  %v9985_v29 = vld [vmem:[%s15329_s1 + $0x15f0] ss:$24 sps:$4 sm:$0xff]   ;;  %v9990_v30 = vld [vmem:[%s15329_s1 + $0x424] ss:$24 sps:$4 sm:$0xff]  }
  0x20   :  { %7315 = vmatpush1.bf16.msra.mxu0 %v9899_v31  ;;  %7070 = vmatprep.subr.bf16.mxu1 %v9900_v32  ;;  %v9993_v31 = vld [vmem:[%s15329_s1 + $0x1624] ss:$24 sps:$4 sm:$0xff]   ;;  %v11916_v32 = vld [vmem:[%s15330_s0 + $0x8] sm:$0xff] }
  0x21   :  { %7316 = vmatprep.subr.bf16.mxu0 %v9902_v33  ;;  %v9988_v33 = vld [vmem:[%s15329_s1 + $0x420] ss:$24 sps:$4 sm:$0xff]   ;;  %v10008_v46 = vld [vmem:[%s15329_s1 + $0x4b4] ss:$24 sps:$4 sm:$0xff]   ;;  %v10009_v50 = vld [vmem:[%s15329_s1 + $0x16b0] ss:$24 sps:$4 sm:$0xff]  }
  0x23   :  { %7071 = vmatpush1.bf16.msra.mxu1 %v9904_v34  ;;  %v9991_v34 = vld [vmem:[%s15329_s1 + $0x1620] ss:$24 sps:$4 sm:$0xff]  }
  0x24   :  { %7317 = vmatpush1.bf16.msra.mxu0 %v9905_v35  ;;  %7072 = vmatprep.subr.bf16.mxu1 %v9906_v36  ;;  %v11926_v35 = vcombine.high %v11916_v32, %v11916_v32  ;;  %v11931_v36 = vld [vmem:[%s15330_s0 + $0x38] sm:$0xff] }
  0x25   :  { %7318 = vmatprep.subr.bf16.mxu0 %v9908_v37  ;;  %v9996_v37 = vld [vmem:[%s15329_s1 + $0x454] ss:$24 sps:$4 sm:$0xff]  }
  0x27   :  { %7073 = vmatpush1.bf16.msra.mxu1 %v9910_v38  ;;  %v11938_v38 = vcombine.high %v11931_v36, %v11931_v36 }
  0x28   :  { %7319 = vmatpush1.bf16.msra.mxu0 %v9911_v39  ;;  %7074 = vmatprep.subr.bf16.mxu1 %v9912_v40  ;;  %v9999_v39 = vld [vmem:[%s15329_s1 + $0x1654] ss:$24 sps:$4 sm:$0xff]   ;;  %v9994_v40 = vld [vmem:[%s15329_s1 + $0x450] ss:$24 sps:$4 sm:$0xff]  }
  0x29   :  { %7320 = vmatprep.subr.bf16.mxu0 %v9914_v41  ;;  %v9997_v41 = vld [vmem:[%s15329_s1 + $0x1650] ss:$24 sps:$4 sm:$0xff]  }
  0x2b   :  { %7075 = vmatpush1.bf16.msra.mxu1 %v9916_v42  ;;  %v10002_v42 = vld [vmem:[%s15329_s1 + $0x484] ss:$24 sps:$4 sm:$0xff]  }
  0x2c   :  { %7321 = vmatpush1.bf16.msra.mxu0 %v9917_v43  ;;  %7076 = vmatprep.subr.bf16.mxu1 %v9918_v44  ;;  %v10005_v43 = vld [vmem:[%s15329_s1 + $0x1684] ss:$24 sps:$4 sm:$0xff]   ;;  %v10000_v44 = vld [vmem:[%s15329_s1 + $0x480] ss:$24 sps:$4 sm:$0xff]  }
  0x2d   :  { %7322 = vmatprep.subr.bf16.mxu0 %v9920_v45  ;;  %v10003_v45 = vld [vmem:[%s15329_s1 + $0x1680] ss:$24 sps:$4 sm:$0xff]  }
  0x2f   :  { %7077 = vmatpush1.bf16.msra.mxu1 %v9922_v47  ;;  %v10011_v47 = vld [vmem:[%s15329_s1 + $0x16b4] ss:$24 sps:$4 sm:$0xff]  }
  0x30   :  { %7323 = vmatpush1.bf16.msra.mxu0 %v9923_v49  ;;  %7078 = vmatprep.subr.bf16.mxu1 %v9924_v51  ;;  %v10006_v49 = vld [vmem:[%s15329_s1 + $0x4b0] ss:$24 sps:$4 sm:$0xff]   ;;  %v10014_v51 = vld [vmem:[%s15329_s1 + $0x4e4] ss:$24 sps:$4 sm:$0xff]  }
  0x31   :  { %7324 = vmatprep.subr.bf16.mxu0 %v9926_v52  ;;  %v10017_v52 = vld [vmem:[%s15329_s1 + $0x16e4] ss:$24 sps:$4 sm:$0xff]  }
  0x33   :  { %7079 = vmatpush1.bf16.msra.mxu1 %v9928_v54  ;;  %v10012_v54 = vld [vmem:[%s15329_s1 + $0x4e0] ss:$24 sps:$4 sm:$0xff]  }
  0x34   :  { %7325 = vmatpush1.bf16.msra.mxu0 %v9929_v55  ;;  %7080 = vmatprep.subr.bf16.mxu1 %v9930_v56  ;;  %v10015_v55 = vld [vmem:[%s15329_s1 + $0x16e0] ss:$24 sps:$4 sm:$0xff]   ;;  %v10020_v56 = vld [vmem:[%s15329_s1 + $0x514] ss:$24 sps:$4 sm:$0xff]  }
  0x35   :  { %7326 = vmatprep.subr.bf16.mxu0 %v9932_v57  ;;  %v10023_v57 = vld [vmem:[%s15329_s1 + $0x1714] ss:$24 sps:$4 sm:$0xff]  }
  0x37   :  { %7081 = vmatpush1.bf16.msra.mxu1 %v9934_v58  ;;  %v10018_v58 = vld [vmem:[%s15329_s1 + $0x510] ss:$24 sps:$4 sm:$0xff]  }
  0x38   :  { %7327 = vmatpush1.bf16.msra.mxu0 %v9935_v59  ;;  %7082 = vmatprep.subr.bf16.mxu1 %v9936_v60  ;;  %v10021_v59 = vld [vmem:[%s15329_s1 + $0x1710] ss:$24 sps:$4 sm:$0xff]   ;;  %v10026_v60 = vld [vmem:[%s15329_s1 + $0x544] ss:$24 sps:$4 sm:$0xff]  }
  0x39   :  { %7328 = vmatprep.subr.bf16.mxu0 %v9938_v61  ;;  %v10029_v61 = vld [vmem:[%s15329_s1 + $0x1744] ss:$24 sps:$4 sm:$0xff]  }
  0x3b   :  { %7083 = vmatpush1.bf16.msra.mxu1 %v9940_v62  ;;  %v10024_v62 = vld [vmem:[%s15329_s1 + $0x540] ss:$24 sps:$4 sm:$0xff]  }
  0x3c   :  { %7329 = vmatpush1.bf16.msra.mxu0 %v9941_v63  ;;  %7084 = vmatprep.subr.bf16.mxu1 %v9942_v0  ;;  %v10027_v63 = vld [vmem:[%s15329_s1 + $0x1740] ss:$24 sps:$4 sm:$0xff]   ;;  %v10032_v0 = vld [vmem:[%s15329_s1 + $0x574] ss:$24 sps:$4 sm:$0xff]  }
  0x3d   :  { %7330 = vmatprep.subr.bf16.mxu0 %v9944_v1  ;;  %v10035_v1 = vld [vmem:[%s15329_s1 + $0x1774] ss:$24 sps:$4 sm:$0xff]  }
  0x3f   :  { %7085 = vmatpush1.bf16.msra.mxu1 %v9946_v2  ;;  %v10030_v2 = vld [vmem:[%s15329_s1 + $0x570] ss:$24 sps:$4 sm:$0xff]  }
  0x40   :  { %7331 = vmatpush1.bf16.msra.mxu0 %v9947_v3  ;;  %7095 = vmatprep.subr.bf16.mxu1 %v9951_v4  ;;  %v10033_v3 = vld [vmem:[%s15329_s1 + $0x1770] ss:$24 sps:$4 sm:$0xff]   ;;  %v10038_v4 = vld [vmem:[%s15329_s1 + $0x5a4] ss:$24 sps:$4 sm:$0xff]  }
  0x41   :  { %7341 = vmatprep.subr.bf16.mxu0 %v9955_v5  ;;  %v10041_v5 = vld [vmem:[%s15329_s1 + $0x17a4] ss:$24 sps:$4 sm:$0xff]  }
  0x42   :  { %7087 = vmatmul.mubr.bf16.vlgmr.msra.gmra.mrb[0].mxu1 %v11835_v6 }
  0x43   :  { %7333 = vmatmul.mubr.bf16.vlgmr.msra.gmra.mrb[0].mxu0 %v11837_v7  ;;  %7096 = vmatpush1.bf16.msra.mxu1 %v9949_v8  ;;  %v10036_v8 = vld [vmem:[%s15329_s1 + $0x5a0] ss:$24 sps:$4 sm:$0xff]  }
  0x44   :  { %7342 = vmatpush1.bf16.msra.mxu0 %v9953_v9  ;;  %7097 = vmatprep.subr.bf16.mxu1 %v9960_v10  ;;  %v10039_v9 = vld [vmem:[%s15329_s1 + $0x17a0] ss:$24 sps:$4 sm:$0xff]   ;;  %v10044_v10 = vld [vmem:[%s15329_s1 + $0x5d4] ss:$24 sps:$4 sm:$0xff]  }
  0x45   :  { %7343 = vmatprep.subr.bf16.mxu0 %v9963_v11  ;;  %7127 = vmatprep.mubr.bf16.mxu1 %v11926_v35  ;;  %v10047_v11 = vld [vmem:[%s15329_s1 + $0x17d4] ss:$24 sps:$4 sm:$0xff]  }
  0x46   :  { %7373 = vmatprep.mubr.bf16.mxu0 %v11938_v38 }
  0x47   :  { %7098 = vmatpush1.bf16.msra.mxu1 %v9958_v12  ;;  %v10042_v12 = vld [vmem:[%s15329_s1 + $0x5d0] ss:$24 sps:$4 sm:$0xff]  }
  0x48   :  { %7344 = vmatpush1.bf16.msra.mxu0 %v9961_v13  ;;  %7099 = vmatprep.subr.bf16.mxu1 %v9966_v14  ;;  %v10045_v13 = vld [vmem:[%s15329_s1 + $0x17d0] ss:$24 sps:$4 sm:$0xff]   ;;  %v10052_v14 = vld [vmem:[%s15329_s1 + $0x604] ss:$24 sps:$4 sm:$0xff]  }
  0x49   :  { %7345 = vmatprep.subr.bf16.mxu0 %v9969_v15  ;;  %v10057_v15 = vld [vmem:[%s15329_s1 + $0x1804] ss:$24 sps:$4 sm:$0xff]  }
  0x4b   :  { %7100 = vmatpush1.bf16.msra.mxu1 %v9964_v16  ;;  %v12055_v16 = vcombine.low %v11916_v32, %v11916_v32  ;;  %v10072_v32 = vld [vmem:[%s15329_s1 + $0x694] ss:$24 sps:$4 sm:$0xff]  }
  0x4c   :  { %7346 = vmatpush1.bf16.msra.mxu0 %v9967_v17  ;;  %7101 = vmatprep.subr.bf16.mxu1 %v9972_v18  ;;  %v10050_v17 = vld [vmem:[%s15329_s1 + $0x600] ss:$24 sps:$4 sm:$0xff]   ;;  %v12062_v18 = vcombine.low %v11931_v36, %v11931_v36  ;;  %v10073_v36 = vld [vmem:[%s15329_s1 + $0x1890] ss:$24 sps:$4 sm:$0xff]  }
  0x4d   :  { %7347 = vmatprep.subr.bf16.mxu0 %v9975_v19  ;;  %v10055_v19 = vld [vmem:[%s15329_s1 + $0x1800] ss:$24 sps:$4 sm:$0xff]  }
  0x4f   :  { %7102 = vmatpush1.bf16.msra.mxu1 %v9970_v20  ;;  %v10060_v20 = vld [vmem:[%s15329_s1 + $0x634] ss:$24 sps:$4 sm:$0xff]  }
  0x50   :  { %7348 = vmatpush1.bf16.msra.mxu0 %v9973_v21  ;;  %7103 = vmatprep.subr.bf16.mxu1 %v9978_v22  ;;  %v10063_v21 = vld [vmem:[%s15329_s1 + $0x1834] ss:$24 sps:$4 sm:$0xff]  }
  0x51   :  { %7349 = vmatprep.subr.bf16.mxu0 %v9981_v23  ;;  %v12076_v22 = vld [vmem:[%s15330_s0 + $0x10] sm:$0xff] }
  0x52   :  { %v12080_v23 = vcombine.high %v12076_v22, %v12076_v22 }
  0x53   :  { %7104 = vmatpush1.bf16.msra.mxu1 %v9976_v24  ;;  %v12087_v24 = vld [vmem:[%s15330_s0 + $0x40] sm:$0xff] }
  0x54   :  { %7350 = vmatpush1.bf16.msra.mxu0 %v9979_v25  ;;  %7105 = vmatprep.subr.bf16.mxu1 %v9984_v26  ;;  %v10058_v25 = vld [vmem:[%s15329_s1 + $0x630] ss:$24 sps:$4 sm:$0xff]  }
  0x55   :  { %7351 = vmatprep.subr.bf16.mxu0 %v9987_v27  ;;  %v10061_v26 = vld [vmem:[%s15329_s1 + $0x1830] ss:$24 sps:$4 sm:$0xff]   ;;  %v12097_v27 = vcombine.high %v12087_v24, %v12087_v24 }
  0x57   :  { %7106 = vmatpush1.bf16.msra.mxu1 %v9982_v28  ;;  %v10066_v28 = vld [vmem:[%s15329_s1 + $0x664] ss:$24 sps:$4 sm:$0xff]  }
  0x58   :  { %7352 = vmatpush1.bf16.msra.mxu0 %v9985_v29  ;;  %7107 = vmatprep.subr.bf16.mxu1 %v9990_v30  ;;  %v10069_v29 = vld [vmem:[%s15329_s1 + $0x1864] ss:$24 sps:$4 sm:$0xff]   ;;  %v10064_v30 = vld [vmem:[%s15329_s1 + $0x660] ss:$24 sps:$4 sm:$0xff]  }
  0x59   :  { %7353 = vmatprep.subr.bf16.mxu0 %v9993_v31  ;;  %v10067_v31 = vld [vmem:[%s15329_s1 + $0x1860] ss:$24 sps:$4 sm:$0xff]  }
  0x5b   :  { %7108 = vmatpush1.bf16.msra.mxu1 %v9988_v33  ;;  %v10075_v33 = vld [vmem:[%s15329_s1 + $0x1894] ss:$24 sps:$4 sm:$0xff]  }
  0x5c   :  { %7354 = vmatpush1.bf16.msra.mxu0 %v9991_v34  ;;  %7109 = vmatprep.subr.bf16.mxu1 %v9996_v37  ;;  %v10070_v34 = vld [vmem:[%s15329_s1 + $0x690] ss:$24 sps:$4 sm:$0xff]   ;;  %v10078_v37 = vld [vmem:[%s15329_s1 + $0x6c4] ss:$24 sps:$4 sm:$0xff]  }
  0x5d   :  { %7355 = vmatprep.subr.bf16.mxu0 %v9999_v39  ;;  %v10081_v39 = vld [vmem:[%s15329_s1 + $0x18c4] ss:$24 sps:$4 sm:$0xff]  }
  0x5f   :  { %7110 = vmatpush1.bf16.msra.mxu1 %v9994_v40  ;;  %v10076_v40 = vld [vmem:[%s15329_s1 + $0x6c0] ss:$24 sps:$4 sm:$0xff]  }
  0x60   :  { %7356 = vmatpush1.bf16.msra.mxu0 %v9997_v41  ;;  %7111 = vmatprep.subr.bf16.mxu1 %v10002_v42  ;;  %v10079_v41 = vld [vmem:[%s15329_s1 + $0x18c0] ss:$24 sps:$4 sm:$0xff]   ;;  %v10084_v42 = vld [vmem:[%s15329_s1 + $0x6f4] ss:$24 sps:$4 sm:$0xff]  }
  0x61   :  { %7357 = vmatprep.subr.bf16.mxu0 %v10005_v43  ;;  %v10087_v43 = vld [vmem:[%s15329_s1 + $0x18f4] ss:$24 sps:$4 sm:$0xff]  }
  0x63   :  { %7112 = vmatpush1.bf16.msra.mxu1 %v10000_v44  ;;  %v10082_v44 = vld [vmem:[%s15329_s1 + $0x6f0] ss:$24 sps:$4 sm:$0xff]  }
  0x64   :  { %7358 = vmatpush1.bf16.msra.mxu0 %v10003_v45  ;;  %7113 = vmatprep.subr.bf16.mxu1 %v10008_v46  ;;  %v10085_v45 = vld [vmem:[%s15329_s1 + $0x18f0] ss:$24 sps:$4 sm:$0xff]   ;;  %v10090_v46 = vld [vmem:[%s15329_s1 + $0x724] ss:$24 sps:$4 sm:$0xff]  }
  0x65   :  { %7359 = vmatprep.subr.bf16.mxu0 %v10011_v47  ;;  %v10093_v47 = vld [vmem:[%s15329_s1 + $0x1924] ss:$24 sps:$4 sm:$0xff]  }
  0x67   :  { %7114 = vmatpush1.bf16.msra.mxu1 %v10006_v49  ;;  %v10088_v49 = vld [vmem:[%s15329_s1 + $0x720] ss:$24 sps:$4 sm:$0xff]  }
  0x68   :  { %7360 = vmatpush1.bf16.msra.mxu0 %v10009_v50  ;;  %7115 = vmatprep.subr.bf16.mxu1 %v10014_v51  ;;  %v10091_v50 = vld [vmem:[%s15329_s1 + $0x1920] ss:$24 sps:$4 sm:$0xff]   ;;  %v10096_v51 = vld [vmem:[%s15329_s1 + $0x754] ss:$24 sps:$4 sm:$0xff]  }
  0x69   :  { %7361 = vmatprep.subr.bf16.mxu0 %v10017_v52  ;;  %v10099_v52 = vld [vmem:[%s15329_s1 + $0x1954] ss:$24 sps:$4 sm:$0xff]  }
  0x6b   :  { %7116 = vmatpush1.bf16.msra.mxu1 %v10012_v54  ;;  %v10094_v54 = vld [vmem:[%s15329_s1 + $0x750] ss:$24 sps:$4 sm:$0xff]  }
  0x6c   :  { %7362 = vmatpush1.bf16.msra.mxu0 %v10015_v55  ;;  %7117 = vmatprep.subr.bf16.mxu1 %v10020_v56  ;;  %v10097_v55 = vld [vmem:[%s15329_s1 + $0x1950] ss:$24 sps:$4 sm:$0xff]   ;;  %v10102_v56 = vld [vmem:[%s15329_s1 + $0x784] ss:$24 sps:$4 sm:$0xff]  }
  0x6d   :  { %7363 = vmatprep.subr.bf16.mxu0 %v10023_v57  ;;  %v10105_v57 = vld [vmem:[%s15329_s1 + $0x1984] ss:$24 sps:$4 sm:$0xff]  }
  0x6f   :  { %7118 = vmatpush1.bf16.msra.mxu1 %v10018_v58  ;;  %v10100_v58 = vld [vmem:[%s15329_s1 + $0x780] ss:$24 sps:$4 sm:$0xff]  }
  0x70   :  { %7364 = vmatpush1.bf16.msra.mxu0 %v10021_v59  ;;  %7119 = vmatprep.subr.bf16.mxu1 %v10026_v60  ;;  %v10103_v59 = vld [vmem:[%s15329_s1 + $0x1980] ss:$24 sps:$4 sm:$0xff]   ;;  %v10108_v60 = vld [vmem:[%s15329_s1 + $0x7b4] ss:$24 sps:$4 sm:$0xff]  }
  0x71   :  { %7365 = vmatprep.subr.bf16.mxu0 %v10029_v61  ;;  %v10111_v61 = vld [vmem:[%s15329_s1 + $0x19b4] ss:$24 sps:$4 sm:$0xff]  }
  0x73   :  { %7120 = vmatpush1.bf16.msra.mxu1 %v10024_v62  ;;  %v10106_v62 = vld [vmem:[%s15329_s1 + $0x7b0] ss:$24 sps:$4 sm:$0xff]  }
  0x74   :  { %7366 = vmatpush1.bf16.msra.mxu0 %v10027_v63  ;;  %7121 = vmatprep.subr.bf16.mxu1 %v10032_v0  ;;  %v10109_v63 = vld [vmem:[%s15329_s1 + $0x19b0] ss:$24 sps:$4 sm:$0xff]   ;;  %v10114_v0 = vld [vmem:[%s15329_s1 + $0x7e4] ss:$24 sps:$4 sm:$0xff]  }
  0x75   :  { %7367 = vmatprep.subr.bf16.mxu0 %v10035_v1  ;;  %v10117_v1 = vld [vmem:[%s15329_s1 + $0x19e4] ss:$24 sps:$4 sm:$0xff]  }
  0x77   :  { %7122 = vmatpush1.bf16.msra.mxu1 %v10030_v2  ;;  %v10112_v2 = vld [vmem:[%s15329_s1 + $0x7e0] ss:$24 sps:$4 sm:$0xff]  }
  0x78   :  { %7368 = vmatpush1.bf16.msra.mxu0 %v10033_v3  ;;  %7123 = vmatprep.subr.bf16.mxu1 %v10038_v4  ;;  %v10115_v3 = vld [vmem:[%s15329_s1 + $0x19e0] ss:$24 sps:$4 sm:$0xff]   ;;  %v10120_v4 = vld [vmem:[%s15329_s1 + $0x814] ss:$24 sps:$4 sm:$0xff]  }
  0x79   :  { %7369 = vmatprep.subr.bf16.mxu0 %v10041_v5  ;;  %v10123_v5 = vld [vmem:[%s15329_s1 + $0x1a14] ss:$24 sps:$4 sm:$0xff]  }
  0x7b   :  { %7124 = vmatpush1.bf16.msra.mxu1 %v10036_v8  ;;  %v10118_v8 = vld [vmem:[%s15329_s1 + $0x810] ss:$24 sps:$4 sm:$0xff]  }
  0x7c   :  { %7370 = vmatpush1.bf16.msra.mxu0 %v10039_v9  ;;  %7125 = vmatprep.subr.bf16.mxu1 %v10044_v10  ;;  %v10121_v9 = vld [vmem:[%s15329_s1 + $0x1a10] ss:$24 sps:$4 sm:$0xff]   ;;  %v10126_v10 = vld [vmem:[%s15329_s1 + $0x844] ss:$24 sps:$4 sm:$0xff]  }
  0x7d   :  { %7371 = vmatprep.subr.bf16.mxu0 %v10047_v11  ;;  %v10129_v11 = vld [vmem:[%s15329_s1 + $0x1a44] ss:$24 sps:$4 sm:$0xff]  }
  0x7f   :  { %7126 = vmatpush1.bf16.msra.mxu1 %v10042_v12  ;;  %v10124_v12 = vld [vmem:[%s15329_s1 + $0x840] ss:$24 sps:$4 sm:$0xff]  }
  0x80   :  { %7372 = vmatpush1.bf16.msra.mxu0 %v10045_v13  ;;  %7136 = vmatprep.subr.bf16.mxu1 %v10052_v14  ;;  %v10127_v13 = vld [vmem:[%s15329_s1 + $0x1a40] ss:$24 sps:$4 sm:$0xff]   ;;  %v10132_v14 = vld [vmem:[%s15329_s1 + $0x874] ss:$24 sps:$4 sm:$0xff]  }
  0x81   :  { %7382 = vmatprep.subr.bf16.mxu0 %v10057_v15  ;;  %v10135_v15 = vld [vmem:[%s15329_s1 + $0x1a74] ss:$24 sps:$4 sm:$0xff]  }
  0x82   :  { %7128 = vmatmul.mubr.bf16.vlgmr.msra.gmra.mrb[0].mxu1 %v12055_v16 }
  0x83   :  { %7374 = vmatmul.mubr.bf16.vlgmr.msra.gmra.mrb[0].mxu0 %v12062_v18  ;;  %7137 = vmatpush1.bf16.msra.mxu1 %v10050_v17  ;;  %v10130_v17 = vld [vmem:[%s15329_s1 + $0x870] ss:$24 sps:$4 sm:$0xff]  }
  0x84   :  { %7383 = vmatpush1.bf16.msra.mxu0 %v10055_v19  ;;  %7138 = vmatprep.subr.bf16.mxu1 %v10060_v20  ;;  %v10133_v19 = vld [vmem:[%s15329_s1 + $0x1a70] ss:$24 sps:$4 sm:$0xff]   ;;  %v10138_v20 = vld [vmem:[%s15329_s1 + $0x8a4] ss:$24 sps:$4 sm:$0xff]  }
  0x85   :  { %7384 = vmatprep.subr.bf16.mxu0 %v10063_v21  ;;  %7168 = vmatprep.mubr.bf16.mxu1 %v12080_v23  ;;  %v10141_v21 = vld [vmem:[%s15329_s1 + $0x1aa4] ss:$24 sps:$4 sm:$0xff]  }
  0x86   :  { %7414 = vmatprep.mubr.bf16.mxu0 %v12097_v27 }
  0x87   :  { %7139 = vmatpush1.bf16.msra.mxu1 %v10058_v25  ;;  %v10136_v25 = vld [vmem:[%s15329_s1 + $0x8a0] ss:$24 sps:$4 sm:$0xff]  }
  0x88   :  { %7385 = vmatpush1.bf16.msra.mxu0 %v10061_v26  ;;  %7140 = vmatprep.subr.bf16.mxu1 %v10066_v28  ;;  %v10139_v26 = vld [vmem:[%s15329_s1 + $0x1aa0] ss:$24 sps:$4 sm:$0xff]   ;;  %v10144_v28 = vld [vmem:[%s15329_s1 + $0x8d4] ss:$24 sps:$4 sm:$0xff]  }
  0x89   :  { %7386 = vmatprep.subr.bf16.mxu0 %v10069_v29  ;;  %v10147_v29 = vld [vmem:[%s15329_s1 + $0x1ad4] ss:$24 sps:$4 sm:$0xff]  }
  0x8b   :  { %7141 = vmatpush1.bf16.msra.mxu1 %v10064_v30  ;;  %v10142_v30 = vld [vmem:[%s15329_s1 + $0x8d0] ss:$24 sps:$4 sm:$0xff]  }
  0x8c   :  { %7387 = vmatpush1.bf16.msra.mxu0 %v10067_v31  ;;  %7142 = vmatprep.subr.bf16.mxu1 %v10072_v32  ;;  %v10145_v31 = vld [vmem:[%s15329_s1 + $0x1ad0] ss:$24 sps:$4 sm:$0xff]   ;;  %v10152_v32 = vld [vmem:[%s15329_s1 + $0x904] ss:$24 sps:$4 sm:$0xff]  }
  0x8d   :  { %7388 = vmatprep.subr.bf16.mxu0 %v10075_v33  ;;  %v10157_v33 = vld [vmem:[%s15329_s1 + $0x1b04] ss:$24 sps:$4 sm:$0xff]  }
  0x8f   :  { %7143 = vmatpush1.bf16.msra.mxu1 %v10070_v34  ;;  %v10150_v34 = vld [vmem:[%s15329_s1 + $0x900] ss:$24 sps:$4 sm:$0xff]  }
  0x90   :  { %7389 = vmatpush1.bf16.msra.mxu0 %v10073_v36  ;;  %7144 = vmatprep.subr.bf16.mxu1 %v10078_v37  ;;  %v10155_v36 = vld [vmem:[%s15329_s1 + $0x1b00] ss:$24 sps:$4 sm:$0xff]   ;;  %v12283_v37 = vcombine.low %v12076_v22, %v12076_v22  ;;  %v10160_v22 = vld [vmem:[%s15329_s1 + $0x934] ss:$24 sps:$4 sm:$0xff]  }
  0x91   :  { %7390 = vmatprep.subr.bf16.mxu0 %v10081_v39  ;;  %v12287_v39 = vcombine.low %v12087_v24, %v12087_v24  ;;  %v10163_v24 = vld [vmem:[%s15329_s1 + $0x1b34] ss:$24 sps:$4 sm:$0xff]  }
  0x93   :  { %7145 = vmatpush1.bf16.msra.mxu1 %v10076_v40  ;;  %v12292_v40 = vld [vmem:[%s15330_s0 + $0x18] sm:$0xff] }
  0x94   :  { %7391 = vmatpush1.bf16.msra.mxu0 %v10079_v41  ;;  %7146 = vmatprep.subr.bf16.mxu1 %v10084_v42  ;;  %v12297_v41 = vld [vmem:[%s15330_s0 + $0x48] sm:$0xff]  ;;  %v12307_v42 = vcombine.high %v12292_v40, %v12292_v40 }
  0x95   :  { %7392 = vmatprep.subr.bf16.mxu0 %v10087_v43  ;;  %v12311_v43 = vcombine.high %v12297_v41, %v12297_v41 }
  0x97   :  { %7147 = vmatpush1.bf16.msra.mxu1 %v10082_v44  ;;  %v10158_v44 = vld [vmem:[%s15329_s1 + $0x930] ss:$24 sps:$4 sm:$0xff]  }
  0x98   :  { %7393 = vmatpush1.bf16.msra.mxu0 %v10085_v45  ;;  %7148 = vmatprep.subr.bf16.mxu1 %v10090_v46  ;;  %v10161_v45 = vld [vmem:[%s15329_s1 + $0x1b30] ss:$24 sps:$4 sm:$0xff]   ;;  %v10166_v46 = vld [vmem:[%s15329_s1 + $0x964] ss:$24 sps:$4 sm:$0xff]  }
  0x99   :  { %7394 = vmatprep.subr.bf16.mxu0 %v10093_v47  ;;  %v10169_v47 = vld [vmem:[%s15329_s1 + $0x1b64] ss:$24 sps:$4 sm:$0xff]  }
  0x9b   :  { %7149 = vmatpush1.bf16.msra.mxu1 %v10088_v49  ;;  %v10164_v49 = vld [vmem:[%s15329_s1 + $0x960] ss:$24 sps:$4 sm:$0xff]  }
  0x9c   :  { %7395 = vmatpush1.bf16.msra.mxu0 %v10091_v50  ;;  %7150 = vmatprep.subr.bf16.mxu1 %v10096_v51  ;;  %v10167_v50 = vld [vmem:[%s15329_s1 + $0x1b60] ss:$24 sps:$4 sm:$0xff]   ;;  %v10172_v51 = vld [vmem:[%s15329_s1 + $0x994] ss:$24 sps:$4 sm:$0xff]  }
  0x9d   :  { %7396 = vmatprep.subr.bf16.mxu0 %v10099_v52  ;;  %v10175_v52 = vld [vmem:[%s15329_s1 + $0x1b94] ss:$24 sps:$4 sm:$0xff]  }
  0x9f   :  { %7151 = vmatpush1.bf16.msra.mxu1 %v10094_v54  ;;  %v10170_v54 = vld [vmem:[%s15329_s1 + $0x990] ss:$24 sps:$4 sm:$0xff]  }
  0xa0   :  { %7397 = vmatpush1.bf16.msra.mxu0 %v10097_v55  ;;  %7152 = vmatprep.subr.bf16.mxu1 %v10102_v56  ;;  %v10173_v55 = vld [vmem:[%s15329_s1 + $0x1b90] ss:$24 sps:$4 sm:$0xff]   ;;  %v10178_v56 = vld [vmem:[%s15329_s1 + $0x9c4] ss:$24 sps:$4 sm:$0xff]  }
  0xa1   :  { %7398 = vmatprep.subr.bf16.mxu0 %v10105_v57  ;;  %v10181_v57 = vld [vmem:[%s15329_s1 + $0x1bc4] ss:$24 sps:$4 sm:$0xff]  }
  0xa3   :  { %7153 = vmatpush1.bf16.msra.mxu1 %v10100_v58  ;;  %v10176_v58 = vld [vmem:[%s15329_s1 + $0x9c0] ss:$24 sps:$4 sm:$0xff]  }
  0xa4   :  { %7399 = vmatpush1.bf16.msra.mxu0 %v10103_v59  ;;  %7154 = vmatprep.subr.bf16.mxu1 %v10108_v60  ;;  %v10179_v59 = vld [vmem:[%s15329_s1 + $0x1bc0] ss:$24 sps:$4 sm:$0xff]   ;;  %v10184_v60 = vld [vmem:[%s15329_s1 + $0x9f4] ss:$24 sps:$4 sm:$0xff]  }
  0xa5   :  { %7400 = vmatprep.subr.bf16.mxu0 %v10111_v61  ;;  %v10187_v61 = vld [vmem:[%s15329_s1 + $0x1bf4] ss:$24 sps:$4 sm:$0xff]  }
  0xa7   :  { %7155 = vmatpush1.bf16.msra.mxu1 %v10106_v62  ;;  %v10182_v62 = vld [vmem:[%s15329_s1 + $0x9f0] ss:$24 sps:$4 sm:$0xff]  }
  0xa8   :  { %7401 = vmatpush1.bf16.msra.mxu0 %v10109_v63  ;;  %7156 = vmatprep.subr.bf16.mxu1 %v10114_v0  ;;  %v10185_v63 = vld [vmem:[%s15329_s1 + $0x1bf0] ss:$24 sps:$4 sm:$0xff]   ;;  %v10190_v0 = vld [vmem:[%s15329_s1 + $0xa24] ss:$24 sps:$4 sm:$0xff]  }
  0xa9   :  { %7402 = vmatprep.subr.bf16.mxu0 %v10117_v1  ;;  %v10193_v1 = vld [vmem:[%s15329_s1 + $0x1c24] ss:$24 sps:$4 sm:$0xff]  }
  0xab   :  { %7157 = vmatpush1.bf16.msra.mxu1 %v10112_v2  ;;  %v10188_v2 = vld [vmem:[%s15329_s1 + $0xa20] ss:$24 sps:$4 sm:$0xff]  }
  0xac   :  { %7403 = vmatpush1.bf16.msra.mxu0 %v10115_v3  ;;  %7158 = vmatprep.subr.bf16.mxu1 %v10120_v4  ;;  %v10191_v3 = vld [vmem:[%s15329_s1 + $0x1c20] ss:$24 sps:$4 sm:$0xff]   ;;  %v10196_v4 = vld [vmem:[%s15329_s1 + $0xa54] ss:$24 sps:$4 sm:$0xff]  }
  0xad   :  { %7404 = vmatprep.subr.bf16.mxu0 %v10123_v5  ;;  %v10199_v5 = vld [vmem:[%s15329_s1 + $0x1c54] ss:$24 sps:$4 sm:$0xff]  }
  0xaf   :  { %7159 = vmatpush1.bf16.msra.mxu1 %v10118_v8  ;;  %v10194_v8 = vld [vmem:[%s15329_s1 + $0xa50] ss:$24 sps:$4 sm:$0xff]  }
  0xb0   :  { %7405 = vmatpush1.bf16.msra.mxu0 %v10121_v9  ;;  %7160 = vmatprep.subr.bf16.mxu1 %v10126_v10  ;;  %v10197_v9 = vld [vmem:[%s15329_s1 + $0x1c50] ss:$24 sps:$4 sm:$0xff]   ;;  %v10202_v10 = vld [vmem:[%s15329_s1 + $0xa84] ss:$24 sps:$4 sm:$0xff]  }
  0xb1   :  { %7406 = vmatprep.subr.bf16.mxu0 %v10129_v11  ;;  %v10205_v11 = vld [vmem:[%s15329_s1 + $0x1c84] ss:$24 sps:$4 sm:$0xff]  }
  0xb3   :  { %7161 = vmatpush1.bf16.msra.mxu1 %v10124_v12  ;;  %v10200_v12 = vld [vmem:[%s15329_s1 + $0xa80] ss:$24 sps:$4 sm:$0xff]  }
  0xb4   :  { %7407 = vmatpush1.bf16.msra.mxu0 %v10127_v13  ;;  %7162 = vmatprep.subr.bf16.mxu1 %v10132_v14  ;;  %v10203_v13 = vld [vmem:[%s15329_s1 + $0x1c80] ss:$24 sps:$4 sm:$0xff]   ;;  %v10208_v14 = vld [vmem:[%s15329_s1 + $0xab4] ss:$24 sps:$4 sm:$0xff]  }
  0xb5   :  { %7408 = vmatprep.subr.bf16.mxu0 %v10135_v15  ;;  %v10211_v15 = vld [vmem:[%s15329_s1 + $0x1cb4] ss:$24 sps:$4 sm:$0xff]  }
  0xb7   :  { %7163 = vmatpush1.bf16.msra.mxu1 %v10130_v17  ;;  %v10206_v17 = vld [vmem:[%s15329_s1 + $0xab0] ss:$24 sps:$4 sm:$0xff]  }
  0xb8   :  { %7409 = vmatpush1.bf16.msra.mxu0 %v10133_v19  ;;  %7164 = vmatprep.subr.bf16.mxu1 %v10138_v20  ;;  %v10209_v19 = vld [vmem:[%s15329_s1 + $0x1cb0] ss:$24 sps:$4 sm:$0xff]   ;;  %v10214_v20 = vld [vmem:[%s15329_s1 + $0xae4] ss:$24 sps:$4 sm:$0xff]  }
  0xb9   :  { %7410 = vmatprep.subr.bf16.mxu0 %v10141_v21  ;;  %v10217_v21 = vld [vmem:[%s15329_s1 + $0x1ce4] ss:$24 sps:$4 sm:$0xff]  }
  0xbb   :  { %7165 = vmatpush1.bf16.msra.mxu1 %v10136_v25  ;;  %v10212_v25 = vld [vmem:[%s15329_s1 + $0xae0] ss:$24 sps:$4 sm:$0xff]  }
  0xbc   :  { %7411 = vmatpush1.bf16.msra.mxu0 %v10139_v26  ;;  %7166 = vmatprep.subr.bf16.mxu1 %v10144_v28  ;;  %v10215_v26 = vld [vmem:[%s15329_s1 + $0x1ce0] ss:$24 sps:$4 sm:$0xff]   ;;  %v10220_v28 = vld [vmem:[%s15329_s1 + $0xb14] ss:$24 sps:$4 sm:$0xff]  }
  0xbd   :  { %7412 = vmatprep.subr.bf16.mxu0 %v10147_v29  ;;  %v10223_v29 = vld [vmem:[%s15329_s1 + $0x1d14] ss:$24 sps:$4 sm:$0xff]  }
  0xbf   :  { %7167 = vmatpush1.bf16.msra.mxu1 %v10142_v30  ;;  %v10218_v30 = vld [vmem:[%s15329_s1 + $0xb10] ss:$24 sps:$4 sm:$0xff]  }
  0xc0   :  { %7413 = vmatpush1.bf16.msra.mxu0 %v10145_v31  ;;  %7177 = vmatprep.subr.bf16.mxu1 %v10152_v32  ;;  %v10221_v31 = vld [vmem:[%s15329_s1 + $0x1d10] ss:$24 sps:$4 sm:$0xff]   ;;  %v10226_v32 = vld [vmem:[%s15329_s1 + $0xb44] ss:$24 sps:$4 sm:$0xff]  }
  0xc1   :  { %7423 = vmatprep.subr.bf16.mxu0 %v10157_v33  ;;  %v10229_v33 = vld [vmem:[%s15329_s1 + $0x1d44] ss:$24 sps:$4 sm:$0xff]  }
  0xc2   :  { %7169 = vmatmul.mubr.bf16.vlgmr.msra.gmra.mrb[0].mxu1 %v12283_v37 }
  0xc3   :  { %7415 = vmatmul.mubr.bf16.vlgmr.msra.gmra.mrb[0].mxu0 %v12287_v39  ;;  %7178 = vmatpush1.bf16.msra.mxu1 %v10150_v34  ;;  %v10224_v34 = vld [vmem:[%s15329_s1 + $0xb40] ss:$24 sps:$4 sm:$0xff]  }
  0xc4   :  { %7424 = vmatpush1.bf16.msra.mxu0 %v10155_v36  ;;  %7179 = vmatprep.subr.bf16.mxu1 %v10160_v22  ;;  %v10227_v36 = vld [vmem:[%s15329_s1 + $0x1d40] ss:$24 sps:$4 sm:$0xff]   ;;  %v10232_v22 = vld [vmem:[%s15329_s1 + $0xb74] ss:$24 sps:$4 sm:$0xff]  }
  0xc5   :  { %7425 = vmatprep.subr.bf16.mxu0 %v10163_v24  ;;  %7209 = vmatprep.mubr.bf16.mxu1 %v12307_v42  ;;  %v10235_v24 = vld [vmem:[%s15329_s1 + $0x1d74] ss:$24 sps:$4 sm:$0xff]  }
  0xc6   :  { %7455 = vmatprep.mubr.bf16.mxu0 %v12311_v43 }
  0xc7   :  { %7180 = vmatpush1.bf16.msra.mxu1 %v10158_v44  ;;  %v10230_v44 = vld [vmem:[%s15329_s1 + $0xb70] ss:$24 sps:$4 sm:$0xff]  }
  0xc8   :  { %7426 = vmatpush1.bf16.msra.mxu0 %v10161_v45  ;;  %7181 = vmatprep.subr.bf16.mxu1 %v10166_v46  ;;  %v10233_v45 = vld [vmem:[%s15329_s1 + $0x1d70] ss:$24 sps:$4 sm:$0xff]   ;;  %v10238_v46 = vld [vmem:[%s15329_s1 + $0xba4] ss:$24 sps:$4 sm:$0xff]  }
  0xc9   :  { %7427 = vmatprep.subr.bf16.mxu0 %v10169_v47  ;;  %v10241_v47 = vld [vmem:[%s15329_s1 + $0x1da4] ss:$24 sps:$4 sm:$0xff]  }
  0xcb   :  { %7182 = vmatpush1.bf16.msra.mxu1 %v10164_v49  ;;  %v10236_v49 = vld [vmem:[%s15329_s1 + $0xba0] ss:$24 sps:$4 sm:$0xff]  }
  0xcc   :  { %7428 = vmatpush1.bf16.msra.mxu0 %v10167_v50  ;;  %7183 = vmatprep.subr.bf16.mxu1 %v10172_v51  ;;  %v10239_v50 = vld [vmem:[%s15329_s1 + $0x1da0] ss:$24 sps:$4 sm:$0xff]   ;;  %v10244_v51 = vld [vmem:[%s15329_s1 + $0xbd4] ss:$24 sps:$4 sm:$0xff]  }
  0xcd   :  { %7429 = vmatprep.subr.bf16.mxu0 %v10175_v52  ;;  %v10247_v52 = vld [vmem:[%s15329_s1 + $0x1dd4] ss:$24 sps:$4 sm:$0xff]  }
  0xcf   :  { %7184 = vmatpush1.bf16.msra.mxu1 %v10170_v54  ;;  %v10242_v54 = vld [vmem:[%s15329_s1 + $0xbd0] ss:$24 sps:$4 sm:$0xff]  }
  0xd0   :  { %7430 = vmatpush1.bf16.msra.mxu0 %v10173_v55  ;;  %7185 = vmatprep.subr.bf16.mxu1 %v10178_v56  ;;  %v10245_v55 = vld [vmem:[%s15329_s1 + $0x1dd0] ss:$24 sps:$4 sm:$0xff]   ;;  %v10252_v56 = vld [vmem:[%s15329_s1 + $0xc04] ss:$24 sps:$4 sm:$0xff]  }
  0xd1   :  { %7431 = vmatprep.subr.bf16.mxu0 %v10181_v57  ;;  %v10257_v57 = vld [vmem:[%s15329_s1 + $0x1e04] ss:$24 sps:$4 sm:$0xff]  }
  0xd3   :  { %7186 = vmatpush1.bf16.msra.mxu1 %v10176_v58  ;;  %v12500_v58 = vld [vmem:[%s15330_s0 + $0x20] sm:$0xff] }
  0xd4   :  { %7432 = vmatpush1.bf16.msra.mxu0 %v10179_v59  ;;  %7187 = vmatprep.subr.bf16.mxu1 %v10184_v60  ;;  %v12504_v59 = vcombine.low %v12292_v40, %v12292_v40  ;;  %v12508_v60 = vcombine.low %v12297_v41, %v12297_v41  ;;  %v10255_v40 = vld [vmem:[%s15329_s1 + $0x1e00] ss:$24 sps:$4 sm:$0xff]   ;;  %v10260_v41 = vld [vmem:[%s15329_s1 + $0xc34] ss:$24 sps:$4 sm:$0xff]  }
  0xd5   :  { %7433 = vmatprep.subr.bf16.mxu0 %v10187_v61  ;;  %v12513_v61 = vld [vmem:[%s15330_s0 + $0x50] sm:$0xff] }
  0xd7   :  { %7188 = vmatpush1.bf16.msra.mxu1 %v10182_v62  ;;  %v10250_v62 = vld [vmem:[%s15329_s1 + $0xc00] ss:$24 sps:$4 sm:$0xff]  }
  0xd8   :  { %7434 = vmatpush1.bf16.msra.mxu0 %v10185_v63  ;;  %7189 = vmatprep.subr.bf16.mxu1 %v10190_v0  ;;  %v10263_v63 = vld [vmem:[%s15329_s1 + $0x1e34] ss:$24 sps:$4 sm:$0xff]   ;;  %v12529_v0 = vcombine.high %v12500_v58, %v12500_v58 }
  0xd9   :  { %7435 = vmatprep.subr.bf16.mxu0 %v10193_v1  ;;  %v12533_v1 = vcombine.high %v12513_v61, %v12513_v61 }
  0xdb   :  { %7190 = vmatpush1.bf16.msra.mxu1 %v10188_v2  ;;  %v10258_v2 = vld [vmem:[%s15329_s1 + $0xc30] ss:$24 sps:$4 sm:$0xff]  }
  0xdc   :  { %7436 = vmatpush1.bf16.msra.mxu0 %v10191_v3  ;;  %7191 = vmatprep.subr.bf16.mxu1 %v10196_v4  ;;  %v10261_v3 = vld [vmem:[%s15329_s1 + $0x1e30] ss:$24 sps:$4 sm:$0xff]   ;;  %v10266_v4 = vld [vmem:[%s15329_s1 + $0xc64] ss:$24 sps:$4 sm:$0xff]  }
  0xdd   :  { %7437 = vmatprep.subr.bf16.mxu0 %v10199_v5  ;;  %v10269_v5 = vld [vmem:[%s15329_s1 + $0x1e64] ss:$24 sps:$4 sm:$0xff]  }
  0xdf   :  { %7192 = vmatpush1.bf16.msra.mxu1 %v10194_v8  ;;  %v10264_v8 = vld [vmem:[%s15329_s1 + $0xc60] ss:$24 sps:$4 sm:$0xff]  }
  0xe0   :  { %7438 = vmatpush1.bf16.msra.mxu0 %v10197_v9  ;;  %7193 = vmatprep.subr.bf16.mxu1 %v10202_v10  ;;  %v10267_v9 = vld [vmem:[%s15329_s1 + $0x1e60] ss:$24 sps:$4 sm:$0xff]   ;;  %v10272_v10 = vld [vmem:[%s15329_s1 + $0xc94] ss:$24 sps:$4 sm:$0xff]  }
  0xe1   :  { %7439 = vmatprep.subr.bf16.mxu0 %v10205_v11  ;;  %v10275_v11 = vld [vmem:[%s15329_s1 + $0x1e94] ss:$24 sps:$4 sm:$0xff]  }
  0xe3   :  { %7194 = vmatpush1.bf16.msra.mxu1 %v10200_v12  ;;  %v10270_v12 = vld [vmem:[%s15329_s1 + $0xc90] ss:$24 sps:$4 sm:$0xff]  }
  0xe4   :  { %7440 = vmatpush1.bf16.msra.mxu0 %v10203_v13  ;;  %7195 = vmatprep.subr.bf16.mxu1 %v10208_v14  ;;  %v10273_v13 = vld [vmem:[%s15329_s1 + $0x1e90] ss:$24 sps:$4 sm:$0xff]   ;;  %v10278_v14 = vld [vmem:[%s15329_s1 + $0xcc4] ss:$24 sps:$4 sm:$0xff]  }
  0xe5   :  { %7441 = vmatprep.subr.bf16.mxu0 %v10211_v15  ;;  %v10281_v15 = vld [vmem:[%s15329_s1 + $0x1ec4] ss:$24 sps:$4 sm:$0xff]  }
  0xe7   :  { %7196 = vmatpush1.bf16.msra.mxu1 %v10206_v17  ;;  %v10276_v17 = vld [vmem:[%s15329_s1 + $0xcc0] ss:$24 sps:$4 sm:$0xff]  }
  0xe8   :  { %7442 = vmatpush1.bf16.msra.mxu0 %v10209_v19  ;;  %7197 = vmatprep.subr.bf16.mxu1 %v10214_v20  ;;  %v10279_v19 = vld [vmem:[%s15329_s1 + $0x1ec0] ss:$24 sps:$4 sm:$0xff]   ;;  %v10284_v20 = vld [vmem:[%s15329_s1 + $0xcf4] ss:$24 sps:$4 sm:$0xff]  }
  0xe9   :  { %7443 = vmatprep.subr.bf16.mxu0 %v10217_v21  ;;  %v10287_v21 = vld [vmem:[%s15329_s1 + $0x1ef4] ss:$24 sps:$4 sm:$0xff]  }
  0xeb   :  { %7198 = vmatpush1.bf16.msra.mxu1 %v10212_v25  ;;  %v10282_v25 = vld [vmem:[%s15329_s1 + $0xcf0] ss:$24 sps:$4 sm:$0xff]  }
  0xec   :  { %7444 = vmatpush1.bf16.msra.mxu0 %v10215_v26  ;;  %7199 = vmatprep.subr.bf16.mxu1 %v10220_v28  ;;  %v10285_v26 = vld [vmem:[%s15329_s1 + $0x1ef0] ss:$24 sps:$4 sm:$0xff]   ;;  %v10290_v28 = vld [vmem:[%s15329_s1 + $0xd24] ss:$24 sps:$4 sm:$0xff]  }
  0xed   :  { %7445 = vmatprep.subr.bf16.mxu0 %v10223_v29  ;;  %v10293_v29 = vld [vmem:[%s15329_s1 + $0x1f24] ss:$24 sps:$4 sm:$0xff]  }
  0xef   :  { %7200 = vmatpush1.bf16.msra.mxu1 %v10218_v30  ;;  %v10288_v30 = vld [vmem:[%s15329_s1 + $0xd20] ss:$24 sps:$4 sm:$0xff]  }
  0xf0   :  { %7446 = vmatpush1.bf16.msra.mxu0 %v10221_v31  ;;  %7201 = vmatprep.subr.bf16.mxu1 %v10226_v32  ;;  %v10291_v31 = vld [vmem:[%s15329_s1 + $0x1f20] ss:$24 sps:$4 sm:$0xff]   ;;  %v10296_v32 = vld [vmem:[%s15329_s1 + $0xd54] ss:$24 sps:$4 sm:$0xff]  }
  0xf1   :  { %7447 = vmatprep.subr.bf16.mxu0 %v10229_v33  ;;  %v10299_v33 = vld [vmem:[%s15329_s1 + $0x1f54] ss:$24 sps:$4 sm:$0xff]  }
  0xf3   :  { %7202 = vmatpush1.bf16.msra.mxu1 %v10224_v34  ;;  %v10294_v34 = vld [vmem:[%s15329_s1 + $0xd50] ss:$24 sps:$4 sm:$0xff]  }
  0xf4   :  { %7448 = vmatpush1.bf16.msra.mxu0 %v10227_v36  ;;  %7203 = vmatprep.subr.bf16.mxu1 %v10232_v22  ;;  %v10297_v36 = vld [vmem:[%s15329_s1 + $0x1f50] ss:$24 sps:$4 sm:$0xff]   ;;  %v10302_v22 = vld [vmem:[%s15329_s1 + $0xd84] ss:$24 sps:$4 sm:$0xff]  }
  0xf5   :  { %7449 = vmatprep.subr.bf16.mxu0 %v10235_v24  ;;  %v10305_v24 = vld [vmem:[%s15329_s1 + $0x1f84] ss:$24 sps:$4 sm:$0xff]  }
  0xf7   :  { %7204 = vmatpush1.bf16.msra.mxu1 %v10230_v44  ;;  %v10300_v44 = vld [vmem:[%s15329_s1 + $0xd80] ss:$24 sps:$4 sm:$0xff]  }
  0xf8   :  { %7450 = vmatpush1.bf16.msra.mxu0 %v10233_v45  ;;  %7205 = vmatprep.subr.bf16.mxu1 %v10238_v46  ;;  %v10303_v45 = vld [vmem:[%s15329_s1 + $0x1f80] ss:$24 sps:$4 sm:$0xff]   ;;  %v10308_v46 = vld [vmem:[%s15329_s1 + $0xdb4] ss:$24 sps:$4 sm:$0xff]  }
  0xf9   :  { %7451 = vmatprep.subr.bf16.mxu0 %v10241_v47  ;;  %v10311_v47 = vld [vmem:[%s15329_s1 + $0x1fb4] ss:$24 sps:$4 sm:$0xff]  }
  0xfb   :  { %7206 = vmatpush1.bf16.msra.mxu1 %v10236_v49  ;;  %v10306_v49 = vld [vmem:[%s15329_s1 + $0xdb0] ss:$24 sps:$4 sm:$0xff]  }
  0xfc   :  { %7452 = vmatpush1.bf16.msra.mxu0 %v10239_v50  ;;  %7207 = vmatprep.subr.bf16.mxu1 %v10244_v51  ;;  %v10309_v50 = vld [vmem:[%s15329_s1 + $0x1fb0] ss:$24 sps:$4 sm:$0xff]   ;;  %v10314_v51 = vld [vmem:[%s15329_s1 + $0xde4] ss:$24 sps:$4 sm:$0xff]  }
  0xfd   :  { %7453 = vmatprep.subr.bf16.mxu0 %v10247_v52  ;;  %v10317_v52 = vld [vmem:[%s15329_s1 + $0x1fe4] ss:$24 sps:$4 sm:$0xff]  }
  0xff   :  { %7208 = vmatpush1.bf16.msra.mxu1 %v10242_v54  ;;  %v10312_v54 = vld [vmem:[%s15329_s1 + $0xde0] ss:$24 sps:$4 sm:$0xff]  }
 0x100   :  { %7454 = vmatpush1.bf16.msra.mxu0 %v10245_v55  ;;  %7218 = vmatprep.subr.bf16.mxu1 %v10252_v56  ;;  %v10315_v55 = vld [vmem:[%s15329_s1 + $0x1fe0] ss:$24 sps:$4 sm:$0xff]   ;;  %v10320_v56 = vld [vmem:[%s15329_s1 + $0xe14] ss:$24 sps:$4 sm:$0xff]  }
 0x101   :  { %7464 = vmatprep.subr.bf16.mxu0 %v10257_v57  ;;  %v10323_v57 = vld [vmem:[%s15329_s1 + $0x2014] ss:$24 sps:$4 sm:$0xff]  }
 0x102   :  { %7210 = vmatmul.mubr.bf16.vlgmr.msra.gmra.mrb[0].mxu1 %v12504_v59 }
 0x103   :  { %7456 = vmatmul.mubr.bf16.vlgmr.msra.gmra.mrb[0].mxu0 %v12508_v60  ;;  %7219 = vmatpush1.bf16.msra.mxu1 %v10250_v62  ;;  %v10318_v62 = vld [vmem:[%s15329_s1 + $0xe10] ss:$24 sps:$4 sm:$0xff]  }
 0x104   :  { %7465 = vmatpush1.bf16.msra.mxu0 %v10255_v40  ;;  %7220 = vmatprep.subr.bf16.mxu1 %v10260_v41  ;;  %v10321_v40 = vld [vmem:[%s15329_s1 + $0x2010] ss:$24 sps:$4 sm:$0xff]   ;;  %v10326_v41 = vld [vmem:[%s15329_s1 + $0xe44] ss:$24 sps:$4 sm:$0xff]  }
 0x105   :  { %7466 = vmatprep.subr.bf16.mxu0 %v10263_v63  ;;  %7250 = vmatprep.mubr.bf16.mxu1 %v12529_v0  ;;  %v10329_v63 = vld [vmem:[%s15329_s1 + $0x2044] ss:$24 sps:$4 sm:$0xff]  }
 0x106   :  { %7496 = vmatprep.mubr.bf16.mxu0 %v12533_v1 }
 0x107   :  { %7221 = vmatpush1.bf16.msra.mxu1 %v10258_v2  ;;  %v10324_v2 = vld [vmem:[%s15329_s1 + $0xe40] ss:$24 sps:$4 sm:$0xff]  }
 0x108   :  { %7467 = vmatpush1.bf16.msra.mxu0 %v10261_v3  ;;  %7222 = vmatprep.subr.bf16.mxu1 %v10266_v4  ;;  %v10327_v3 = vld [vmem:[%s15329_s1 + $0x2040] ss:$24 sps:$4 sm:$0xff]   ;;  %v10332_v4 = vld [vmem:[%s15329_s1 + $0xe74] ss:$24 sps:$4 sm:$0xff]  }
 0x109   :  { %7468 = vmatprep.subr.bf16.mxu0 %v10269_v5  ;;  %v10335_v5 = vld [vmem:[%s15329_s1 + $0x2074] ss:$24 sps:$4 sm:$0xff]  }
 0x10b   :  { %7223 = vmatpush1.bf16.msra.mxu1 %v10264_v8  ;;  %v10330_v8 = vld [vmem:[%s15329_s1 + $0xe70] ss:$24 sps:$4 sm:$0xff]  }
 0x10c   :  { %7469 = vmatpush1.bf16.msra.mxu0 %v10267_v9  ;;  %7224 = vmatprep.subr.bf16.mxu1 %v10272_v10  ;;  %v10333_v9 = vld [vmem:[%s15329_s1 + $0x2070] ss:$24 sps:$4 sm:$0xff]   ;;  %v10338_v10 = vld [vmem:[%s15329_s1 + $0xea4] ss:$24 sps:$4 sm:$0xff]  }
 0x10d   :  { %7470 = vmatprep.subr.bf16.mxu0 %v10275_v11  ;;  %v10341_v11 = vld [vmem:[%s15329_s1 + $0x20a4] ss:$24 sps:$4 sm:$0xff]  }
 0x10f   :  { %7225 = vmatpush1.bf16.msra.mxu1 %v10270_v12  ;;  %v10336_v12 = vld [vmem:[%s15329_s1 + $0xea0] ss:$24 sps:$4 sm:$0xff]  }
 0x110   :  { %7471 = vmatpush1.bf16.msra.mxu0 %v10273_v13  ;;  %7226 = vmatprep.subr.bf16.mxu1 %v10278_v14  ;;  %v10339_v13 = vld [vmem:[%s15329_s1 + $0x20a0] ss:$24 sps:$4 sm:$0xff]   ;;  %v10344_v14 = vld [vmem:[%s15329_s1 + $0xed4] ss:$24 sps:$4 sm:$0xff]  }
 0x111   :  { %7472 = vmatprep.subr.bf16.mxu0 %v10281_v15  ;;  %v10347_v15 = vld [vmem:[%s15329_s1 + $0x20d4] ss:$24 sps:$4 sm:$0xff]  }
 0x113   :  { %7227 = vmatpush1.bf16.msra.mxu1 %v10276_v17  ;;  %v10342_v17 = vld [vmem:[%s15329_s1 + $0xed0] ss:$24 sps:$4 sm:$0xff]  }
 0x114   :  { %7473 = vmatpush1.bf16.msra.mxu0 %v10279_v19  ;;  %7228 = vmatprep.subr.bf16.mxu1 %v10284_v20  ;;  %v10345_v19 = vld [vmem:[%s15329_s1 + $0x20d0] ss:$24 sps:$4 sm:$0xff]   ;;  %v10352_v20 = vld [vmem:[%s15329_s1 + $0xf04] ss:$24 sps:$4 sm:$0xff]  }
 0x115   :  { %7474 = vmatprep.subr.bf16.mxu0 %v10287_v21  ;;  %v10357_v21 = vld [vmem:[%s15329_s1 + $0x2104] ss:$24 sps:$4 sm:$0xff]  }
 0x117   :  { %7229 = vmatpush1.bf16.msra.mxu1 %v10282_v25  ;;  %v12722_v25 = vld [vmem:[%s15330_s0 + $0x28] sm:$0xff] }
 0x118   :  { %7475 = vmatpush1.bf16.msra.mxu0 %v10285_v26  ;;  %7230 = vmatprep.subr.bf16.mxu1 %v10290_v28  ;;  %v12727_v26 = vld [vmem:[%s15330_s0 + $0x58] sm:$0xff]  ;;  %v12731_v28 = vcombine.low %v12500_v58, %v12500_v58  ;;  %v10360_v58 = vld [vmem:[%s15329_s1 + $0xf34] ss:$24 sps:$4 sm:$0xff]  }
 0x119   :  { %7476 = vmatprep.subr.bf16.mxu0 %v10293_v29  ;;  %v12735_v29 = vcombine.low %v12513_v61, %v12513_v61  ;;  %v10363_v61 = vld [vmem:[%s15329_s1 + $0x2134] ss:$24 sps:$4 sm:$0xff]  }
 0x11b   :  { %7231 = vmatpush1.bf16.msra.mxu1 %v10288_v30  ;;  %v10350_v30 = vld [vmem:[%s15329_s1 + $0xf00] ss:$24 sps:$4 sm:$0xff]  }
 0x11c   :  { %7477 = vmatpush1.bf16.msra.mxu0 %v10291_v31  ;;  %7232 = vmatprep.subr.bf16.mxu1 %v10296_v32  ;;  %v10355_v31 = vld [vmem:[%s15329_s1 + $0x2100] ss:$24 sps:$4 sm:$0xff]   ;;  %v12751_v32 = vcombine.high %v12722_v25, %v12722_v25 }
 0x11d   :  { %7478 = vmatprep.subr.bf16.mxu0 %v10299_v33  ;;  %v12755_v33 = vcombine.high %v12727_v26, %v12727_v26 }
 0x11f   :  { %7233 = vmatpush1.bf16.msra.mxu1 %v10294_v34  ;;  %v10358_v34 = vld [vmem:[%s15329_s1 + $0xf30] ss:$24 sps:$4 sm:$0xff]  }
 0x120   :  { %7479 = vmatpush1.bf16.msra.mxu0 %v10297_v36  ;;  %7234 = vmatprep.subr.bf16.mxu1 %v10302_v22  ;;  %v10361_v36 = vld [vmem:[%s15329_s1 + $0x2130] ss:$24 sps:$4 sm:$0xff]   ;;  %v10366_v22 = vld [vmem:[%s15329_s1 + $0xf64] ss:$24 sps:$4 sm:$0xff]  }
 0x121   :  { %7480 = vmatprep.subr.bf16.mxu0 %v10305_v24  ;;  %v10369_v24 = vld [vmem:[%s15329_s1 + $0x2164] ss:$24 sps:$4 sm:$0xff]  }
 0x123   :  { %7235 = vmatpush1.bf16.msra.mxu1 %v10300_v44  ;;  %v10364_v44 = vld [vmem:[%s15329_s1 + $0xf60] ss:$24 sps:$4 sm:$0xff]  }
 0x124   :  { %7481 = vmatpush1.bf16.msra.mxu0 %v10303_v45  ;;  %7236 = vmatprep.subr.bf16.mxu1 %v10308_v46  ;;  %v10367_v45 = vld [vmem:[%s15329_s1 + $0x2160] ss:$24 sps:$4 sm:$0xff]   ;;  %v10372_v46 = vld [vmem:[%s15329_s1 + $0xf94] ss:$24 sps:$4 sm:$0xff]  }
 0x125   :  { %7482 = vmatprep.subr.bf16.mxu0 %v10311_v47  ;;  %v10375_v47 = vld [vmem:[%s15329_s1 + $0x2194] ss:$24 sps:$4 sm:$0xff]  }
 0x127   :  { %7237 = vmatpush1.bf16.msra.mxu1 %v10306_v49  ;;  %v10370_v49 = vld [vmem:[%s15329_s1 + $0xf90] ss:$24 sps:$4 sm:$0xff]  }
 0x128   :  { %7483 = vmatpush1.bf16.msra.mxu0 %v10309_v50  ;;  %7238 = vmatprep.subr.bf16.mxu1 %v10314_v51  ;;  %v10373_v50 = vld [vmem:[%s15329_s1 + $0x2190] ss:$24 sps:$4 sm:$0xff]   ;;  %v10378_v51 = vld [vmem:[%s15329_s1 + $0xfc4] ss:$24 sps:$4 sm:$0xff]  }
 0x129   :  { %7484 = vmatprep.subr.bf16.mxu0 %v10317_v52  ;;  %v10381_v52 = vld [vmem:[%s15329_s1 + $0x21c4] ss:$24 sps:$4 sm:$0xff]  }
 0x12b   :  { %7239 = vmatpush1.bf16.msra.mxu1 %v10312_v54  ;;  %v10376_v54 = vld [vmem:[%s15329_s1 + $0xfc0] ss:$24 sps:$4 sm:$0xff]  }
 0x12c   :  { %7485 = vmatpush1.bf16.msra.mxu0 %v10315_v55  ;;  %7240 = vmatprep.subr.bf16.mxu1 %v10320_v56  ;;  %v10379_v55 = vld [vmem:[%s15329_s1 + $0x21c0] ss:$24 sps:$4 sm:$0xff]   ;;  %v10384_v56 = vld [vmem:[%s15329_s1 + $0xff4] ss:$24 sps:$4 sm:$0xff]  }
 0x12d   :  { %7486 = vmatprep.subr.bf16.mxu0 %v10323_v57  ;;  %v10387_v57 = vld [vmem:[%s15329_s1 + $0x21f4] ss:$24 sps:$4 sm:$0xff]  }
 0x12f   :  { %7241 = vmatpush1.bf16.msra.mxu1 %v10318_v62  ;;  %v10382_v62 = vld [vmem:[%s15329_s1 + $0xff0] ss:$24 sps:$4 sm:$0xff]  }
 0x130   :  { %7487 = vmatpush1.bf16.msra.mxu0 %v10321_v40  ;;  %7242 = vmatprep.subr.bf16.mxu1 %v10326_v41  ;;  %v10385_v40 = vld [vmem:[%s15329_s1 + $0x21f0] ss:$24 sps:$4 sm:$0xff]   ;;  %v10390_v41 = vld [vmem:[%s15329_s1 + $0x1024] ss:$24 sps:$4 sm:$0xff]  }
 0x131   :  { %7488 = vmatprep.subr.bf16.mxu0 %v10329_v63  ;;  %v10393_v63 = vld [vmem:[%s15329_s1 + $0x2224] ss:$24 sps:$4 sm:$0xff]  }
 0x133   :  { %7243 = vmatpush1.bf16.msra.mxu1 %v10324_v2  ;;  %v10388_v2 = vld [vmem:[%s15329_s1 + $0x1020] ss:$24 sps:$4 sm:$0xff]  }
 0x134   :  { %7489 = vmatpush1.bf16.msra.mxu0 %v10327_v3  ;;  %7244 = vmatprep.subr.bf16.mxu1 %v10332_v4  ;;  %v10391_v3 = vld [vmem:[%s15329_s1 + $0x2220] ss:$24 sps:$4 sm:$0xff]   ;;  %v10396_v4 = vld [vmem:[%s15329_s1 + $0x1054] ss:$24 sps:$4 sm:$0xff]  }
 0x135   :  { %7490 = vmatprep.subr.bf16.mxu0 %v10335_v5  ;;  %v10399_v5 = vld [vmem:[%s15329_s1 + $0x2254] ss:$24 sps:$4 sm:$0xff]  }
 0x137   :  { %7245 = vmatpush1.bf16.msra.mxu1 %v10330_v8  ;;  %v10394_v8 = vld [vmem:[%s15329_s1 + $0x1050] ss:$24 sps:$4 sm:$0xff]  }
 0x138   :  { %7491 = vmatpush1.bf16.msra.mxu0 %v10333_v9  ;;  %7246 = vmatprep.subr.bf16.mxu1 %v10338_v10  ;;  %v10397_v9 = vld [vmem:[%s15329_s1 + $0x2250] ss:$24 sps:$4 sm:$0xff]   ;;  %v10402_v10 = vld [vmem:[%s15329_s1 + $0x1084] ss:$24 sps:$4 sm:$0xff]  }
 0x139   :  { %7492 = vmatprep.subr.bf16.mxu0 %v10341_v11  ;;  %v10405_v11 = vld [vmem:[%s15329_s1 + $0x2284] ss:$24 sps:$4 sm:$0xff]  }
 0x13b   :  { %7247 = vmatpush1.bf16.msra.mxu1 %v10336_v12  ;;  %v10400_v12 = vld [vmem:[%s15329_s1 + $0x1080] ss:$24 sps:$4 sm:$0xff]  }
 0x13c   :  { %7493 = vmatpush1.bf16.msra.mxu0 %v10339_v13  ;;  %7248 = vmatprep.subr.bf16.mxu1 %v10344_v14  ;;  %v10403_v13 = vld [vmem:[%s15329_s1 + $0x2280] ss:$24 sps:$4 sm:$0xff]   ;;  %v10408_v14 = vld [vmem:[%s15329_s1 + $0x10b4] ss:$24 sps:$4 sm:$0xff]  }
 0x13d   :  { %7494 = vmatprep.subr.bf16.mxu0 %v10347_v15  ;;  %v10411_v15 = vld [vmem:[%s15329_s1 + $0x22b4] ss:$24 sps:$4 sm:$0xff]  }
 0x13f   :  { %7249 = vmatpush1.bf16.msra.mxu1 %v10342_v17  ;;  %v10406_v17 = vld [vmem:[%s15329_s1 + $0x10b0] ss:$24 sps:$4 sm:$0xff]  }
 0x140   :  { %7495 = vmatpush1.bf16.msra.mxu0 %v10345_v19  ;;  %7259 = vmatprep.subr.bf16.mxu1 %v10352_v20  ;;  %v10409_v19 = vld [vmem:[%s15329_s1 + $0x22b0] ss:$24 sps:$4 sm:$0xff]   ;;  %v10414_v20 = vld [vmem:[%s15329_s1 + $0x10e4] ss:$24 sps:$4 sm:$0xff]  }
 0x141   :  { %7505 = vmatprep.subr.bf16.mxu0 %v10357_v21  ;;  %v10417_v21 = vld [vmem:[%s15329_s1 + $0x22e4] ss:$24 sps:$4 sm:$0xff]  }
 0x142   :  { %7251 = vmatmul.mubr.bf16.vlgmr.msra.gmra.mrb[0].mxu1 %v12731_v28 }
 0x143   :  { %7497 = vmatmul.mubr.bf16.vlgmr.msra.gmra.mrb[0].mxu0 %v12735_v29  ;;  %7260 = vmatpush1.bf16.msra.mxu1 %v10350_v30  ;;  %v10412_v30 = vld [vmem:[%s15329_s1 + $0x10e0] ss:$24 sps:$4 sm:$0xff]  }
 0x144   :  { %7506 = vmatpush1.bf16.msra.mxu0 %v10355_v31  ;;  %7261 = vmatprep.subr.bf16.mxu1 %v10360_v58  ;;  %v10415_v31 = vld [vmem:[%s15329_s1 + $0x22e0] ss:$24 sps:$4 sm:$0xff]   ;;  %v10420_v58 = vld [vmem:[%s15329_s1 + $0x1114] ss:$24 sps:$4 sm:$0xff]  }
 0x145   :  { %7507 = vmatprep.subr.bf16.mxu0 %v10363_v61  ;;  %7291 = vmatprep.mubr.bf16.mxu1 %v12751_v32  ;;  %v10423_v61 = vld [vmem:[%s15329_s1 + $0x2314] ss:$24 sps:$4 sm:$0xff]  }
 0x146   :  { %7537 = vmatprep.mubr.bf16.mxu0 %v12755_v33 }
 0x147   :  { %7262 = vmatpush1.bf16.msra.mxu1 %v10358_v34  ;;  %v10418_v34 = vld [vmem:[%s15329_s1 + $0x1110] ss:$24 sps:$4 sm:$0xff]  }
 0x148   :  { %7508 = vmatpush1.bf16.msra.mxu0 %v10361_v36  ;;  %7263 = vmatprep.subr.bf16.mxu1 %v10366_v22  ;;  %v10421_v36 = vld [vmem:[%s15329_s1 + $0x2310] ss:$24 sps:$4 sm:$0xff]   ;;  %v10426_v22 = vld [vmem:[%s15329_s1 + $0x1144] ss:$24 sps:$4 sm:$0xff]  }
 0x149   :  { %7509 = vmatprep.subr.bf16.mxu0 %v10369_v24  ;;  %v10429_v24 = vld [vmem:[%s15329_s1 + $0x2344] ss:$24 sps:$4 sm:$0xff]  }
 0x14b   :  { %7264 = vmatpush1.bf16.msra.mxu1 %v10364_v44  ;;  %v10424_v44 = vld [vmem:[%s15329_s1 + $0x1140] ss:$24 sps:$4 sm:$0xff]  }
 0x14c   :  { %7510 = vmatpush1.bf16.msra.mxu0 %v10367_v45  ;;  %7265 = vmatprep.subr.bf16.mxu1 %v10372_v46  ;;  %v10427_v45 = vld [vmem:[%s15329_s1 + $0x2340] ss:$24 sps:$4 sm:$0xff]   ;;  %v10432_v46 = vld [vmem:[%s15329_s1 + $0x1174] ss:$24 sps:$4 sm:$0xff]  }
 0x14d   :  { %7511 = vmatprep.subr.bf16.mxu0 %v10375_v47  ;;  %v10435_v47 = vld [vmem:[%s15329_s1 + $0x2374] ss:$24 sps:$4 sm:$0xff]  }
 0x14f   :  { %7266 = vmatpush1.bf16.msra.mxu1 %v10370_v49  ;;  %v10430_v49 = vld [vmem:[%s15329_s1 + $0x1170] ss:$24 sps:$4 sm:$0xff]  }
 0x150   :  { %7512 = vmatpush1.bf16.msra.mxu0 %v10373_v50  ;;  %7267 = vmatprep.subr.bf16.mxu1 %v10378_v51  ;;  %v10433_v50 = vld [vmem:[%s15329_s1 + $0x2370] ss:$24 sps:$4 sm:$0xff]   ;;  %v10438_v51 = vld [vmem:[%s15329_s1 + $0x11a4] ss:$24 sps:$4 sm:$0xff]  }
 0x151   :  { %7513 = vmatprep.subr.bf16.mxu0 %v10381_v52  ;;  %v10441_v52 = vld [vmem:[%s15329_s1 + $0x23a4] ss:$24 sps:$4 sm:$0xff]  }
 0x153   :  { %7268 = vmatpush1.bf16.msra.mxu1 %v10376_v54  ;;  %v10436_v54 = vld [vmem:[%s15329_s1 + $0x11a0] ss:$24 sps:$4 sm:$0xff]  }
 0x154   :  { %7514 = vmatpush1.bf16.msra.mxu0 %v10379_v55  ;;  %7269 = vmatprep.subr.bf16.mxu1 %v10384_v56  ;;  %v10439_v55 = vld [vmem:[%s15329_s1 + $0x23a0] ss:$24 sps:$4 sm:$0xff]   ;;  %v10444_v56 = vld [vmem:[%s15329_s1 + $0x11d4] ss:$24 sps:$4 sm:$0xff]  }
 0x155   :  { %7515 = vmatprep.subr.bf16.mxu0 %v10387_v57  ;;  %v10447_v57 = vld [vmem:[%s15329_s1 + $0x23d4] ss:$24 sps:$4 sm:$0xff]  }
 0x157   :  { %7270 = vmatpush1.bf16.msra.mxu1 %v10382_v62  ;;  %v10442_v62 = vld [vmem:[%s15329_s1 + $0x11d0] ss:$24 sps:$4 sm:$0xff]  }
 0x158   :  { %7516 = vmatpush1.bf16.msra.mxu0 %v10385_v40  ;;  %7271 = vmatprep.subr.bf16.mxu1 %v10390_v41  ;;  %v10445_v40 = vld [vmem:[%s15329_s1 + $0x23d0] ss:$24 sps:$4 sm:$0xff]   ;;  %v10454_v41 = vld [vmem:[%s15329_s1 + $0xc] ss:$24 sps:$4 sm:$0xff]  }
 0x159   :  { %7517 = vmatprep.subr.bf16.mxu0 %v10393_v63  ;;  %v10457_v63 = vld [vmem:[%s15329_s1 + $0x14] ss:$24 sps:$4 sm:$0xff]  }
 0x15b   :  { %7272 = vmatpush1.bf16.msra.mxu1 %v10388_v2  ;;  %v12943_v2 = vcombine.low %v12722_v25, %v12722_v25  ;;  %v10460_v25 = vld [vmem:[%s15329_s1 + $0x3c] ss:$24 sps:$4 sm:$0xff]  }
 0x15c   :  { %7518 = vmatpush1.bf16.msra.mxu0 %v10391_v3  ;;  %7273 = vmatprep.subr.bf16.mxu1 %v10396_v4  ;;  %v12947_v3 = vcombine.low %v12727_v26, %v12727_v26  ;;  %v10452_v4 = vld [vmem:[%s15329_s1 + $0x8] ss:$24 sps:$4 sm:$0xff]   ;;  %v10463_v26 = vld [vmem:[%s15329_s1 + $0x44] ss:$24 sps:$4 sm:$0xff]  }
 0x15d   :  { %7519 = vmatprep.subr.bf16.mxu0 %v10399_v5  ;;  %v10455_v5 = vld [vmem:[%s15329_s1 + $0x10] ss:$24 sps:$4 sm:$0xff]  }
 0x15f   :  { %7274 = vmatpush1.bf16.msra.mxu1 %v10394_v8  ;;  %v10458_v8 = vld [vmem:[%s15329_s1 + $0x38] ss:$24 sps:$4 sm:$0xff]  }
 0x160   :  { %7520 = vmatpush1.bf16.msra.mxu0 %v10397_v9  ;;  %7275 = vmatprep.subr.bf16.mxu1 %v10402_v10  ;;  %v10461_v9 = vld [vmem:[%s15329_s1 + $0x40] ss:$24 sps:$4 sm:$0xff]   ;;  %v10466_v10 = vld [vmem:[%s15329_s1 + $0x6c] ss:$24 sps:$4 sm:$0xff]  }
 0x161   :  { %7521 = vmatprep.subr.bf16.mxu0 %v10405_v11  ;;  %v10469_v11 = vld [vmem:[%s15329_s1 + $0x74] ss:$24 sps:$4 sm:$0xff]  }
 0x163   :  { %7276 = vmatpush1.bf16.msra.mxu1 %v10400_v12  ;;  %v10464_v12 = vld [vmem:[%s15329_s1 + $0x68] ss:$24 sps:$4 sm:$0xff]  }
 0x164   :  { %7522 = vmatpush1.bf16.msra.mxu0 %v10403_v13  ;;  %7277 = vmatprep.subr.bf16.mxu1 %v10408_v14  ;;  %v10467_v13 = vld [vmem:[%s15329_s1 + $0x70] ss:$24 sps:$4 sm:$0xff]   ;;  %v10472_v14 = vld [vmem:[%s15329_s1 + $0x9c] ss:$24 sps:$4 sm:$0xff]  }
 0x165   :  { %7523 = vmatprep.subr.bf16.mxu0 %v10411_v15  ;;  %v10470_v15 = vld [vmem:[%s15329_s1 + $0x98] ss:$24 sps:$4 sm:$0xff]  }
 0x167   :  { %7278 = vmatpush1.bf16.msra.mxu1 %v10406_v17  ;;  %v10473_v17 = vld [vmem:[%s15329_s1 + $0xa0] ss:$24 sps:$4 sm:$0xff]  }
 0x168   :  { %7524 = vmatpush1.bf16.msra.mxu0 %v10409_v19  ;;  %7279 = vmatprep.subr.bf16.mxu1 %v10414_v20  ;;  %v10478_v19 = vld [vmem:[%s15329_s1 + $0xcc] ss:$24 sps:$4 sm:$0xff]  }
 0x169   :  { %7525 = vmatprep.subr.bf16.mxu0 %v10417_v21  ;;  %v10481_v20 = vld [vmem:[%s15329_s1 + $0xd4] ss:$24 sps:$4 sm:$0xff]   ;;  %v10476_v21 = vld [vmem:[%s15329_s1 + $0xc8] ss:$24 sps:$4 sm:$0xff]  }
 0x16b   :  { %7280 = vmatpush1.bf16.msra.mxu1 %v10412_v30  ;;  %v10479_v30 = vld [vmem:[%s15329_s1 + $0xd0] ss:$24 sps:$4 sm:$0xff]  }
 0x16c   :  { %7526 = vmatpush1.bf16.msra.mxu0 %v10415_v31  ;;  %7281 = vmatprep.subr.bf16.mxu1 %v10420_v58  ;;  %v10484_v31 = vld [vmem:[%s15329_s1 + $0xfc] ss:$24 sps:$4 sm:$0xff]  }
 0x16d   :  { %7527 = vmatprep.subr.bf16.mxu0 %v10423_v61  ;;  %v10487_v58 = vld [vmem:[%s15329_s1 + $0x104] ss:$24 sps:$4 sm:$0xff]   ;;  %v10482_v61 = vld [vmem:[%s15329_s1 + $0xf8] ss:$24 sps:$4 sm:$0xff]  }
 0x16f   :  { %7282 = vmatpush1.bf16.msra.mxu1 %v10418_v34  ;;  %v10485_v34 = vld [vmem:[%s15329_s1 + $0x100] ss:$24 sps:$4 sm:$0xff]  }
 0x170   :  { %7528 = vmatpush1.bf16.msra.mxu0 %v10421_v36  ;;  %7283 = vmatprep.subr.bf16.mxu1 %v10426_v22  ;;  %v10490_v36 = vld [vmem:[%s15329_s1 + $0x12c] ss:$24 sps:$4 sm:$0xff]  }
 0x171   :  { %7529 = vmatprep.subr.bf16.mxu0 %v10429_v24  ;;  %v10493_v22 = vld [vmem:[%s15329_s1 + $0x134] ss:$24 sps:$4 sm:$0xff]   ;;  %v10488_v24 = vld [vmem:[%s15329_s1 + $0x128] ss:$24 sps:$4 sm:$0xff]  }
 0x173   :  { %7284 = vmatpush1.bf16.msra.mxu1 %v10424_v44  ;;  %v10491_v44 = vld [vmem:[%s15329_s1 + $0x130] ss:$24 sps:$4 sm:$0xff]  }
 0x174   :  { %7530 = vmatpush1.bf16.msra.mxu0 %v10427_v45  ;;  %7285 = vmatprep.subr.bf16.mxu1 %v10432_v46  ;;  %v10496_v45 = vld [vmem:[%s15329_s1 + $0x15c] ss:$24 sps:$4 sm:$0xff]  }
 0x175   :  { %7531 = vmatprep.subr.bf16.mxu0 %v10435_v47  ;;  %v10499_v46 = vld [vmem:[%s15329_s1 + $0x164] ss:$24 sps:$4 sm:$0xff]   ;;  %v10494_v47 = vld [vmem:[%s15329_s1 + $0x158] ss:$24 sps:$4 sm:$0xff]  }
 0x177   :  { %7286 = vmatpush1.bf16.msra.mxu1 %v10430_v49  ;;  %v10497_v49 = vld [vmem:[%s15329_s1 + $0x160] ss:$24 sps:$4 sm:$0xff]  }
 0x178   :  { %7532 = vmatpush1.bf16.msra.mxu0 %v10433_v50  ;;  %7287 = vmatprep.subr.bf16.mxu1 %v10438_v51  ;;  %v10502_v50 = vld [vmem:[%s15329_s1 + $0x18c] ss:$24 sps:$4 sm:$0xff]  }
 0x179   :  { %7533 = vmatprep.subr.bf16.mxu0 %v10441_v52  ;;  %v10505_v51 = vld [vmem:[%s15329_s1 + $0x194] ss:$24 sps:$4 sm:$0xff]   ;;  %v10500_v52 = vld [vmem:[%s15329_s1 + $0x188] ss:$24 sps:$4 sm:$0xff]  }
 0x17b   :  { %7288 = vmatpush1.bf16.msra.mxu1 %v10436_v54  ;;  %v10503_v54 = vld [vmem:[%s15329_s1 + $0x190] ss:$24 sps:$4 sm:$0xff]  }
 0x17c   :  { %7534 = vmatpush1.bf16.msra.mxu0 %v10439_v55  ;;  %7289 = vmatprep.subr.bf16.mxu1 %v10444_v56  ;;  %v10508_v55 = vld [vmem:[%s15329_s1 + $0x1bc] ss:$24 sps:$4 sm:$0xff]  }
 0x17d   :  { %7535 = vmatprep.subr.bf16.mxu0 %v10447_v57  ;;  %v10511_v56 = vld [vmem:[%s15329_s1 + $0x1c4] ss:$24 sps:$4 sm:$0xff]   ;;  %v10506_v57 = vld [vmem:[%s15329_s1 + $0x1b8] ss:$24 sps:$4 sm:$0xff]  }
 0x17f   :  { %7290 = vmatpush1.bf16.msra.mxu1 %v10442_v62  ;;  %v10509_v62 = vld [vmem:[%s15329_s1 + $0x1c0] ss:$24 sps:$4 sm:$0xff]  }
 0x180   :  { %7536 = vmatpush1.bf16.msra.mxu0 %v10445_v40  ;;  %7546 = vmatprep.subr.bf16.mxu1 %v10454_v41  ;;  %v10514_v40 = vld [vmem:[%s15329_s1 + $0x1ec] ss:$24 sps:$4 sm:$0xff]  }
 0x181   :  { %8038 = vmatprep.subr.bf16.mxu0 %v10457_v63  ;;  %v10517_v41 = vld [vmem:[%s15329_s1 + $0x1f4] ss:$24 sps:$4 sm:$0xff]   ;;  %v10512_v63 = vld [vmem:[%s15329_s1 + $0x1e8] ss:$24 sps:$4 sm:$0xff]  }
 0x182   :  { %7292 = vmatmul.mubr.bf16.vlgmr.msra.gmra.mrb[0].mxu1 %v12943_v2 }
 0x183   :  { %7538 = vmatmul.mubr.bf16.vlgmr.msra.gmra.mrb[0].mxu0 %v12947_v3  ;;  %7547 = vmatpush1.bf16.msra.mxu1 %v10452_v4  ;;  %v10515_v4 = vld [vmem:[%s15329_s1 + $0x1f0] ss:$24 sps:$4 sm:$0xff]  }
 0x184   :  { %8039 = vmatpush1.bf16.msra.mxu0 %v10455_v5  ;;  %7548 = vmatprep.subr.bf16.mxu1 %v10460_v25  ;;  %v10520_v5 = vld [vmem:[%s15329_s1 + $0x21c] ss:$24 sps:$4 sm:$0xff]  }
 0x185   :  { %8040 = vmatprep.subr.bf16.mxu0 %v10463_v26  ;;  %7578 = vmatprep.mubr.bf16.mxu1 %v11769_v48  ;;  %v10523_v25 = vld [vmem:[%s15329_s1 + $0x224] ss:$24 sps:$4 sm:$0xff]   ;;  %v10518_v26 = vld [vmem:[%s15329_s1 + $0x218] ss:$24 sps:$4 sm:$0xff]  }
 0x186   :  { %8070 = vmatprep.mubr.bf16.mxu0 %v11769_v48  ;;  %v10475_v48 = vld [vmem:[%s15329_s1 + $0xa4] ss:$24 sps:$4 sm:$0xff]  }
 0x187   :  { %7549 = vmatpush1.bf16.msra.mxu1 %v10458_v8  ;;  %v10521_v8 = vld [vmem:[%s15329_s1 + $0x220] ss:$24 sps:$4 sm:$0xff]  }
 0x188   :  { %8041 = vmatpush1.bf16.msra.mxu0 %v10461_v9  ;;  %7550 = vmatprep.subr.bf16.mxu1 %v10466_v10  ;;  %v10526_v9 = vld [vmem:[%s15329_s1 + $0x24c] ss:$24 sps:$4 sm:$0xff]  }
 0x189   :  { %8042 = vmatprep.subr.bf16.mxu0 %v10469_v11  ;;  %v10529_v10 = vld [vmem:[%s15329_s1 + $0x254] ss:$24 sps:$4 sm:$0xff]   ;;  %v10524_v11 = vld [vmem:[%s15329_s1 + $0x248] ss:$24 sps:$4 sm:$0xff]  }
 0x18b   :  { %7551 = vmatpush1.bf16.msra.mxu1 %v10464_v12  ;;  %v10527_v12 = vld [vmem:[%s15329_s1 + $0x250] ss:$24 sps:$4 sm:$0xff]  }
 0x18c   :  { %8043 = vmatpush1.bf16.msra.mxu0 %v10467_v13  ;;  %7552 = vmatprep.subr.bf16.mxu1 %v10472_v14  ;;  %v10532_v13 = vld [vmem:[%s15329_s1 + $0x27c] ss:$24 sps:$4 sm:$0xff]  }
 0x18d   :  { %8044 = vmatprep.subr.bf16.mxu0 %v10475_v48  ;;  %v10535_v14 = vld [vmem:[%s15329_s1 + $0x284] ss:$24 sps:$4 sm:$0xff]   ;;  %v10530_v48 = vld [vmem:[%s15329_s1 + $0x278] ss:$24 sps:$4 sm:$0xff]  }
 0x18f   :  { %7553 = vmatpush1.bf16.msra.mxu1 %v10470_v15  ;;  %v10533_v15 = vld [vmem:[%s15329_s1 + $0x280] ss:$24 sps:$4 sm:$0xff]  }
 0x190   :  { %8045 = vmatpush1.bf16.msra.mxu0 %v10473_v17  ;;  %7554 = vmatprep.subr.bf16.mxu1 %v10478_v19  ;;  %v10538_v17 = vld [vmem:[%s15329_s1 + $0x2ac] ss:$24 sps:$4 sm:$0xff]  }
 0x191   :  { %8046 = vmatprep.subr.bf16.mxu0 %v10481_v20  ;;  %v10541_v19 = vld [vmem:[%s15329_s1 + $0x2b4] ss:$24 sps:$4 sm:$0xff]   ;;  %v10536_v20 = vld [vmem:[%s15329_s1 + $0x2a8] ss:$24 sps:$4 sm:$0xff]  }
 0x193   :  { %7555 = vmatpush1.bf16.msra.mxu1 %v10476_v21  ;;  %v10539_v21 = vld [vmem:[%s15329_s1 + $0x2b0] ss:$24 sps:$4 sm:$0xff]  }
 0x194   :  { %8047 = vmatpush1.bf16.msra.mxu0 %v10479_v30  ;;  %7556 = vmatprep.subr.bf16.mxu1 %v10484_v31  ;;  %v10544_v30 = vld [vmem:[%s15329_s1 + $0x2dc] ss:$24 sps:$4 sm:$0xff]  }
 0x195   :  { %8048 = vmatprep.subr.bf16.mxu0 %v10487_v58  ;;  %v10547_v31 = vld [vmem:[%s15329_s1 + $0x2e4] ss:$24 sps:$4 sm:$0xff]   ;;  %v10542_v58 = vld [vmem:[%s15329_s1 + $0x2d8] ss:$24 sps:$4 sm:$0xff]  }
 0x197   :  { %7557 = vmatpush1.bf16.msra.mxu1 %v10482_v61  ;;  %v10545_v61 = vld [vmem:[%s15329_s1 + $0x2e0] ss:$24 sps:$4 sm:$0xff]  }
 0x198   :  { %8049 = vmatpush1.bf16.msra.mxu0 %v10485_v34  ;;  %7558 = vmatprep.subr.bf16.mxu1 %v10490_v36  ;;  %v10550_v34 = vld [vmem:[%s15329_s1 + $0x30c] ss:$24 sps:$4 sm:$0xff]  }
 0x199   :  { %8050 = vmatprep.subr.bf16.mxu0 %v10493_v22  ;;  %v10553_v36 = vld [vmem:[%s15329_s1 + $0x314] ss:$24 sps:$4 sm:$0xff]   ;;  %v10548_v22 = vld [vmem:[%s15329_s1 + $0x308] ss:$24 sps:$4 sm:$0xff]  }
 0x19b   :  { %7559 = vmatpush1.bf16.msra.mxu1 %v10488_v24  ;;  %v10551_v24 = vld [vmem:[%s15329_s1 + $0x310] ss:$24 sps:$4 sm:$0xff]  }
 0x19c   :  { %8051 = vmatpush1.bf16.msra.mxu0 %v10491_v44  ;;  %7560 = vmatprep.subr.bf16.mxu1 %v10496_v45  ;;  %v10556_v44 = vld [vmem:[%s15329_s1 + $0x33c] ss:$24 sps:$4 sm:$0xff]  }
 0x19d   :  { %8052 = vmatprep.subr.bf16.mxu0 %v10499_v46  ;;  %v10559_v45 = vld [vmem:[%s15329_s1 + $0x344] ss:$24 sps:$4 sm:$0xff]   ;;  %v10554_v46 = vld [vmem:[%s15329_s1 + $0x338] ss:$24 sps:$4 sm:$0xff]  }
 0x19f   :  { %7561 = vmatpush1.bf16.msra.mxu1 %v10494_v47  ;;  %v10557_v47 = vld [vmem:[%s15329_s1 + $0x340] ss:$24 sps:$4 sm:$0xff]  }
 0x1a0   :  { %8053 = vmatpush1.bf16.msra.mxu0 %v10497_v49  ;;  %7562 = vmatprep.subr.bf16.mxu1 %v10502_v50  ;;  %v10562_v49 = vld [vmem:[%s15329_s1 + $0x36c] ss:$24 sps:$4 sm:$0xff]   ;;  %v10560_v50 = vld [vmem:[%s15329_s1 + $0x368] ss:$24 sps:$4 sm:$0xff]  }
 0x1a1   :  { %8054 = vmatprep.subr.bf16.mxu0 %v10505_v51  ;;  %v10563_v51 = vld [vmem:[%s15329_s1 + $0x370] ss:$24 sps:$4 sm:$0xff]  }
 0x1a3   :  { %7563 = vmatpush1.bf16.msra.mxu1 %v10500_v52  ;;  %v10568_v52 = vld [vmem:[%s15329_s1 + $0x39c] ss:$24 sps:$4 sm:$0xff]  }
 0x1a4   :  { %8055 = vmatpush1.bf16.msra.mxu0 %v10503_v54  ;;  %7564 = vmatprep.subr.bf16.mxu1 %v10508_v55  ;;  %v10566_v54 = vld [vmem:[%s15329_s1 + $0x398] ss:$24 sps:$4 sm:$0xff]  }
 0x1a5   :  { %8056 = vmatprep.subr.bf16.mxu0 %v10511_v56  ;;  %v10569_v55 = vld [vmem:[%s15329_s1 + $0x3a0] ss:$24 sps:$4 sm:$0xff]   ;;  %v10574_v56 = vld [vmem:[%s15329_s1 + $0x3cc] ss:$24 sps:$4 sm:$0xff]  }
 0x1a7   :  { %7565 = vmatpush1.bf16.msra.mxu1 %v10506_v57  ;;  %v10577_v57 = vld [vmem:[%s15329_s1 + $0x3d4] ss:$24 sps:$4 sm:$0xff]  }
 0x1a8   :  { %8057 = vmatpush1.bf16.msra.mxu0 %v10509_v62  ;;  %7566 = vmatprep.subr.bf16.mxu1 %v10514_v40  ;;  %v10572_v62 = vld [vmem:[%s15329_s1 + $0x3c8] ss:$24 sps:$4 sm:$0xff]  }
 0x1a9   :  { %8058 = vmatprep.subr.bf16.mxu0 %v10517_v41  ;;  %v10575_v40 = vld [vmem:[%s15329_s1 + $0x3d0] ss:$24 sps:$4 sm:$0xff]   ;;  %v10580_v41 = vld [vmem:[%s15329_s1 + $0x3fc] ss:$24 sps:$4 sm:$0xff]  }
 0x1ab   :  { %7567 = vmatpush1.bf16.msra.mxu1 %v10512_v63  ;;  %v10583_v63 = vld [vmem:[%s15329_s1 + $0x404] ss:$24 sps:$4 sm:$0xff]  }
 0x1ac   :  { %8059 = vmatpush1.bf16.msra.mxu0 %v10515_v4  ;;  %7568 = vmatprep.subr.bf16.mxu1 %v10520_v5  ;;  %v10578_v4 = vld [vmem:[%s15329_s1 + $0x3f8] ss:$24 sps:$4 sm:$0xff]  }
 0x1ad   :  { %8060 = vmatprep.subr.bf16.mxu0 %v10523_v25  ;;  %v10581_v5 = vld [vmem:[%s15329_s1 + $0x400] ss:$24 sps:$4 sm:$0xff]   ;;  %v10586_v25 = vld [vmem:[%s15329_s1 + $0x42c] ss:$24 sps:$4 sm:$0xff]  }
 0x1af   :  { %7569 = vmatpush1.bf16.msra.mxu1 %v10518_v26  ;;  %v10589_v26 = vld [vmem:[%s15329_s1 + $0x434] ss:$24 sps:$4 sm:$0xff]  }
 0x1b0   :  { %8061 = vmatpush1.bf16.msra.mxu0 %v10521_v8  ;;  %7570 = vmatprep.subr.bf16.mxu1 %v10526_v9  ;;  %v10584_v8 = vld [vmem:[%s15329_s1 + $0x428] ss:$24 sps:$4 sm:$0xff]  }
 0x1b1   :  { %8062 = vmatprep.subr.bf16.mxu0 %v10529_v10  ;;  %v10587_v9 = vld [vmem:[%s15329_s1 + $0x430] ss:$24 sps:$4 sm:$0xff]   ;;  %v10592_v10 = vld [vmem:[%s15329_s1 + $0x45c] ss:$24 sps:$4 sm:$0xff]  }
 0x1b3   :  { %7571 = vmatpush1.bf16.msra.mxu1 %v10524_v11  ;;  %v10595_v11 = vld [vmem:[%s15329_s1 + $0x464] ss:$24 sps:$4 sm:$0xff]  }
 0x1b4   :  { %8063 = vmatpush1.bf16.msra.mxu0 %v10527_v12  ;;  %7572 = vmatprep.subr.bf16.mxu1 %v10532_v13  ;;  %v10590_v12 = vld [vmem:[%s15329_s1 + $0x458] ss:$24 sps:$4 sm:$0xff]  }
 0x1b5   :  { %8064 = vmatprep.subr.bf16.mxu0 %v10535_v14  ;;  %v10593_v13 = vld [vmem:[%s15329_s1 + $0x460] ss:$24 sps:$4 sm:$0xff]   ;;  %v10598_v14 = vld [vmem:[%s15329_s1 + $0x48c] ss:$24 sps:$4 sm:$0xff]  }
 0x1b7   :  { %7573 = vmatpush1.bf16.msra.mxu1 %v10530_v48  ;;  %v10601_v48 = vld [vmem:[%s15329_s1 + $0x494] ss:$24 sps:$4 sm:$0xff]  }
 0x1b8   :  { %8065 = vmatpush1.bf16.msra.mxu0 %v10533_v15  ;;  %7574 = vmatprep.subr.bf16.mxu1 %v10538_v17  ;;  %v10596_v15 = vld [vmem:[%s15329_s1 + $0x488] ss:$24 sps:$4 sm:$0xff]  }
 0x1b9   :  { %8066 = vmatprep.subr.bf16.mxu0 %v10541_v19  ;;  %v10599_v17 = vld [vmem:[%s15329_s1 + $0x490] ss:$24 sps:$4 sm:$0xff]   ;;  %v10604_v19 = vld [vmem:[%s15329_s1 + $0x4bc] ss:$24 sps:$4 sm:$0xff]  }
 0x1bb   :  { %7575 = vmatpush1.bf16.msra.mxu1 %v10536_v20  ;;  %v10607_v20 = vld [vmem:[%s15329_s1 + $0x4c4] ss:$24 sps:$4 sm:$0xff]  }
 0x1bc   :  { %8067 = vmatpush1.bf16.msra.mxu0 %v10539_v21  ;;  %7576 = vmatprep.subr.bf16.mxu1 %v10544_v30  ;;  %v10602_v21 = vld [vmem:[%s15329_s1 + $0x4b8] ss:$24 sps:$4 sm:$0xff]  }
 0x1bd   :  { %8068 = vmatprep.subr.bf16.mxu0 %v10547_v31  ;;  %v10605_v30 = vld [vmem:[%s15329_s1 + $0x4c0] ss:$24 sps:$4 sm:$0xff]   ;;  %v10610_v31 = vld [vmem:[%s15329_s1 + $0x4ec] ss:$24 sps:$4 sm:$0xff]  }
 0x1bf   :  { %7577 = vmatpush1.bf16.msra.mxu1 %v10542_v58  ;;  %v10613_v58 = vld [vmem:[%s15329_s1 + $0x4f4] ss:$24 sps:$4 sm:$0xff]  }
 0x1c0   :  { %8069 = vmatpush1.bf16.msra.mxu0 %v10545_v61  ;;  %7587 = vmatprep.subr.bf16.mxu1 %v10550_v34  ;;  %v10608_v61 = vld [vmem:[%s15329_s1 + $0x4e8] ss:$24 sps:$4 sm:$0xff]  }
 0x1c1   :  { %8079 = vmatprep.subr.bf16.mxu0 %v10553_v36  ;;  %v10611_v34 = vld [vmem:[%s15329_s1 + $0x4f0] ss:$24 sps:$4 sm:$0xff]   ;;  %v10616_v36 = vld [vmem:[%s15329_s1 + $0x51c] ss:$24 sps:$4 sm:$0xff]  }
 0x1c2   :  { %7579 = vmatmul.mubr.bf16.vlgmr.msra.gmra.mrb[4].mxu1 %v11835_v6 }
 0x1c3   :  { %8071 = vmatmul.mubr.bf16.vlgmr.msra.gmra.mrb[4].mxu0 %v11835_v6  ;;  %7588 = vmatpush1.bf16.msra.mxu1 %v10548_v22  ;;  %v10565_v6 = vld [vmem:[%s15329_s1 + $0x374] ss:$24 sps:$4 sm:$0xff]   ;;  %v10619_v22 = vld [vmem:[%s15329_s1 + $0x524] ss:$24 sps:$4 sm:$0xff]  }
 0x1c4   :  { %8080 = vmatpush1.bf16.msra.mxu0 %v10551_v24  ;;  %7589 = vmatprep.subr.bf16.mxu1 %v10556_v44  ;;  %v10614_v24 = vld [vmem:[%s15329_s1 + $0x518] ss:$24 sps:$4 sm:$0xff]  }
 0x1c5   :  { %8081 = vmatprep.subr.bf16.mxu0 %v10559_v45  ;;  %7619 = vmatprep.mubr.bf16.mxu1 %v11926_v35  ;;  %v10617_v44 = vld [vmem:[%s15329_s1 + $0x520] ss:$24 sps:$4 sm:$0xff]   ;;  %v10622_v45 = vld [vmem:[%s15329_s1 + $0x54c] ss:$24 sps:$4 sm:$0xff]  }
 0x1c6   :  { %8111 = vmatprep.mubr.bf16.mxu0 %v11926_v35  ;;  %v10571_v35 = vld [vmem:[%s15329_s1 + $0x3a4] ss:$24 sps:$4 sm:$0xff]  }
 0x1c7   :  { %7590 = vmatpush1.bf16.msra.mxu1 %v10554_v46  ;;  %v10625_v46 = vld [vmem:[%s15329_s1 + $0x554] ss:$24 sps:$4 sm:$0xff]  }
 0x1c8   :  { %8082 = vmatpush1.bf16.msra.mxu0 %v10557_v47  ;;  %7591 = vmatprep.subr.bf16.mxu1 %v10562_v49  ;;  %v10620_v47 = vld [vmem:[%s15329_s1 + $0x548] ss:$24 sps:$4 sm:$0xff]  }
 0x1c9   :  { %8083 = vmatprep.subr.bf16.mxu0 %v10565_v6  ;;  %v10623_v49 = vld [vmem:[%s15329_s1 + $0x550] ss:$24 sps:$4 sm:$0xff]   ;;  %v10628_v6 = vld [vmem:[%s15329_s1 + $0x57c] ss:$24 sps:$4 sm:$0xff]  }
 0x1cb   :  { %7592 = vmatpush1.bf16.msra.mxu1 %v10560_v50  ;;  %v10631_v50 = vld [vmem:[%s15329_s1 + $0x584] ss:$24 sps:$4 sm:$0xff]  }
 0x1cc   :  { %8084 = vmatpush1.bf16.msra.mxu0 %v10563_v51  ;;  %7593 = vmatprep.subr.bf16.mxu1 %v10568_v52  ;;  %v10626_v51 = vld [vmem:[%s15329_s1 + $0x578] ss:$24 sps:$4 sm:$0xff]  }
 0x1cd   :  { %8085 = vmatprep.subr.bf16.mxu0 %v10571_v35  ;;  %v10629_v52 = vld [vmem:[%s15329_s1 + $0x580] ss:$24 sps:$4 sm:$0xff]   ;;  %v10634_v35 = vld [vmem:[%s15329_s1 + $0x5ac] ss:$24 sps:$4 sm:$0xff]  }
 0x1cf   :  { %7594 = vmatpush1.bf16.msra.mxu1 %v10566_v54  ;;  %v10637_v54 = vld [vmem:[%s15329_s1 + $0x5b4] ss:$24 sps:$4 sm:$0xff]  }
 0x1d0   :  { %8086 = vmatpush1.bf16.msra.mxu0 %v10569_v55  ;;  %7595 = vmatprep.subr.bf16.mxu1 %v10574_v56  ;;  %v10632_v55 = vld [vmem:[%s15329_s1 + $0x5a8] ss:$24 sps:$4 sm:$0xff]  }
 0x1d1   :  { %8087 = vmatprep.subr.bf16.mxu0 %v10577_v57  ;;  %v10635_v56 = vld [vmem:[%s15329_s1 + $0x5b0] ss:$24 sps:$4 sm:$0xff]   ;;  %v10640_v57 = vld [vmem:[%s15329_s1 + $0x5dc] ss:$24 sps:$4 sm:$0xff]  }
 0x1d3   :  { %7596 = vmatpush1.bf16.msra.mxu1 %v10572_v62  ;;  %v10643_v62 = vld [vmem:[%s15329_s1 + $0x5e4] ss:$24 sps:$4 sm:$0xff]  }
 0x1d4   :  { %8088 = vmatpush1.bf16.msra.mxu0 %v10575_v40  ;;  %7597 = vmatprep.subr.bf16.mxu1 %v10580_v41  ;;  %v10638_v40 = vld [vmem:[%s15329_s1 + $0x5d8] ss:$24 sps:$4 sm:$0xff]  }
 0x1d5   :  { %8089 = vmatprep.subr.bf16.mxu0 %v10583_v63  ;;  %v10641_v41 = vld [vmem:[%s15329_s1 + $0x5e0] ss:$24 sps:$4 sm:$0xff]   ;;  %v10646_v63 = vld [vmem:[%s15329_s1 + $0x60c] ss:$24 sps:$4 sm:$0xff]  }
 0x1d7   :  { %7598 = vmatpush1.bf16.msra.mxu1 %v10578_v4  ;;  %v10649_v4 = vld [vmem:[%s15329_s1 + $0x614] ss:$24 sps:$4 sm:$0xff]  }
 0x1d8   :  { %8090 = vmatpush1.bf16.msra.mxu0 %v10581_v5  ;;  %7599 = vmatprep.subr.bf16.mxu1 %v10586_v25  ;;  %v10644_v5 = vld [vmem:[%s15329_s1 + $0x608] ss:$24 sps:$4 sm:$0xff]  }
 0x1d9   :  { %8091 = vmatprep.subr.bf16.mxu0 %v10589_v26  ;;  %v10647_v25 = vld [vmem:[%s15329_s1 + $0x610] ss:$24 sps:$4 sm:$0xff]   ;;  %v10652_v26 = vld [vmem:[%s15329_s1 + $0x63c] ss:$24 sps:$4 sm:$0xff]  }
 0x1db   :  { %7600 = vmatpush1.bf16.msra.mxu1 %v10584_v8  ;;  %v10655_v8 = vld [vmem:[%s15329_s1 + $0x644] ss:$24 sps:$4 sm:$0xff]  }
 0x1dc   :  { %8092 = vmatpush1.bf16.msra.mxu0 %v10587_v9  ;;  %7601 = vmatprep.subr.bf16.mxu1 %v10592_v10  ;;  %v10650_v9 = vld [vmem:[%s15329_s1 + $0x638] ss:$24 sps:$4 sm:$0xff]  }
 0x1dd   :  { %8093 = vmatprep.subr.bf16.mxu0 %v10595_v11  ;;  %v10653_v10 = vld [vmem:[%s15329_s1 + $0x640] ss:$24 sps:$4 sm:$0xff]   ;;  %v10658_v11 = vld [vmem:[%s15329_s1 + $0x66c] ss:$24 sps:$4 sm:$0xff]  }
 0x1df   :  { %7602 = vmatpush1.bf16.msra.mxu1 %v10590_v12  ;;  %v10656_v12 = vld [vmem:[%s15329_s1 + $0x668] ss:$24 sps:$4 sm:$0xff]  }
 0x1e0   :  { %8094 = vmatpush1.bf16.msra.mxu0 %v10593_v13  ;;  %7603 = vmatprep.subr.bf16.mxu1 %v10598_v14  ;;  %v10659_v13 = vld [vmem:[%s15329_s1 + $0x670] ss:$24 sps:$4 sm:$0xff]   ;;  %v10664_v14 = vld [vmem:[%s15329_s1 + $0x69c] ss:$24 sps:$4 sm:$0xff]  }
 0x1e1   :  { %8095 = vmatprep.subr.bf16.mxu0 %v10601_v48  ;;  %v10662_v48 = vld [vmem:[%s15329_s1 + $0x698] ss:$24 sps:$4 sm:$0xff]  }
 0x1e3   :  { %7604 = vmatpush1.bf16.msra.mxu1 %v10596_v15  ;;  %v10665_v15 = vld [vmem:[%s15329_s1 + $0x6a0] ss:$24 sps:$4 sm:$0xff]  }
 0x1e4   :  { %8096 = vmatpush1.bf16.msra.mxu0 %v10599_v17  ;;  %7605 = vmatprep.subr.bf16.mxu1 %v10604_v19  ;;  %v10670_v17 = vld [vmem:[%s15329_s1 + $0x6cc] ss:$24 sps:$4 sm:$0xff]  }
 0x1e5   :  { %8097 = vmatprep.subr.bf16.mxu0 %v10607_v20  ;;  %v10673_v19 = vld [vmem:[%s15329_s1 + $0x6d4] ss:$24 sps:$4 sm:$0xff]   ;;  %v10668_v20 = vld [vmem:[%s15329_s1 + $0x6c8] ss:$24 sps:$4 sm:$0xff]  }
 0x1e7   :  { %7606 = vmatpush1.bf16.msra.mxu1 %v10602_v21  ;;  %v10671_v21 = vld [vmem:[%s15329_s1 + $0x6d0] ss:$24 sps:$4 sm:$0xff]  }
 0x1e8   :  { %8098 = vmatpush1.bf16.msra.mxu0 %v10605_v30  ;;  %7607 = vmatprep.subr.bf16.mxu1 %v10610_v31  ;;  %v10676_v30 = vld [vmem:[%s15329_s1 + $0x6fc] ss:$24 sps:$4 sm:$0xff]  }
 0x1e9   :  { %8099 = vmatprep.subr.bf16.mxu0 %v10613_v58  ;;  %v10679_v31 = vld [vmem:[%s15329_s1 + $0x704] ss:$24 sps:$4 sm:$0xff]   ;;  %v10674_v58 = vld [vmem:[%s15329_s1 + $0x6f8] ss:$24 sps:$4 sm:$0xff]  }
 0x1eb   :  { %7608 = vmatpush1.bf16.msra.mxu1 %v10608_v61  ;;  %v10677_v61 = vld [vmem:[%s15329_s1 + $0x700] ss:$24 sps:$4 sm:$0xff]  }
 0x1ec   :  { %8100 = vmatpush1.bf16.msra.mxu0 %v10611_v34  ;;  %7609 = vmatprep.subr.bf16.mxu1 %v10616_v36  ;;  %v10682_v34 = vld [vmem:[%s15329_s1 + $0x72c] ss:$24 sps:$4 sm:$0xff]  }
 0x1ed   :  { %8101 = vmatprep.subr.bf16.mxu0 %v10619_v22  ;;  %v10685_v36 = vld [vmem:[%s15329_s1 + $0x734] ss:$24 sps:$4 sm:$0xff]   ;;  %v10680_v22 = vld [vmem:[%s15329_s1 + $0x728] ss:$24 sps:$4 sm:$0xff]  }
 0x1ef   :  { %7610 = vmatpush1.bf16.msra.mxu1 %v10614_v24  ;;  %v10683_v24 = vld [vmem:[%s15329_s1 + $0x730] ss:$24 sps:$4 sm:$0xff]  }
 0x1f0   :  { %8102 = vmatpush1.bf16.msra.mxu0 %v10617_v44  ;;  %7611 = vmatprep.subr.bf16.mxu1 %v10622_v45  ;;  %v10688_v44 = vld [vmem:[%s15329_s1 + $0x75c] ss:$24 sps:$4 sm:$0xff]  }
 0x1f1   :  { %8103 = vmatprep.subr.bf16.mxu0 %v10625_v46  ;;  %v10691_v45 = vld [vmem:[%s15329_s1 + $0x764] ss:$24 sps:$4 sm:$0xff]   ;;  %v10686_v46 = vld [vmem:[%s15329_s1 + $0x758] ss:$24 sps:$4 sm:$0xff]  }
 0x1f3   :  { %7612 = vmatpush1.bf16.msra.mxu1 %v10620_v47  ;;  %v10689_v47 = vld [vmem:[%s15329_s1 + $0x760] ss:$24 sps:$4 sm:$0xff]  }
 0x1f4   :  { %8104 = vmatpush1.bf16.msra.mxu0 %v10623_v49  ;;  %7613 = vmatprep.subr.bf16.mxu1 %v10628_v6  ;;  %v10694_v49 = vld [vmem:[%s15329_s1 + $0x78c] ss:$24 sps:$4 sm:$0xff]  }
 0x1f5   :  { %8105 = vmatprep.subr.bf16.mxu0 %v10631_v50  ;;  %v10697_v6 = vld [vmem:[%s15329_s1 + $0x794] ss:$24 sps:$4 sm:$0xff]   ;;  %v10692_v50 = vld [vmem:[%s15329_s1 + $0x788] ss:$24 sps:$4 sm:$0xff]  }
 0x1f7   :  { %7614 = vmatpush1.bf16.msra.mxu1 %v10626_v51  ;;  %v10695_v51 = vld [vmem:[%s15329_s1 + $0x790] ss:$24 sps:$4 sm:$0xff]  }
 0x1f8   :  { %8106 = vmatpush1.bf16.msra.mxu0 %v10629_v52  ;;  %7615 = vmatprep.subr.bf16.mxu1 %v10634_v35  ;;  %v10700_v52 = vld [vmem:[%s15329_s1 + $0x7bc] ss:$24 sps:$4 sm:$0xff]  }
 0x1f9   :  { %8107 = vmatprep.subr.bf16.mxu0 %v10637_v54  ;;  %v10703_v35 = vld [vmem:[%s15329_s1 + $0x7c4] ss:$24 sps:$4 sm:$0xff]   ;;  %v10698_v54 = vld [vmem:[%s15329_s1 + $0x7b8] ss:$24 sps:$4 sm:$0xff]  }
 0x1fb   :  { %7616 = vmatpush1.bf16.msra.mxu1 %v10632_v55  ;;  %v10701_v55 = vld [vmem:[%s15329_s1 + $0x7c0] ss:$24 sps:$4 sm:$0xff]  }
 0x1fc   :  { %8108 = vmatpush1.bf16.msra.mxu0 %v10635_v56  ;;  %7617 = vmatprep.subr.bf16.mxu1 %v10640_v57  ;;  %v10706_v56 = vld [vmem:[%s15329_s1 + $0x7ec] ss:$24 sps:$4 sm:$0xff]  }
 0x1fd   :  { %8109 = vmatprep.subr.bf16.mxu0 %v10643_v62  ;;  %v10709_v57 = vld [vmem:[%s15329_s1 + $0x7f4] ss:$24 sps:$4 sm:$0xff]   ;;  %v10704_v62 = vld [vmem:[%s15329_s1 + $0x7e8] ss:$24 sps:$4 sm:$0xff]  }
 0x1ff   :  { %7618 = vmatpush1.bf16.msra.mxu1 %v10638_v40  ;;  %v10707_v40 = vld [vmem:[%s15329_s1 + $0x7f0] ss:$24 sps:$4 sm:$0xff]  }
 0x200   :  { %8110 = vmatpush1.bf16.msra.mxu0 %v10641_v41  ;;  %7628 = vmatprep.subr.bf16.mxu1 %v10646_v63  ;;  %v10712_v41 = vld [vmem:[%s15329_s1 + $0x81c] ss:$24 sps:$4 sm:$0xff]  }
 0x201   :  { %8120 = vmatprep.subr.bf16.mxu0 %v10649_v4  ;;  %v10715_v63 = vld [vmem:[%s15329_s1 + $0x824] ss:$24 sps:$4 sm:$0xff]   ;;  %v10710_v4 = vld [vmem:[%s15329_s1 + $0x818] ss:$24 sps:$4 sm:$0xff]  }
 0x202   :  { %7620 = vmatmul.mubr.bf16.vlgmr.msra.gmra.mrb[4].mxu1 %v12055_v16 }
 0x203   :  { %8112 = vmatmul.mubr.bf16.vlgmr.msra.gmra.mrb[4].mxu0 %v12055_v16  ;;  %7629 = vmatpush1.bf16.msra.mxu1 %v10644_v5  ;;  %v10661_v16 = vld [vmem:[%s15329_s1 + $0x674] ss:$24 sps:$4 sm:$0xff]   ;;  %v10713_v5 = vld [vmem:[%s15329_s1 + $0x820] ss:$24 sps:$4 sm:$0xff]  }
 0x204   :  { %8121 = vmatpush1.bf16.msra.mxu0 %v10647_v25  ;;  %7630 = vmatprep.subr.bf16.mxu1 %v10652_v26  ;;  %v10718_v25 = vld [vmem:[%s15329_s1 + $0x84c] ss:$24 sps:$4 sm:$0xff]  }
 0x205   :  { %8122 = vmatprep.subr.bf16.mxu0 %v10655_v8  ;;  %7660 = vmatprep.mubr.bf16.mxu1 %v12080_v23  ;;  %v10721_v26 = vld [vmem:[%s15329_s1 + $0x854] ss:$24 sps:$4 sm:$0xff]   ;;  %v10716_v8 = vld [vmem:[%s15329_s1 + $0x848] ss:$24 sps:$4 sm:$0xff]  }
 0x206   :  { %8152 = vmatprep.mubr.bf16.mxu0 %v12080_v23  ;;  %v10667_v23 = vld [vmem:[%s15329_s1 + $0x6a4] ss:$24 sps:$4 sm:$0xff]  }
 0x207   :  { %7631 = vmatpush1.bf16.msra.mxu1 %v10650_v9  ;;  %v10719_v9 = vld [vmem:[%s15329_s1 + $0x850] ss:$24 sps:$4 sm:$0xff]  }
 0x208   :  { %8123 = vmatpush1.bf16.msra.mxu0 %v10653_v10  ;;  %7632 = vmatprep.subr.bf16.mxu1 %v10658_v11  ;;  %v10724_v10 = vld [vmem:[%s15329_s1 + $0x87c] ss:$24 sps:$4 sm:$0xff]  }
 0x209   :  { %8124 = vmatprep.subr.bf16.mxu0 %v10661_v16  ;;  %v10727_v11 = vld [vmem:[%s15329_s1 + $0x884] ss:$24 sps:$4 sm:$0xff]   ;;  %v10722_v16 = vld [vmem:[%s15329_s1 + $0x878] ss:$24 sps:$4 sm:$0xff]  }
 0x20b   :  { %7633 = vmatpush1.bf16.msra.mxu1 %v10656_v12  ;;  %v10725_v12 = vld [vmem:[%s15329_s1 + $0x880] ss:$24 sps:$4 sm:$0xff]  }
 0x20c   :  { %8125 = vmatpush1.bf16.msra.mxu0 %v10659_v13  ;;  %7634 = vmatprep.subr.bf16.mxu1 %v10664_v14  ;;  %v10730_v13 = vld [vmem:[%s15329_s1 + $0x8ac] ss:$24 sps:$4 sm:$0xff]  }
 0x20d   :  { %8126 = vmatprep.subr.bf16.mxu0 %v10667_v23  ;;  %v10733_v14 = vld [vmem:[%s15329_s1 + $0x8b4] ss:$24 sps:$4 sm:$0xff]   ;;  %v10728_v23 = vld [vmem:[%s15329_s1 + $0x8a8] ss:$24 sps:$4 sm:$0xff]  }
 0x20f   :  { %7635 = vmatpush1.bf16.msra.mxu1 %v10662_v48  ;;  %v10731_v48 = vld [vmem:[%s15329_s1 + $0x8b0] ss:$24 sps:$4 sm:$0xff]  }
 0x210   :  { %8127 = vmatpush1.bf16.msra.mxu0 %v10665_v15  ;;  %7636 = vmatprep.subr.bf16.mxu1 %v10670_v17  ;;  %v10736_v15 = vld [vmem:[%s15329_s1 + $0x8dc] ss:$24 sps:$4 sm:$0xff]  }
 0x211   :  { %8128 = vmatprep.subr.bf16.mxu0 %v10673_v19  ;;  %v10739_v17 = vld [vmem:[%s15329_s1 + $0x8e4] ss:$24 sps:$4 sm:$0xff]   ;;  %v10734_v19 = vld [vmem:[%s15329_s1 + $0x8d8] ss:$24 sps:$4 sm:$0xff]  }
 0x213   :  { %7637 = vmatpush1.bf16.msra.mxu1 %v10668_v20  ;;  %v10737_v20 = vld [vmem:[%s15329_s1 + $0x8e0] ss:$24 sps:$4 sm:$0xff]  }
 0x214   :  { %8129 = vmatpush1.bf16.msra.mxu0 %v10671_v21  ;;  %7638 = vmatprep.subr.bf16.mxu1 %v10676_v30  ;;  %v10742_v21 = vld [vmem:[%s15329_s1 + $0x90c] ss:$24 sps:$4 sm:$0xff]  }
 0x215   :  { %8130 = vmatprep.subr.bf16.mxu0 %v10679_v31  ;;  %v10745_v30 = vld [vmem:[%s15329_s1 + $0x914] ss:$24 sps:$4 sm:$0xff]   ;;  %v10740_v31 = vld [vmem:[%s15329_s1 + $0x908] ss:$24 sps:$4 sm:$0xff]  }
 0x217   :  { %7639 = vmatpush1.bf16.msra.mxu1 %v10674_v58  ;;  %v10743_v58 = vld [vmem:[%s15329_s1 + $0x910] ss:$24 sps:$4 sm:$0xff]  }
 0x218   :  { %8131 = vmatpush1.bf16.msra.mxu0 %v10677_v61  ;;  %7640 = vmatprep.subr.bf16.mxu1 %v10682_v34  ;;  %v10748_v61 = vld [vmem:[%s15329_s1 + $0x93c] ss:$24 sps:$4 sm:$0xff]  }
 0x219   :  { %8132 = vmatprep.subr.bf16.mxu0 %v10685_v36  ;;  %v10751_v34 = vld [vmem:[%s15329_s1 + $0x944] ss:$24 sps:$4 sm:$0xff]   ;;  %v10746_v36 = vld [vmem:[%s15329_s1 + $0x938] ss:$24 sps:$4 sm:$0xff]  }
 0x21b   :  { %7641 = vmatpush1.bf16.msra.mxu1 %v10680_v22  ;;  %v10749_v22 = vld [vmem:[%s15329_s1 + $0x940] ss:$24 sps:$4 sm:$0xff]  }
 0x21c   :  { %8133 = vmatpush1.bf16.msra.mxu0 %v10683_v24  ;;  %7642 = vmatprep.subr.bf16.mxu1 %v10688_v44  ;;  %v10754_v24 = vld [vmem:[%s15329_s1 + $0x96c] ss:$24 sps:$4 sm:$0xff]   ;;  %v1180_v44 = vlaneseq }
 0x21d   :  { %8134 = vmatprep.subr.bf16.mxu0 %v10691_v45  ;;  %v10752_v45 = vld [vmem:[%s15329_s1 + $0x968] ss:$24 sps:$4 sm:$0xff]  }
 0x21f   :  { %7643 = vmatpush1.bf16.msra.mxu1 %v10686_v46  ;;  %v10755_v46 = vld [vmem:[%s15329_s1 + $0x970] ss:$24 sps:$4 sm:$0xff]  }
 0x220   :  { %8135 = vmatpush1.bf16.msra.mxu0 %v10689_v47  ;;  %7644 = vmatprep.subr.bf16.mxu1 %v10694_v49  ;;  %v10760_v47 = vld [vmem:[%s15329_s1 + $0x99c] ss:$24 sps:$4 sm:$0xff]   ;;  %v13577_v49 = vshrl.u32 %v1180_v44, 7  ;;  %v10794_v44 = vld [vmem:[%s15329_s1 + $0xab8] ss:$24 sps:$4 sm:$0xff]  }
 0x221   :  { %8136 = vmatprep.subr.bf16.mxu0 %v10697_v6  ;;  %v10758_v6 = vld [vmem:[%s15329_s1 + $0x998] ss:$24 sps:$4 sm:$0xff]  }
 0x223   :  { %7645 = vmatpush1.bf16.msra.mxu1 %v10692_v50  ;;  %v10761_v50 = vld [vmem:[%s15329_s1 + $0x9a0] ss:$24 sps:$4 sm:$0xff]  }
 0x224   :  { %8137 = vmatpush1.bf16.msra.mxu0 %v10695_v51  ;;  %7646 = vmatprep.subr.bf16.mxu1 %v10700_v52  ;;  %v10766_v51 = vld [vmem:[%s15329_s1 + $0x9cc] ss:$24 sps:$4 sm:$0xff]  }
 0x225   :  { %8138 = vmatprep.subr.bf16.mxu0 %v10703_v35  ;;  %v10769_v52 = vld [vmem:[%s15329_s1 + $0x9d4] ss:$24 sps:$4 sm:$0xff]   ;;  %v10764_v35 = vld [vmem:[%s15329_s1 + $0x9c8] ss:$24 sps:$4 sm:$0xff]  }
 0x227   :  { %7647 = vmatpush1.bf16.msra.mxu1 %v10698_v54  ;;  %v1182_v54 = vsub.s32 0, %v13577_v49 }
 0x228   :  { %8139 = vmatpush1.bf16.msra.mxu0 %v10701_v55  ;;  %7648 = vmatprep.subr.bf16.mxu1 %v10706_v56  ;;  %v10767_v55 = vld [vmem:[%s15329_s1 + $0x9d0] ss:$24 sps:$4 sm:$0xff]   ;;  %v1178_v56 = vld [vmem:[%s15331_s2] sm:$0x3f] }
 0x229   :  { %8140 = vmatprep.subr.bf16.mxu0 %v10709_v57  ;;  %v1186_v57 = vsub.s32 1, %v13577_v49 }
 0x22b   :  { %7649 = vmatpush1.bf16.msra.mxu1 %v10704_v62  ;;  %v10772_v62 = vld [vmem:[%s15329_s1 + $0x9fc] ss:$24 sps:$4 sm:$0xff]  }
 0x22c   :  { %8141 = vmatpush1.bf16.msra.mxu0 %v10707_v40  ;;  %7650 = vmatprep.subr.bf16.mxu1 %v10712_v41  ;;  %v10775_v40 = vld [vmem:[%s15329_s1 + $0xa04] ss:$24 sps:$4 sm:$0xff]   ;;  %v1183_v41 = vrot.slane %v1178_v56, %v1182_v54 }
 0x22d   :  { %8142 = vmatprep.subr.bf16.mxu0 %v10715_v63  ;;  %v1187_v63 = vrot.slane %v1178_v56, %v1186_v57  ;;  %v10814_v54 = vld [vmem:[%s15329_s1 + $0xb4c] ss:$24 sps:$4 sm:$0xff]   ;;  %v10812_v56 = vld [vmem:[%s15329_s1 + $0xb48] ss:$24 sps:$4 sm:$0xff]  }
 0x22e   :  { %v10815_v57 = vld [vmem:[%s15329_s1 + $0xb50] ss:$24 sps:$4 sm:$0xff]  }
 0x22f   :  { %7651 = vmatpush1.bf16.msra.mxu1 %v10710_v4  ;;  %v10770_v4 = vld [vmem:[%s15329_s1 + $0x9f8] ss:$24 sps:$4 sm:$0xff]  }
 0x230   :  { %8143 = vmatpush1.bf16.msra.mxu0 %v10713_v5  ;;  %7652 = vmatprep.subr.bf16.mxu1 %v10718_v25  ;;  %v10773_v5 = vld [vmem:[%s15329_s1 + $0xa00] ss:$24 sps:$4 sm:$0xff]   ;;  %v10778_v25 = vld [vmem:[%s15329_s1 + $0xa2c] ss:$24 sps:$4 sm:$0xff]  }
 0x231   :  { %8144 = vmatprep.subr.bf16.mxu0 %v10721_v26  ;;  %v10781_v26 = vld [vmem:[%s15329_s1 + $0xa34] ss:$24 sps:$4 sm:$0xff]  }
 0x233   :  { %7653 = vmatpush1.bf16.msra.mxu1 %v10716_v8 }
 0x234   :  { %8145 = vmatpush1.bf16.msra.mxu0 %v10719_v9  ;;  %7654 = vmatprep.subr.bf16.mxu1 %v10724_v10 }
 0x235   :  { %8146 = vmatprep.subr.bf16.mxu0 %v10727_v11 }
 0x237   :  { %7655 = vmatpush1.bf16.msra.mxu1 %v10722_v16 }
 0x238   :  { %8147 = vmatpush1.bf16.msra.mxu0 %v10725_v12  ;;  %7656 = vmatprep.subr.bf16.mxu1 %v10730_v13 }
 0x239   :  { %8148 = vmatprep.subr.bf16.mxu0 %v10733_v14 }
 0x23b   :  { %7657 = vmatpush1.bf16.msra.mxu1 %v10728_v23  ;;  %v10776_v23 = vld [vmem:[%s15329_s1 + $0xa28] ss:$24 sps:$4 sm:$0xff]  }
 0x23c   :  { %8149 = vmatpush1.bf16.msra.mxu0 %v10731_v48  ;;  %7658 = vmatprep.subr.bf16.mxu1 %v10736_v15  ;;  %v10779_v48 = vld [vmem:[%s15329_s1 + $0xa30] ss:$24 sps:$4 sm:$0xff]  }
 0x23d   :  { %8150 = vmatprep.subr.bf16.mxu0 %v10739_v17 }
 0x23f   :  { %7659 = vmatpush1.bf16.msra.mxu1 %v10734_v19 }
 0x240   :  { %8151 = vmatpush1.bf16.msra.mxu0 %v10737_v20  ;;  %7669 = vmatprep.subr.bf16.mxu1 %v10742_v21  ;;  %v10784_v20 = vld [vmem:[%s15329_s1 + $0xa5c] ss:$24 sps:$4 sm:$0xff]  }
 0x241   :  { %8161 = vmatprep.subr.bf16.mxu0 %v10745_v30  ;;  %v10787_v21 = vld [vmem:[%s15329_s1 + $0xa64] ss:$24 sps:$4 sm:$0xff]  }
 0x242   :  { %7661 = vmatmul.mubr.bf16.vlgmr.msra.gmra.mrb[4].mxu1 %v12283_v37 }
 0x243   :  { %8153 = vmatmul.mubr.bf16.vlgmr.msra.gmra.mrb[4].mxu0 %v12283_v37  ;;  %7670 = vmatpush1.bf16.msra.mxu1 %v10740_v31  ;;  %v10757_v37 = vld [vmem:[%s15329_s1 + $0x974] ss:$24 sps:$4 sm:$0xff]   ;;  %v10782_v31 = vld [vmem:[%s15329_s1 + $0xa58] ss:$24 sps:$4 sm:$0xff]  }
 0x244   :  { %8162 = vmatpush1.bf16.msra.mxu0 %v10743_v58  ;;  %7671 = vmatprep.subr.bf16.mxu1 %v10748_v61  ;;  %v10785_v58 = vld [vmem:[%s15329_s1 + $0xa60] ss:$24 sps:$4 sm:$0xff]   ;;  %v10790_v61 = vld [vmem:[%s15329_s1 + $0xa8c] ss:$24 sps:$4 sm:$0xff]  }
 0x245   :  { %8163 = vmatprep.subr.bf16.mxu0 %v10751_v34  ;;  %7701 = vmatprep.mubr.bf16.mxu1 %v12307_v42  ;;  %v10793_v34 = vld [vmem:[%s15329_s1 + $0xa94] ss:$24 sps:$4 sm:$0xff]  }
 0x246   :  { %8193 = vmatprep.mubr.bf16.mxu0 %v12307_v42  ;;  %v10763_v42 = vld [vmem:[%s15329_s1 + $0x9a4] ss:$24 sps:$4 sm:$0xff]  }
 0x247   :  { %7672 = vmatpush1.bf16.msra.mxu1 %v10746_v36  ;;  %v10788_v36 = vld [vmem:[%s15329_s1 + $0xa88] ss:$24 sps:$4 sm:$0xff]  }
 0x248   :  { %8164 = vmatpush1.bf16.msra.mxu0 %v10749_v22  ;;  %7673 = vmatprep.subr.bf16.mxu1 %v10754_v24  ;;  %v10791_v22 = vld [vmem:[%s15329_s1 + $0xa90] ss:$24 sps:$4 sm:$0xff]   ;;  %v10796_v24 = vld [vmem:[%s15329_s1 + $0xabc] ss:$24 sps:$4 sm:$0xff]  }
 0x249   :  { %8165 = vmatprep.subr.bf16.mxu0 %v10757_v37  ;;  %v10799_v37 = vld [vmem:[%s15329_s1 + $0xac4] ss:$24 sps:$4 sm:$0xff]  }
 0x24b   :  { %7674 = vmatpush1.bf16.msra.mxu1 %v10752_v45  ;;  %v10797_v45 = vld [vmem:[%s15329_s1 + $0xac0] ss:$24 sps:$4 sm:$0xff]  }
 0x24c   :  { %8166 = vmatpush1.bf16.msra.mxu0 %v10755_v46  ;;  %7675 = vmatprep.subr.bf16.mxu1 %v10760_v47  ;;  %v10802_v46 = vld [vmem:[%s15329_s1 + $0xaec] ss:$24 sps:$4 sm:$0xff]  }
 0x24d   :  { %8167 = vmatprep.subr.bf16.mxu0 %v10763_v42  ;;  %v10805_v47 = vld [vmem:[%s15329_s1 + $0xaf4] ss:$24 sps:$4 sm:$0xff]   ;;  %v10800_v42 = vld [vmem:[%s15329_s1 + $0xae8] ss:$24 sps:$4 sm:$0xff]  }
 0x24f   :  { %7676 = vmatpush1.bf16.msra.mxu1 %v10758_v6  ;;  %v10803_v6 = vld [vmem:[%s15329_s1 + $0xaf0] ss:$24 sps:$4 sm:$0xff]  }
 0x250   :  { %8168 = vmatpush1.bf16.msra.mxu0 %v10761_v50  ;;  %7677 = vmatprep.subr.bf16.mxu1 %v10766_v51  ;;  %v10808_v50 = vld [vmem:[%s15329_s1 + $0xb1c] ss:$24 sps:$4 sm:$0xff]  }
 0x251   :  { %8169 = vmatprep.subr.bf16.mxu0 %v10769_v52  ;;  %v10811_v51 = vld [vmem:[%s15329_s1 + $0xb24] ss:$24 sps:$4 sm:$0xff]   ;;  %v10806_v52 = vld [vmem:[%s15329_s1 + $0xb18] ss:$24 sps:$4 sm:$0xff]  }
 0x253   :  { %7678 = vmatpush1.bf16.msra.mxu1 %v10764_v35  ;;  %v10809_v35 = vld [vmem:[%s15329_s1 + $0xb20] ss:$24 sps:$4 sm:$0xff]  }
 0x254   :  { %8170 = vmatpush1.bf16.msra.mxu0 %v10767_v55  ;;  %7679 = vmatprep.subr.bf16.mxu1 %v10772_v62  ;;  %v10817_v55 = vld [vmem:[%s15329_s1 + $0xb54] ss:$24 sps:$4 sm:$0xff]  }
 0x255   :  { %8171 = vmatprep.subr.bf16.mxu0 %v10775_v40  ;;  %v7293_v8 = vpop.f32.mrb[0].mxu1  ;;  %v10820_v62 = vld [vmem:[%s15329_s1 + $0xb7c] ss:$24 sps:$4 sm:$0xff]  }
 0x256   :  { %v7539_v9 = vpop.f32.mrb[0].mxu0  ;;  %v9716_v10 = vadd.f32 %v7293_v8, %v1183_v41  ;;  %v7295_v11 = vpop.f32.mrb[1].mxu1  ;;  %v10823_v40 = vld [vmem:[%s15329_s1 + $0xb84] ss:$24 sps:$4 sm:$0xff]   ;;  %v10818_v41 = vld [vmem:[%s15329_s1 + $0xb78] ss:$24 sps:$4 sm:$0xff]  }
 0x257   :  { %v7541_v16 = vpop.f32.mrb[1].mxu0  ;;  %v9718_v12 = vadd.f32 %v7295_v11, %v1187_v63  ;;  %v7297_v13 = vpop.f32.mrb[2].mxu1  ;;  %7680 = vmatpush1.bf16.msra.mxu1 %v10770_v4  ;;  %v10821_v63 = vld [vmem:[%s15329_s1 + $0xb80] ss:$24 sps:$4 sm:$0xff]   ;;  %v10826_v4 = vld [vmem:[%s15329_s1 + $0xbac] ss:$24 sps:$4 sm:$0xff]  }
 0x258   :  { %v7543_v14 = vpop.f32.mrb[2].mxu0  ;;  %8172 = vmatpush1.bf16.msra.mxu0 %v10773_v5  ;;  %v9717_v15 = vadd.f32 %v9716_v10, %v7539_v9  ;;  %v7298_v17 = vpop.f32.mrb[3].mxu1  ;;  %7681 = vmatprep.subr.bf16.mxu1 %v10778_v25  ;;  %v10829_v5 = vld [vmem:[%s15329_s1 + $0xbb4] ss:$24 sps:$4 sm:$0xff]   ;;  %v10824_v25 = vld [vmem:[%s15329_s1 + $0xba8] ss:$24 sps:$4 sm:$0xff]  }
 0x259   :  { %v7544_v19 = vpop.f32.mrb[3].mxu0  ;;  %8173 = vmatprep.subr.bf16.mxu0 %v10781_v26  ;;  %v9719_v30 = vadd.f32 %v9718_v12, %v7541_v16  ;;  %v10827_v26 = vld [vmem:[%s15329_s1 + $0xbb0] ss:$24 sps:$4 sm:$0xff]   ;;  %v10832_v8 = vld [vmem:[%s15329_s1 + $0xbdc] ss:$24 sps:$4 sm:$0xff]  }
 0x25a   :  { %8530 = vst [vmem:[%s15332_s3] sm:$0xff] %v9717_v15  ;;  %v10835_v9 = vld [vmem:[%s15329_s1 + $0xbe4] ss:$24 sps:$4 sm:$0xff]   ;;  %v10830_v10 = vld [vmem:[%s15329_s1 + $0xbd8] ss:$24 sps:$4 sm:$0xff]   ;;  %v10841_v12 = vld [vmem:[%s15329_s1 + $0xc14] ss:$24 sps:$4 sm:$0xff]  }
 0x25b   :  { %8531 = vst [vmem:[%s15332_s3 + $0x8] sm:$0xff] %v9719_v30  ;;  %7682 = vmatpush1.bf16.msra.mxu1 %v10776_v23  ;;  %v10833_v11 = vld [vmem:[%s15329_s1 + $0xbe0] ss:$24 sps:$4 sm:$0xff]   ;;  %v10838_v16 = vld [vmem:[%s15329_s1 + $0xc0c] ss:$24 sps:$4 sm:$0xff]  }
 0x25c   :  { %8174 = vmatpush1.bf16.msra.mxu0 %v10779_v48  ;;  %7683 = vmatprep.subr.bf16.mxu1 %v10784_v20  ;;  %v10836_v13 = vld [vmem:[%s15329_s1 + $0xc08] ss:$24 sps:$4 sm:$0xff]   ;;  %v10844_v23 = vld [vmem:[%s15329_s1 + $0xc3c] ss:$24 sps:$4 sm:$0xff]   ;;  %v10842_v15 = vld [vmem:[%s15329_s1 + $0xc38] ss:$24 sps:$4 sm:$0xff]  }
 0x25d   :  { %8175 = vmatprep.subr.bf16.mxu0 %v10787_v21  ;;  %v10839_v14 = vld [vmem:[%s15329_s1 + $0xc10] ss:$24 sps:$4 sm:$0xff]   ;;  %v10847_v48 = vld [vmem:[%s15329_s1 + $0xc44] ss:$24 sps:$4 sm:$0xff]   ;;  %v10845_v17 = vld [vmem:[%s15329_s1 + $0xc40] ss:$24 sps:$4 sm:$0xff]  }
 0x25e   :  { %v10850_v19 = vld [vmem:[%s15329_s1 + $0xc6c] ss:$24 sps:$4 sm:$0xff]   ;;  %v10848_v20 = vld [vmem:[%s15329_s1 + $0xc68] ss:$24 sps:$4 sm:$0xff]   ;;  %v10856_v30 = vld [vmem:[%s15329_s1 + $0xc9c] ss:$24 sps:$4 sm:$0xff]  }
 0x25f   :  { %7684 = vmatpush1.bf16.msra.mxu1 %v10782_v31  ;;  %v10851_v21 = vld [vmem:[%s15329_s1 + $0xc70] ss:$24 sps:$4 sm:$0xff]  }
 0x260   :  { %8176 = vmatpush1.bf16.msra.mxu0 %v10785_v58  ;;  %7685 = vmatprep.subr.bf16.mxu1 %v10790_v61  ;;  %v10854_v31 = vld [vmem:[%s15329_s1 + $0xc98] ss:$24 sps:$4 sm:$0xff]   ;;  %v10862_v61 = vld [vmem:[%s15329_s1 + $0xccc] ss:$24 sps:$4 sm:$0xff]  }
 0x261   :  { %8177 = vmatprep.subr.bf16.mxu0 %v10793_v34  ;;  %v10857_v58 = vld [vmem:[%s15329_s1 + $0xca0] ss:$24 sps:$4 sm:$0xff]   ;;  %v10865_v34 = vld [vmem:[%s15329_s1 + $0xcd4] ss:$24 sps:$4 sm:$0xff]  }
 0x263   :  { %7686 = vmatpush1.bf16.msra.mxu1 %v10788_v36  ;;  %v10860_v36 = vld [vmem:[%s15329_s1 + $0xcc8] ss:$24 sps:$4 sm:$0xff]  }
 0x264   :  { %8178 = vmatpush1.bf16.msra.mxu0 %v10791_v22  ;;  %7687 = vmatprep.subr.bf16.mxu1 %v10796_v24  ;;  %v10863_v22 = vld [vmem:[%s15329_s1 + $0xcd0] ss:$24 sps:$4 sm:$0xff]   ;;  %v10868_v24 = vld [vmem:[%s15329_s1 + $0xcfc] ss:$24 sps:$4 sm:$0xff]  }
 0x265   :  { %8179 = vmatprep.subr.bf16.mxu0 %v10799_v37  ;;  %v10871_v37 = vld [vmem:[%s15329_s1 + $0xd04] ss:$24 sps:$4 sm:$0xff]  }
 0x267   :  { %7688 = vmatpush1.bf16.msra.mxu1 %v10794_v44  ;;  %v10866_v44 = vld [vmem:[%s15329_s1 + $0xcf8] ss:$24 sps:$4 sm:$0xff]  }
 0x268   :  { %8180 = vmatpush1.bf16.msra.mxu0 %v10797_v45  ;;  %7689 = vmatprep.subr.bf16.mxu1 %v10802_v46  ;;  %v10869_v45 = vld [vmem:[%s15329_s1 + $0xd00] ss:$24 sps:$4 sm:$0xff]   ;;  %v10874_v46 = vld [vmem:[%s15329_s1 + $0xd2c] ss:$24 sps:$4 sm:$0xff]  }
 0x269   :  { %8181 = vmatprep.subr.bf16.mxu0 %v10805_v47  ;;  %v10877_v47 = vld [vmem:[%s15329_s1 + $0xd34] ss:$24 sps:$4 sm:$0xff]  }
 0x26b   :  { %7690 = vmatpush1.bf16.msra.mxu1 %v10800_v42  ;;  %v10872_v42 = vld [vmem:[%s15329_s1 + $0xd28] ss:$24 sps:$4 sm:$0xff]  }
 0x26c   :  { %8182 = vmatpush1.bf16.msra.mxu0 %v10803_v6  ;;  %7691 = vmatprep.subr.bf16.mxu1 %v10808_v50  ;;  %v10875_v6 = vld [vmem:[%s15329_s1 + $0xd30] ss:$24 sps:$4 sm:$0xff]   ;;  %v10880_v50 = vld [vmem:[%s15329_s1 + $0xd5c] ss:$24 sps:$4 sm:$0xff]  }
 0x26d   :  { %8183 = vmatprep.subr.bf16.mxu0 %v10811_v51  ;;  %v10883_v51 = vld [vmem:[%s15329_s1 + $0xd64] ss:$24 sps:$4 sm:$0xff]  }
 0x26f   :  { %7692 = vmatpush1.bf16.msra.mxu1 %v10806_v52  ;;  %v10878_v52 = vld [vmem:[%s15329_s1 + $0xd58] ss:$24 sps:$4 sm:$0xff]  }
 0x270   :  { %8184 = vmatpush1.bf16.msra.mxu0 %v10809_v35  ;;  %7693 = vmatprep.subr.bf16.mxu1 %v10814_v54  ;;  %v10881_v35 = vld [vmem:[%s15329_s1 + $0xd60] ss:$24 sps:$4 sm:$0xff]   ;;  %v10886_v54 = vld [vmem:[%s15329_s1 + $0xd8c] ss:$24 sps:$4 sm:$0xff]  }
 0x271   :  { %8185 = vmatprep.subr.bf16.mxu0 %v10817_v55  ;;  %v10889_v55 = vld [vmem:[%s15329_s1 + $0xd94] ss:$24 sps:$4 sm:$0xff]  }
 0x273   :  { %7694 = vmatpush1.bf16.msra.mxu1 %v10812_v56  ;;  %v10884_v56 = vld [vmem:[%s15329_s1 + $0xd88] ss:$24 sps:$4 sm:$0xff]  }
 0x274   :  { %8186 = vmatpush1.bf16.msra.mxu0 %v10815_v57  ;;  %7695 = vmatprep.subr.bf16.mxu1 %v10820_v62  ;;  %v10887_v57 = vld [vmem:[%s15329_s1 + $0xd90] ss:$24 sps:$4 sm:$0xff]   ;;  %v10892_v62 = vld [vmem:[%s15329_s1 + $0xdbc] ss:$24 sps:$4 sm:$0xff]  }
 0x275   :  { %8187 = vmatprep.subr.bf16.mxu0 %v10823_v40  ;;  %v10895_v40 = vld [vmem:[%s15329_s1 + $0xdc4] ss:$24 sps:$4 sm:$0xff]  }
 0x277   :  { %7696 = vmatpush1.bf16.msra.mxu1 %v10818_v41  ;;  %v10890_v41 = vld [vmem:[%s15329_s1 + $0xdb8] ss:$24 sps:$4 sm:$0xff]  }
 0x278   :  { %8188 = vmatpush1.bf16.msra.mxu0 %v10821_v63  ;;  %7697 = vmatprep.subr.bf16.mxu1 %v10826_v4  ;;  %v10893_v63 = vld [vmem:[%s15329_s1 + $0xdc0] ss:$24 sps:$4 sm:$0xff]   ;;  %v10898_v4 = vld [vmem:[%s15329_s1 + $0xdec] ss:$24 sps:$4 sm:$0xff]  }
 0x279   :  { %8189 = vmatprep.subr.bf16.mxu0 %v10829_v5  ;;  %v10901_v5 = vld [vmem:[%s15329_s1 + $0xdf4] ss:$24 sps:$4 sm:$0xff]  }
 0x27b   :  { %7698 = vmatpush1.bf16.msra.mxu1 %v10824_v25  ;;  %v10896_v25 = vld [vmem:[%s15329_s1 + $0xde8] ss:$24 sps:$4 sm:$0xff]  }
 0x27c   :  { %8190 = vmatpush1.bf16.msra.mxu0 %v10827_v26  ;;  %7699 = vmatprep.subr.bf16.mxu1 %v10832_v8  ;;  %v10899_v26 = vld [vmem:[%s15329_s1 + $0xdf0] ss:$24 sps:$4 sm:$0xff]   ;;  %v10904_v8 = vld [vmem:[%s15329_s1 + $0xe1c] ss:$24 sps:$4 sm:$0xff]  }
 0x27d   :  { %8191 = vmatprep.subr.bf16.mxu0 %v10835_v9  ;;  %v10907_v9 = vld [vmem:[%s15329_s1 + $0xe24] ss:$24 sps:$4 sm:$0xff]  }
 0x27f   :  { %7700 = vmatpush1.bf16.msra.mxu1 %v10830_v10  ;;  %v10902_v10 = vld [vmem:[%s15329_s1 + $0xe18] ss:$24 sps:$4 sm:$0xff]  }
 0x280   :  { %8192 = vmatpush1.bf16.msra.mxu0 %v10833_v11  ;;  %7710 = vmatprep.subr.bf16.mxu1 %v10838_v16  ;;  %v10905_v11 = vld [vmem:[%s15329_s1 + $0xe20] ss:$24 sps:$4 sm:$0xff]   ;;  %v10910_v16 = vld [vmem:[%s15329_s1 + $0xe4c] ss:$24 sps:$4 sm:$0xff]  }
 0x281   :  { %8202 = vmatprep.subr.bf16.mxu0 %v10841_v12  ;;  %v10913_v12 = vld [vmem:[%s15329_s1 + $0xe54] ss:$24 sps:$4 sm:$0xff]  }
 0x282   :  { %7702 = vmatmul.mubr.bf16.vlgmr.msra.gmra.mrb[4].mxu1 %v12504_v59 }
 0x283   :  { %8194 = vmatmul.mubr.bf16.vlgmr.msra.gmra.mrb[4].mxu0 %v12504_v59  ;;  %7711 = vmatpush1.bf16.msra.mxu1 %v10836_v13  ;;  %v10853_v59 = vld [vmem:[%s15329_s1 + $0xc74] ss:$24 sps:$4 sm:$0xff]   ;;  %v10908_v13 = vld [vmem:[%s15329_s1 + $0xe48] ss:$24 sps:$4 sm:$0xff]  }
 0x284   :  { %8203 = vmatpush1.bf16.msra.mxu0 %v10839_v14  ;;  %7712 = vmatprep.subr.bf16.mxu1 %v10844_v23  ;;  %v10911_v14 = vld [vmem:[%s15329_s1 + $0xe50] ss:$24 sps:$4 sm:$0xff]   ;;  %v10916_v23 = vld [vmem:[%s15329_s1 + $0xe7c] ss:$24 sps:$4 sm:$0xff]  }
 0x285   :  { %8204 = vmatprep.subr.bf16.mxu0 %v10847_v48  ;;  %7742 = vmatprep.mubr.bf16.mxu1 %v12529_v0  ;;  %v10919_v48 = vld [vmem:[%s15329_s1 + $0xe84] ss:$24 sps:$4 sm:$0xff]  }
 0x286   :  { %8234 = vmatprep.mubr.bf16.mxu0 %v12529_v0  ;;  %v10859_v0 = vld [vmem:[%s15329_s1 + $0xca4] ss:$24 sps:$4 sm:$0xff]  }
 0x287   :  { %7713 = vmatpush1.bf16.msra.mxu1 %v10842_v15  ;;  %v10914_v15 = vld [vmem:[%s15329_s1 + $0xe78] ss:$24 sps:$4 sm:$0xff]  }
 0x288   :  { %8205 = vmatpush1.bf16.msra.mxu0 %v10845_v17  ;;  %7714 = vmatprep.subr.bf16.mxu1 %v10850_v19  ;;  %v10917_v17 = vld [vmem:[%s15329_s1 + $0xe80] ss:$24 sps:$4 sm:$0xff]   ;;  %v10922_v19 = vld [vmem:[%s15329_s1 + $0xeac] ss:$24 sps:$4 sm:$0xff]  }
 0x289   :  { %8206 = vmatprep.subr.bf16.mxu0 %v10853_v59  ;;  %v10925_v59 = vld [vmem:[%s15329_s1 + $0xeb4] ss:$24 sps:$4 sm:$0xff]  }
 0x28b   :  { %7715 = vmatpush1.bf16.msra.mxu1 %v10848_v20  ;;  %v10920_v20 = vld [vmem:[%s15329_s1 + $0xea8] ss:$24 sps:$4 sm:$0xff]  }
 0x28c   :  { %8207 = vmatpush1.bf16.msra.mxu0 %v10851_v21  ;;  %7716 = vmatprep.subr.bf16.mxu1 %v10856_v30  ;;  %v10923_v21 = vld [vmem:[%s15329_s1 + $0xeb0] ss:$24 sps:$4 sm:$0xff]   ;;  %v10928_v30 = vld [vmem:[%s15329_s1 + $0xedc] ss:$24 sps:$4 sm:$0xff]  }
 0x28d   :  { %8208 = vmatprep.subr.bf16.mxu0 %v10859_v0  ;;  %v10931_v0 = vld [vmem:[%s15329_s1 + $0xee4] ss:$24 sps:$4 sm:$0xff]  }
 0x28f   :  { %7717 = vmatpush1.bf16.msra.mxu1 %v10854_v31  ;;  %v10926_v31 = vld [vmem:[%s15329_s1 + $0xed8] ss:$24 sps:$4 sm:$0xff]  }
 0x290   :  { %8209 = vmatpush1.bf16.msra.mxu0 %v10857_v58  ;;  %7718 = vmatprep.subr.bf16.mxu1 %v10862_v61  ;;  %v10929_v58 = vld [vmem:[%s15329_s1 + $0xee0] ss:$24 sps:$4 sm:$0xff]   ;;  %v10934_v61 = vld [vmem:[%s15329_s1 + $0xf0c] ss:$24 sps:$4 sm:$0xff]  }
 0x291   :  { %8210 = vmatprep.subr.bf16.mxu0 %v10865_v34  ;;  %v10937_v34 = vld [vmem:[%s15329_s1 + $0xf14] ss:$24 sps:$4 sm:$0xff]  }
 0x293   :  { %7719 = vmatpush1.bf16.msra.mxu1 %v10860_v36  ;;  %v10932_v36 = vld [vmem:[%s15329_s1 + $0xf08] ss:$24 sps:$4 sm:$0xff]  }
 0x294   :  { %8211 = vmatpush1.bf16.msra.mxu0 %v10863_v22  ;;  %7720 = vmatprep.subr.bf16.mxu1 %v10868_v24  ;;  %v10935_v22 = vld [vmem:[%s15329_s1 + $0xf10] ss:$24 sps:$4 sm:$0xff]   ;;  %v10940_v24 = vld [vmem:[%s15329_s1 + $0xf3c] ss:$24 sps:$4 sm:$0xff]  }
 0x295   :  { %8212 = vmatprep.subr.bf16.mxu0 %v10871_v37  ;;  %v10943_v37 = vld [vmem:[%s15329_s1 + $0xf44] ss:$24 sps:$4 sm:$0xff]  }
 0x297   :  { %7721 = vmatpush1.bf16.msra.mxu1 %v10866_v44  ;;  %v10938_v44 = vld [vmem:[%s15329_s1 + $0xf38] ss:$24 sps:$4 sm:$0xff]  }
 0x298   :  { %8213 = vmatpush1.bf16.msra.mxu0 %v10869_v45  ;;  %7722 = vmatprep.subr.bf16.mxu1 %v10874_v46  ;;  %v10941_v45 = vld [vmem:[%s15329_s1 + $0xf40] ss:$24 sps:$4 sm:$0xff]   ;;  %v10946_v46 = vld [vmem:[%s15329_s1 + $0xf6c] ss:$24 sps:$4 sm:$0xff]  }
 0x299   :  { %8214 = vmatprep.subr.bf16.mxu0 %v10877_v47  ;;  %v10944_v47 = vld [vmem:[%s15329_s1 + $0xf68] ss:$24 sps:$4 sm:$0xff]  }
 0x29b   :  { %7723 = vmatpush1.bf16.msra.mxu1 %v10872_v42  ;;  %v10947_v42 = vld [vmem:[%s15329_s1 + $0xf70] ss:$24 sps:$4 sm:$0xff]  }
 0x29c   :  { %8215 = vmatpush1.bf16.msra.mxu0 %v10875_v6  ;;  %7724 = vmatprep.subr.bf16.mxu1 %v10880_v50  ;;  %v10952_v6 = vld [vmem:[%s15329_s1 + $0xf9c] ss:$24 sps:$4 sm:$0xff]   ;;  %v10950_v50 = vld [vmem:[%s15329_s1 + $0xf98] ss:$24 sps:$4 sm:$0xff]  }
 0x29d   :  { %8216 = vmatprep.subr.bf16.mxu0 %v10883_v51  ;;  %v10953_v51 = vld [vmem:[%s15329_s1 + $0xfa0] ss:$24 sps:$4 sm:$0xff]  }
 0x29f   :  { %7725 = vmatpush1.bf16.msra.mxu1 %v10878_v52  ;;  %v10958_v52 = vld [vmem:[%s15329_s1 + $0xfcc] ss:$24 sps:$4 sm:$0xff]  }
 0x2a0   :  { %8217 = vmatpush1.bf16.msra.mxu0 %v10881_v35  ;;  %7726 = vmatprep.subr.bf16.mxu1 %v10886_v54  ;;  %v10961_v35 = vld [vmem:[%s15329_s1 + $0xfd4] ss:$24 sps:$4 sm:$0xff]   ;;  %v10956_v54 = vld [vmem:[%s15329_s1 + $0xfc8] ss:$24 sps:$4 sm:$0xff]  }
 0x2a1   :  { %8218 = vmatprep.subr.bf16.mxu0 %v10889_v55  ;;  %v10959_v55 = vld [vmem:[%s15329_s1 + $0xfd0] ss:$24 sps:$4 sm:$0xff]  }
 0x2a3   :  { %7727 = vmatpush1.bf16.msra.mxu1 %v10884_v56  ;;  %v10964_v56 = vld [vmem:[%s15329_s1 + $0xffc] ss:$24 sps:$4 sm:$0xff]  }
 0x2a4   :  { %8219 = vmatpush1.bf16.msra.mxu0 %v10887_v57  ;;  %7728 = vmatprep.subr.bf16.mxu1 %v10892_v62  ;;  %v10967_v57 = vld [vmem:[%s15329_s1 + $0x1004] ss:$24 sps:$4 sm:$0xff]   ;;  %v10962_v62 = vld [vmem:[%s15329_s1 + $0xff8] ss:$24 sps:$4 sm:$0xff]  }
 0x2a5   :  { %8220 = vmatprep.subr.bf16.mxu0 %v10895_v40  ;;  %v10965_v40 = vld [vmem:[%s15329_s1 + $0x1000] ss:$24 sps:$4 sm:$0xff]  }
 0x2a7   :  { %7729 = vmatpush1.bf16.msra.mxu1 %v10890_v41  ;;  %v10970_v41 = vld [vmem:[%s15329_s1 + $0x102c] ss:$24 sps:$4 sm:$0xff]  }
 0x2a8   :  { %8221 = vmatpush1.bf16.msra.mxu0 %v10893_v63  ;;  %7730 = vmatprep.subr.bf16.mxu1 %v10898_v4  ;;  %v10973_v63 = vld [vmem:[%s15329_s1 + $0x1034] ss:$24 sps:$4 sm:$0xff]   ;;  %v10968_v4 = vld [vmem:[%s15329_s1 + $0x1028] ss:$24 sps:$4 sm:$0xff]  }
 0x2a9   :  { %8222 = vmatprep.subr.bf16.mxu0 %v10901_v5  ;;  %v10971_v5 = vld [vmem:[%s15329_s1 + $0x1030] ss:$24 sps:$4 sm:$0xff]  }
 0x2ab   :  { %7731 = vmatpush1.bf16.msra.mxu1 %v10896_v25  ;;  %v10976_v25 = vld [vmem:[%s15329_s1 + $0x105c] ss:$24 sps:$4 sm:$0xff]  }
 0x2ac   :  { %8223 = vmatpush1.bf16.msra.mxu0 %v10899_v26  ;;  %7732 = vmatprep.subr.bf16.mxu1 %v10904_v8  ;;  %v10979_v26 = vld [vmem:[%s15329_s1 + $0x1064] ss:$24 sps:$4 sm:$0xff]   ;;  %v10974_v8 = vld [vmem:[%s15329_s1 + $0x1058] ss:$24 sps:$4 sm:$0xff]  }
 0x2ad   :  { %8224 = vmatprep.subr.bf16.mxu0 %v10907_v9  ;;  %v10977_v9 = vld [vmem:[%s15329_s1 + $0x1060] ss:$24 sps:$4 sm:$0xff]  }
 0x2af   :  { %7733 = vmatpush1.bf16.msra.mxu1 %v10902_v10  ;;  %v10982_v10 = vld [vmem:[%s15329_s1 + $0x108c] ss:$24 sps:$4 sm:$0xff]  }
 0x2b0   :  { %8225 = vmatpush1.bf16.msra.mxu0 %v10905_v11  ;;  %7734 = vmatprep.subr.bf16.mxu1 %v10910_v16  ;;  %v10985_v11 = vld [vmem:[%s15329_s1 + $0x1094] ss:$24 sps:$4 sm:$0xff]   ;;  %v10980_v16 = vld [vmem:[%s15329_s1 + $0x1088] ss:$24 sps:$4 sm:$0xff]  }
 0x2b1   :  { %8226 = vmatprep.subr.bf16.mxu0 %v10913_v12  ;;  %v10983_v12 = vld [vmem:[%s15329_s1 + $0x1090] ss:$24 sps:$4 sm:$0xff]  }
 0x2b3   :  { %7735 = vmatpush1.bf16.msra.mxu1 %v10908_v13  ;;  %v10988_v13 = vld [vmem:[%s15329_s1 + $0x10bc] ss:$24 sps:$4 sm:$0xff]  }
 0x2b4   :  { %8227 = vmatpush1.bf16.msra.mxu0 %v10911_v14  ;;  %7736 = vmatprep.subr.bf16.mxu1 %v10916_v23  ;;  %v10991_v14 = vld [vmem:[%s15329_s1 + $0x10c4] ss:$24 sps:$4 sm:$0xff]   ;;  %v10986_v23 = vld [vmem:[%s15329_s1 + $0x10b8] ss:$24 sps:$4 sm:$0xff]  }
 0x2b5   :  { %8228 = vmatprep.subr.bf16.mxu0 %v10919_v48  ;;  %v10989_v48 = vld [vmem:[%s15329_s1 + $0x10c0] ss:$24 sps:$4 sm:$0xff]  }
 0x2b7   :  { %7737 = vmatpush1.bf16.msra.mxu1 %v10914_v15  ;;  %v10994_v15 = vld [vmem:[%s15329_s1 + $0x10ec] ss:$24 sps:$4 sm:$0xff]  }
 0x2b8   :  { %8229 = vmatpush1.bf16.msra.mxu0 %v10917_v17  ;;  %7738 = vmatprep.subr.bf16.mxu1 %v10922_v19  ;;  %v10997_v17 = vld [vmem:[%s15329_s1 + $0x10f4] ss:$24 sps:$4 sm:$0xff]   ;;  %v10992_v19 = vld [vmem:[%s15329_s1 + $0x10e8] ss:$24 sps:$4 sm:$0xff]  }
 0x2b9   :  { %8230 = vmatprep.subr.bf16.mxu0 %v10925_v59  ;;  %v10995_v59 = vld [vmem:[%s15329_s1 + $0x10f0] ss:$24 sps:$4 sm:$0xff]  }
 0x2bb   :  { %7739 = vmatpush1.bf16.msra.mxu1 %v10920_v20  ;;  %v11000_v20 = vld [vmem:[%s15329_s1 + $0x111c] ss:$24 sps:$4 sm:$0xff]  }
 0x2bc   :  { %8231 = vmatpush1.bf16.msra.mxu0 %v10923_v21  ;;  %7740 = vmatprep.subr.bf16.mxu1 %v10928_v30  ;;  %v11003_v21 = vld [vmem:[%s15329_s1 + $0x1124] ss:$24 sps:$4 sm:$0xff]   ;;  %v10998_v30 = vld [vmem:[%s15329_s1 + $0x1118] ss:$24 sps:$4 sm:$0xff]  }
 0x2bd   :  { %8232 = vmatprep.subr.bf16.mxu0 %v10931_v0  ;;  %v11001_v0 = vld [vmem:[%s15329_s1 + $0x1120] ss:$24 sps:$4 sm:$0xff]  }
 0x2bf   :  { %7741 = vmatpush1.bf16.msra.mxu1 %v10926_v31  ;;  %v11006_v31 = vld [vmem:[%s15329_s1 + $0x114c] ss:$24 sps:$4 sm:$0xff]  }
 0x2c0   :  { %8233 = vmatpush1.bf16.msra.mxu0 %v10929_v58  ;;  %7751 = vmatprep.subr.bf16.mxu1 %v10934_v61  ;;  %v11009_v58 = vld [vmem:[%s15329_s1 + $0x1154] ss:$24 sps:$4 sm:$0xff]   ;;  %v11004_v61 = vld [vmem:[%s15329_s1 + $0x1148] ss:$24 sps:$4 sm:$0xff]  }
 0x2c1   :  { %8243 = vmatprep.subr.bf16.mxu0 %v10937_v34  ;;  %v11007_v34 = vld [vmem:[%s15329_s1 + $0x1150] ss:$24 sps:$4 sm:$0xff]  }
 0x2c2   :  { %7743 = vmatmul.mubr.bf16.vlgmr.msra.gmra.mrb[4].mxu1 %v12731_v28 }
 0x2c3   :  { %8235 = vmatmul.mubr.bf16.vlgmr.msra.gmra.mrb[4].mxu0 %v12731_v28  ;;  %7752 = vmatpush1.bf16.msra.mxu1 %v10932_v36  ;;  %v10949_v28 = vld [vmem:[%s15329_s1 + $0xf74] ss:$24 sps:$4 sm:$0xff]  }
 0x2c4   :  { %8244 = vmatpush1.bf16.msra.mxu0 %v10935_v22  ;;  %7753 = vmatprep.subr.bf16.mxu1 %v10940_v24  ;;  %v11012_v36 = vld [vmem:[%s15329_s1 + $0x117c] ss:$24 sps:$4 sm:$0xff]   ;;  %v11010_v24 = vld [vmem:[%s15329_s1 + $0x1178] ss:$24 sps:$4 sm:$0xff]  }
 0x2c5   :  { %8245 = vmatprep.subr.bf16.mxu0 %v10943_v37  ;;  %7783 = vmatprep.mubr.bf16.mxu1 %v12751_v32  ;;  %v11015_v22 = vld [vmem:[%s15329_s1 + $0x1184] ss:$24 sps:$4 sm:$0xff]   ;;  %v11013_v37 = vld [vmem:[%s15329_s1 + $0x1180] ss:$24 sps:$4 sm:$0xff]  }
 0x2c6   :  { %8275 = vmatprep.mubr.bf16.mxu0 %v12751_v32  ;;  %v10955_v32 = vld [vmem:[%s15329_s1 + $0xfa4] ss:$24 sps:$4 sm:$0xff]  }
 0x2c7   :  { %7754 = vmatpush1.bf16.msra.mxu1 %v10938_v44  ;;  %v11018_v44 = vld [vmem:[%s15329_s1 + $0x11ac] ss:$24 sps:$4 sm:$0xff]  }
 0x2c8   :  { %8246 = vmatpush1.bf16.msra.mxu0 %v10941_v45  ;;  %7755 = vmatprep.subr.bf16.mxu1 %v10946_v46  ;;  %v11021_v45 = vld [vmem:[%s15329_s1 + $0x11b4] ss:$24 sps:$4 sm:$0xff]   ;;  %v11016_v46 = vld [vmem:[%s15329_s1 + $0x11a8] ss:$24 sps:$4 sm:$0xff]  }
 0x2c9   :  { %8247 = vmatprep.subr.bf16.mxu0 %v10949_v28  ;;  %v11019_v28 = vld [vmem:[%s15329_s1 + $0x11b0] ss:$24 sps:$4 sm:$0xff]  }
 0x2cb   :  { %7756 = vmatpush1.bf16.msra.mxu1 %v10944_v47  ;;  %v11024_v47 = vld [vmem:[%s15329_s1 + $0x11dc] ss:$24 sps:$4 sm:$0xff]  }
 0x2cc   :  { %8248 = vmatpush1.bf16.msra.mxu0 %v10947_v42  ;;  %7757 = vmatprep.subr.bf16.mxu1 %v10952_v6  ;;  %v11027_v42 = vld [vmem:[%s15329_s1 + $0x11e4] ss:$24 sps:$4 sm:$0xff]   ;;  %v11022_v6 = vld [vmem:[%s15329_s1 + $0x11d8] ss:$24 sps:$4 sm:$0xff]  }
 0x2cd   :  { %8249 = vmatprep.subr.bf16.mxu0 %v10955_v32  ;;  %v11025_v32 = vld [vmem:[%s15329_s1 + $0x11e0] ss:$24 sps:$4 sm:$0xff]  }
 0x2cf   :  { %7758 = vmatpush1.bf16.msra.mxu1 %v10950_v50  ;;  %v11030_v50 = vld [vmem:[%s15329_s1 + $0x120c] ss:$24 sps:$4 sm:$0xff]  }
 0x2d0   :  { %8250 = vmatpush1.bf16.msra.mxu0 %v10953_v51  ;;  %7759 = vmatprep.subr.bf16.mxu1 %v10958_v52  ;;  %v11033_v51 = vld [vmem:[%s15329_s1 + $0x1214] ss:$24 sps:$4 sm:$0xff]   ;;  %v11028_v52 = vld [vmem:[%s15329_s1 + $0x1208] ss:$24 sps:$4 sm:$0xff]  }
 0x2d1   :  { %8251 = vmatprep.subr.bf16.mxu0 %v10961_v35  ;;  %v11031_v35 = vld [vmem:[%s15329_s1 + $0x1210] ss:$24 sps:$4 sm:$0xff]  }
 0x2d3   :  { %7760 = vmatpush1.bf16.msra.mxu1 %v10956_v54  ;;  %v11036_v54 = vld [vmem:[%s15329_s1 + $0x123c] ss:$24 sps:$4 sm:$0xff]  }
 0x2d4   :  { %8252 = vmatpush1.bf16.msra.mxu0 %v10959_v55  ;;  %7761 = vmatprep.subr.bf16.mxu1 %v10964_v56  ;;  %v11039_v55 = vld [vmem:[%s15329_s1 + $0x1244] ss:$24 sps:$4 sm:$0xff]   ;;  %v11034_v56 = vld [vmem:[%s15329_s1 + $0x1238] ss:$24 sps:$4 sm:$0xff]  }
 0x2d5   :  { %8253 = vmatprep.subr.bf16.mxu0 %v10967_v57  ;;  %v11037_v57 = vld [vmem:[%s15329_s1 + $0x1240] ss:$24 sps:$4 sm:$0xff]  }
 0x2d7   :  { %7762 = vmatpush1.bf16.msra.mxu1 %v10962_v62  ;;  %v11042_v62 = vld [vmem:[%s15329_s1 + $0x126c] ss:$24 sps:$4 sm:$0xff]  }
 0x2d8   :  { %8254 = vmatpush1.bf16.msra.mxu0 %v10965_v40  ;;  %7763 = vmatprep.subr.bf16.mxu1 %v10970_v41  ;;  %v11040_v40 = vld [vmem:[%s15329_s1 + $0x1268] ss:$24 sps:$4 sm:$0xff]  }
 0x2d9   :  { %8255 = vmatprep.subr.bf16.mxu0 %v10973_v63  ;;  %v11043_v41 = vld [vmem:[%s15329_s1 + $0x1270] ss:$24 sps:$4 sm:$0xff]   ;;  %v11048_v63 = vld [vmem:[%s15329_s1 + $0x129c] ss:$24 sps:$4 sm:$0xff]  }
 0x2db   :  { %7764 = vmatpush1.bf16.msra.mxu1 %v10968_v4  ;;  %v11046_v4 = vld [vmem:[%s15329_s1 + $0x1298] ss:$24 sps:$4 sm:$0xff]  }
 0x2dc   :  { %8256 = vmatpush1.bf16.msra.mxu0 %v10971_v5  ;;  %7765 = vmatprep.subr.bf16.mxu1 %v10976_v25  ;;  %v11049_v5 = vld [vmem:[%s15329_s1 + $0x12a0] ss:$24 sps:$4 sm:$0xff]   ;;  %v11054_v25 = vld [vmem:[%s15329_s1 + $0x12cc] ss:$24 sps:$4 sm:$0xff]  }
 0x2dd   :  { %8257 = vmatprep.subr.bf16.mxu0 %v10979_v26  ;;  %v11057_v26 = vld [vmem:[%s15329_s1 + $0x12d4] ss:$24 sps:$4 sm:$0xff]  }
 0x2df   :  { %7766 = vmatpush1.bf16.msra.mxu1 %v10974_v8  ;;  %v11052_v8 = vld [vmem:[%s15329_s1 + $0x12c8] ss:$24 sps:$4 sm:$0xff]  }
 0x2e0   :  { %8258 = vmatpush1.bf16.msra.mxu0 %v10977_v9  ;;  %7767 = vmatprep.subr.bf16.mxu1 %v10982_v10  ;;  %v11055_v9 = vld [vmem:[%s15329_s1 + $0x12d0] ss:$24 sps:$4 sm:$0xff]   ;;  %v11060_v10 = vld [vmem:[%s15329_s1 + $0x12fc] ss:$24 sps:$4 sm:$0xff]  }
 0x2e1   :  { %8259 = vmatprep.subr.bf16.mxu0 %v10985_v11  ;;  %v11063_v11 = vld [vmem:[%s15329_s1 + $0x1304] ss:$24 sps:$4 sm:$0xff]  }
 0x2e3   :  { %7768 = vmatpush1.bf16.msra.mxu1 %v10980_v16  ;;  %v11058_v16 = vld [vmem:[%s15329_s1 + $0x12f8] ss:$24 sps:$4 sm:$0xff]  }
 0x2e4   :  { %8260 = vmatpush1.bf16.msra.mxu0 %v10983_v12  ;;  %7769 = vmatprep.subr.bf16.mxu1 %v10988_v13  ;;  %v11061_v12 = vld [vmem:[%s15329_s1 + $0x1300] ss:$24 sps:$4 sm:$0xff]   ;;  %v11066_v13 = vld [vmem:[%s15329_s1 + $0x132c] ss:$24 sps:$4 sm:$0xff]  }
 0x2e5   :  { %8261 = vmatprep.subr.bf16.mxu0 %v10991_v14  ;;  %v11069_v14 = vld [vmem:[%s15329_s1 + $0x1334] ss:$24 sps:$4 sm:$0xff]  }
 0x2e7   :  { %7770 = vmatpush1.bf16.msra.mxu1 %v10986_v23  ;;  %v11064_v23 = vld [vmem:[%s15329_s1 + $0x1328] ss:$24 sps:$4 sm:$0xff]  }
 0x2e8   :  { %8262 = vmatpush1.bf16.msra.mxu0 %v10989_v48  ;;  %7771 = vmatprep.subr.bf16.mxu1 %v10994_v15  ;;  %v11067_v48 = vld [vmem:[%s15329_s1 + $0x1330] ss:$24 sps:$4 sm:$0xff]   ;;  %v11072_v15 = vld [vmem:[%s15329_s1 + $0x135c] ss:$24 sps:$4 sm:$0xff]  }
 0x2e9   :  { %8263 = vmatprep.subr.bf16.mxu0 %v10997_v17  ;;  %v11075_v17 = vld [vmem:[%s15329_s1 + $0x1364] ss:$24 sps:$4 sm:$0xff]  }
 0x2eb   :  { %7772 = vmatpush1.bf16.msra.mxu1 %v10992_v19  ;;  %v11070_v19 = vld [vmem:[%s15329_s1 + $0x1358] ss:$24 sps:$4 sm:$0xff]  }
 0x2ec   :  { %8264 = vmatpush1.bf16.msra.mxu0 %v10995_v59  ;;  %7773 = vmatprep.subr.bf16.mxu1 %v11000_v20  ;;  %v11073_v59 = vld [vmem:[%s15329_s1 + $0x1360] ss:$24 sps:$4 sm:$0xff]   ;;  %v11078_v20 = vld [vmem:[%s15329_s1 + $0x138c] ss:$24 sps:$4 sm:$0xff]  }
 0x2ed   :  { %8265 = vmatprep.subr.bf16.mxu0 %v11003_v21  ;;  %v11081_v21 = vld [vmem:[%s15329_s1 + $0x1394] ss:$24 sps:$4 sm:$0xff]  }
 0x2ef   :  { %7774 = vmatpush1.bf16.msra.mxu1 %v10998_v30  ;;  %v11076_v30 = vld [vmem:[%s15329_s1 + $0x1388] ss:$24 sps:$4 sm:$0xff]  }
 0x2f0   :  { %8266 = vmatpush1.bf16.msra.mxu0 %v11001_v0  ;;  %7775 = vmatprep.subr.bf16.mxu1 %v11006_v31  ;;  %v11079_v0 = vld [vmem:[%s15329_s1 + $0x1390] ss:$24 sps:$4 sm:$0xff]   ;;  %v11084_v31 = vld [vmem:[%s15329_s1 + $0x13bc] ss:$24 sps:$4 sm:$0xff]  }
 0x2f1   :  { %8267 = vmatprep.subr.bf16.mxu0 %v11009_v58  ;;  %v11087_v58 = vld [vmem:[%s15329_s1 + $0x13c4] ss:$24 sps:$4 sm:$0xff]  }
 0x2f3   :  { %7776 = vmatpush1.bf16.msra.mxu1 %v11004_v61  ;;  %v11082_v61 = vld [vmem:[%s15329_s1 + $0x13b8] ss:$24 sps:$4 sm:$0xff]  }
 0x2f4   :  { %8268 = vmatpush1.bf16.msra.mxu0 %v11007_v34  ;;  %7777 = vmatprep.subr.bf16.mxu1 %v11012_v36  ;;  %v11085_v34 = vld [vmem:[%s15329_s1 + $0x13c0] ss:$24 sps:$4 sm:$0xff]   ;;  %v11090_v36 = vld [vmem:[%s15329_s1 + $0x13ec] ss:$24 sps:$4 sm:$0xff]  }
 0x2f5   :  { %8269 = vmatprep.subr.bf16.mxu0 %v11015_v22  ;;  %v11093_v22 = vld [vmem:[%s15329_s1 + $0x13f4] ss:$24 sps:$4 sm:$0xff]  }
 0x2f7   :  { %7778 = vmatpush1.bf16.msra.mxu1 %v11010_v24  ;;  %v11088_v24 = vld [vmem:[%s15329_s1 + $0x13e8] ss:$24 sps:$4 sm:$0xff]  }
 0x2f8   :  { %8270 = vmatpush1.bf16.msra.mxu0 %v11013_v37  ;;  %7779 = vmatprep.subr.bf16.mxu1 %v11018_v44  ;;  %v11091_v37 = vld [vmem:[%s15329_s1 + $0x13f0] ss:$24 sps:$4 sm:$0xff]   ;;  %v11096_v44 = vld [vmem:[%s15329_s1 + $0x141c] ss:$24 sps:$4 sm:$0xff]  }
 0x2f9   :  { %8271 = vmatprep.subr.bf16.mxu0 %v11021_v45  ;;  %v11099_v45 = vld [vmem:[%s15329_s1 + $0x1424] ss:$24 sps:$4 sm:$0xff]  }
 0x2fb   :  { %7780 = vmatpush1.bf16.msra.mxu1 %v11016_v46  ;;  %v11094_v46 = vld [vmem:[%s15329_s1 + $0x1418] ss:$24 sps:$4 sm:$0xff]  }
 0x2fc   :  { %8272 = vmatpush1.bf16.msra.mxu0 %v11019_v28  ;;  %7781 = vmatprep.subr.bf16.mxu1 %v11024_v47  ;;  %v11097_v28 = vld [vmem:[%s15329_s1 + $0x1420] ss:$24 sps:$4 sm:$0xff]   ;;  %v11102_v47 = vld [vmem:[%s15329_s1 + $0x144c] ss:$24 sps:$4 sm:$0xff]  }
 0x2fd   :  { %8273 = vmatprep.subr.bf16.mxu0 %v11027_v42  ;;  %v11105_v42 = vld [vmem:[%s15329_s1 + $0x1454] ss:$24 sps:$4 sm:$0xff]  }
 0x2ff   :  { %7782 = vmatpush1.bf16.msra.mxu1 %v11022_v6  ;;  %v11100_v6 = vld [vmem:[%s15329_s1 + $0x1448] ss:$24 sps:$4 sm:$0xff]  }
 0x300   :  { %8274 = vmatpush1.bf16.msra.mxu0 %v11025_v32  ;;  %7792 = vmatprep.subr.bf16.mxu1 %v11030_v50  ;;  %v11103_v32 = vld [vmem:[%s15329_s1 + $0x1450] ss:$24 sps:$4 sm:$0xff]   ;;  %v11108_v50 = vld [vmem:[%s15329_s1 + $0x147c] ss:$24 sps:$4 sm:$0xff]  }
 0x301   :  { %8284 = vmatprep.subr.bf16.mxu0 %v11033_v51  ;;  %v11111_v51 = vld [vmem:[%s15329_s1 + $0x1484] ss:$24 sps:$4 sm:$0xff]  }
 0x302   :  { %7784 = vmatmul.mubr.bf16.vlgmr.msra.gmra.mrb[4].mxu1 %v12943_v2 }
 0x303   :  { %8276 = vmatmul.mubr.bf16.vlgmr.msra.gmra.mrb[4].mxu0 %v12943_v2  ;;  %7793 = vmatpush1.bf16.msra.mxu1 %v11028_v52  ;;  %v11045_v2 = vld [vmem:[%s15329_s1 + $0x1274] ss:$24 sps:$4 sm:$0xff]   ;;  %v11106_v52 = vld [vmem:[%s15329_s1 + $0x1478] ss:$24 sps:$4 sm:$0xff]  }
 0x304   :  { %8285 = vmatpush1.bf16.msra.mxu0 %v11031_v35  ;;  %7794 = vmatprep.subr.bf16.mxu1 %v11036_v54  ;;  %v11109_v35 = vld [vmem:[%s15329_s1 + $0x1480] ss:$24 sps:$4 sm:$0xff]   ;;  %v11114_v54 = vld [vmem:[%s15329_s1 + $0x14ac] ss:$24 sps:$4 sm:$0xff]  }
 0x305   :  { %8286 = vmatprep.subr.bf16.mxu0 %v11039_v55  ;;  %7824 = vmatprep.mubr.bf16.mxu1 %v11783_v53  ;;  %v11117_v55 = vld [vmem:[%s15329_s1 + $0x14b4] ss:$24 sps:$4 sm:$0xff]  }
 0x306   :  { %8316 = vmatprep.mubr.bf16.mxu0 %v11783_v53  ;;  %v11051_v53 = vld [vmem:[%s15329_s1 + $0x12a4] ss:$24 sps:$4 sm:$0xff]  }
 0x307   :  { %7795 = vmatpush1.bf16.msra.mxu1 %v11034_v56  ;;  %v11112_v56 = vld [vmem:[%s15329_s1 + $0x14a8] ss:$24 sps:$4 sm:$0xff]  }
 0x308   :  { %8287 = vmatpush1.bf16.msra.mxu0 %v11037_v57  ;;  %7796 = vmatprep.subr.bf16.mxu1 %v11042_v62  ;;  %v11115_v57 = vld [vmem:[%s15329_s1 + $0x14b0] ss:$24 sps:$4 sm:$0xff]   ;;  %v11120_v62 = vld [vmem:[%s15329_s1 + $0x14dc] ss:$24 sps:$4 sm:$0xff]  }
 0x309   :  { %8288 = vmatprep.subr.bf16.mxu0 %v11045_v2  ;;  %v11123_v2 = vld [vmem:[%s15329_s1 + $0x14e4] ss:$24 sps:$4 sm:$0xff]  }
 0x30b   :  { %7797 = vmatpush1.bf16.msra.mxu1 %v11040_v40  ;;  %v11118_v40 = vld [vmem:[%s15329_s1 + $0x14d8] ss:$24 sps:$4 sm:$0xff]  }
 0x30c   :  { %8289 = vmatpush1.bf16.msra.mxu0 %v11043_v41  ;;  %7798 = vmatprep.subr.bf16.mxu1 %v11048_v63  ;;  %v11121_v41 = vld [vmem:[%s15329_s1 + $0x14e0] ss:$24 sps:$4 sm:$0xff]   ;;  %v11126_v63 = vld [vmem:[%s15329_s1 + $0x150c] ss:$24 sps:$4 sm:$0xff]  }
 0x30d   :  { %8290 = vmatprep.subr.bf16.mxu0 %v11051_v53  ;;  %v11129_v53 = vld [vmem:[%s15329_s1 + $0x1514] ss:$24 sps:$4 sm:$0xff]  }
 0x30f   :  { %7799 = vmatpush1.bf16.msra.mxu1 %v11046_v4  ;;  %v11124_v4 = vld [vmem:[%s15329_s1 + $0x1508] ss:$24 sps:$4 sm:$0xff]  }
 0x310   :  { %8291 = vmatpush1.bf16.msra.mxu0 %v11049_v5  ;;  %7800 = vmatprep.subr.bf16.mxu1 %v11054_v25  ;;  %v11127_v5 = vld [vmem:[%s15329_s1 + $0x1510] ss:$24 sps:$4 sm:$0xff]   ;;  %v11132_v25 = vld [vmem:[%s15329_s1 + $0x153c] ss:$24 sps:$4 sm:$0xff]  }
 0x311   :  { %8292 = vmatprep.subr.bf16.mxu0 %v11057_v26  ;;  %v11135_v26 = vld [vmem:[%s15329_s1 + $0x1544] ss:$24 sps:$4 sm:$0xff]  }
 0x313   :  { %7801 = vmatpush1.bf16.msra.mxu1 %v11052_v8  ;;  %v11130_v8 = vld [vmem:[%s15329_s1 + $0x1538] ss:$24 sps:$4 sm:$0xff]  }
 0x314   :  { %8293 = vmatpush1.bf16.msra.mxu0 %v11055_v9  ;;  %7802 = vmatprep.subr.bf16.mxu1 %v11060_v10  ;;  %v11133_v9 = vld [vmem:[%s15329_s1 + $0x1540] ss:$24 sps:$4 sm:$0xff]   ;;  %v11138_v10 = vld [vmem:[%s15329_s1 + $0x156c] ss:$24 sps:$4 sm:$0xff]  }
 0x315   :  { %8294 = vmatprep.subr.bf16.mxu0 %v11063_v11  ;;  %v11136_v11 = vld [vmem:[%s15329_s1 + $0x1568] ss:$24 sps:$4 sm:$0xff]  }
 0x317   :  { %7803 = vmatpush1.bf16.msra.mxu1 %v11058_v16  ;;  %v11139_v16 = vld [vmem:[%s15329_s1 + $0x1570] ss:$24 sps:$4 sm:$0xff]  }
 0x318   :  { %8295 = vmatpush1.bf16.msra.mxu0 %v11061_v12  ;;  %7804 = vmatprep.subr.bf16.mxu1 %v11066_v13  ;;  %v11144_v12 = vld [vmem:[%s15329_s1 + $0x159c] ss:$24 sps:$4 sm:$0xff]   ;;  %v11142_v13 = vld [vmem:[%s15329_s1 + $0x1598] ss:$24 sps:$4 sm:$0xff]  }
 0x319   :  { %8296 = vmatprep.subr.bf16.mxu0 %v11069_v14  ;;  %v11145_v14 = vld [vmem:[%s15329_s1 + $0x15a0] ss:$24 sps:$4 sm:$0xff]  }
 0x31b   :  { %7805 = vmatpush1.bf16.msra.mxu1 %v11064_v23  ;;  %v11150_v23 = vld [vmem:[%s15329_s1 + $0x15cc] ss:$24 sps:$4 sm:$0xff]  }
 0x31c   :  { %8297 = vmatpush1.bf16.msra.mxu0 %v11067_v48  ;;  %7806 = vmatprep.subr.bf16.mxu1 %v11072_v15  ;;  %v11153_v48 = vld [vmem:[%s15329_s1 + $0x15d4] ss:$24 sps:$4 sm:$0xff]   ;;  %v11148_v15 = vld [vmem:[%s15329_s1 + $0x15c8] ss:$24 sps:$4 sm:$0xff]  }
 0x31d   :  { %8298 = vmatprep.subr.bf16.mxu0 %v11075_v17  ;;  %v11151_v17 = vld [vmem:[%s15329_s1 + $0x15d0] ss:$24 sps:$4 sm:$0xff]  }
 0x31f   :  { %7807 = vmatpush1.bf16.msra.mxu1 %v11070_v19  ;;  %v11156_v19 = vld [vmem:[%s15329_s1 + $0x15fc] ss:$24 sps:$4 sm:$0xff]  }
 0x320   :  { %8299 = vmatpush1.bf16.msra.mxu0 %v11073_v59  ;;  %7808 = vmatprep.subr.bf16.mxu1 %v11078_v20  ;;  %v11159_v59 = vld [vmem:[%s15329_s1 + $0x1604] ss:$24 sps:$4 sm:$0xff]   ;;  %v11154_v20 = vld [vmem:[%s15329_s1 + $0x15f8] ss:$24 sps:$4 sm:$0xff]  }
 0x321   :  { %8300 = vmatprep.subr.bf16.mxu0 %v11081_v21  ;;  %v11157_v21 = vld [vmem:[%s15329_s1 + $0x1600] ss:$24 sps:$4 sm:$0xff]  }
 0x323   :  { %7809 = vmatpush1.bf16.msra.mxu1 %v11076_v30  ;;  %v11162_v30 = vld [vmem:[%s15329_s1 + $0x162c] ss:$24 sps:$4 sm:$0xff]  }
 0x324   :  { %8301 = vmatpush1.bf16.msra.mxu0 %v11079_v0  ;;  %7810 = vmatprep.subr.bf16.mxu1 %v11084_v31  ;;  %v11165_v0 = vld [vmem:[%s15329_s1 + $0x1634] ss:$24 sps:$4 sm:$0xff]   ;;  %v11160_v31 = vld [vmem:[%s15329_s1 + $0x1628] ss:$24 sps:$4 sm:$0xff]  }
 0x325   :  { %8302 = vmatprep.subr.bf16.mxu0 %v11087_v58  ;;  %v11163_v58 = vld [vmem:[%s15329_s1 + $0x1630] ss:$24 sps:$4 sm:$0xff]  }
 0x327   :  { %7811 = vmatpush1.bf16.msra.mxu1 %v11082_v61  ;;  %v11168_v61 = vld [vmem:[%s15329_s1 + $0x165c] ss:$24 sps:$4 sm:$0xff]  }
 0x328   :  { %8303 = vmatpush1.bf16.msra.mxu0 %v11085_v34  ;;  %7812 = vmatprep.subr.bf16.mxu1 %v11090_v36  ;;  %v11171_v34 = vld [vmem:[%s15329_s1 + $0x1664] ss:$24 sps:$4 sm:$0xff]   ;;  %v11166_v36 = vld [vmem:[%s15329_s1 + $0x1658] ss:$24 sps:$4 sm:$0xff]  }
 0x329   :  { %8304 = vmatprep.subr.bf16.mxu0 %v11093_v22  ;;  %v11169_v22 = vld [vmem:[%s15329_s1 + $0x1660] ss:$24 sps:$4 sm:$0xff]  }
 0x32b   :  { %7813 = vmatpush1.bf16.msra.mxu1 %v11088_v24  ;;  %v11174_v24 = vld [vmem:[%s15329_s1 + $0x168c] ss:$24 sps:$4 sm:$0xff]  }
 0x32c   :  { %8305 = vmatpush1.bf16.msra.mxu0 %v11091_v37  ;;  %7814 = vmatprep.subr.bf16.mxu1 %v11096_v44  ;;  %v11177_v37 = vld [vmem:[%s15329_s1 + $0x1694] ss:$24 sps:$4 sm:$0xff]   ;;  %v11172_v44 = vld [vmem:[%s15329_s1 + $0x1688] ss:$24 sps:$4 sm:$0xff]  }
 0x32d   :  { %8306 = vmatprep.subr.bf16.mxu0 %v11099_v45  ;;  %v11175_v45 = vld [vmem:[%s15329_s1 + $0x1690] ss:$24 sps:$4 sm:$0xff]  }
 0x32f   :  { %7815 = vmatpush1.bf16.msra.mxu1 %v11094_v46  ;;  %v11180_v46 = vld [vmem:[%s15329_s1 + $0x16bc] ss:$24 sps:$4 sm:$0xff]  }
 0x330   :  { %8307 = vmatpush1.bf16.msra.mxu0 %v11097_v28  ;;  %7816 = vmatprep.subr.bf16.mxu1 %v11102_v47  ;;  %v11183_v28 = vld [vmem:[%s15329_s1 + $0x16c4] ss:$24 sps:$4 sm:$0xff]   ;;  %v11178_v47 = vld [vmem:[%s15329_s1 + $0x16b8] ss:$24 sps:$4 sm:$0xff]  }
 0x331   :  { %8308 = vmatprep.subr.bf16.mxu0 %v11105_v42  ;;  %v11181_v42 = vld [vmem:[%s15329_s1 + $0x16c0] ss:$24 sps:$4 sm:$0xff]  }
 0x333   :  { %7817 = vmatpush1.bf16.msra.mxu1 %v11100_v6  ;;  %v11186_v6 = vld [vmem:[%s15329_s1 + $0x16ec] ss:$24 sps:$4 sm:$0xff]  }
 0x334   :  { %8309 = vmatpush1.bf16.msra.mxu0 %v11103_v32  ;;  %7818 = vmatprep.subr.bf16.mxu1 %v11108_v50  ;;  %v11189_v32 = vld [vmem:[%s15329_s1 + $0x16f4] ss:$24 sps:$4 sm:$0xff]   ;;  %v11184_v50 = vld [vmem:[%s15329_s1 + $0x16e8] ss:$24 sps:$4 sm:$0xff]  }
 0x335   :  { %8310 = vmatprep.subr.bf16.mxu0 %v11111_v51  ;;  %v11187_v51 = vld [vmem:[%s15329_s1 + $0x16f0] ss:$24 sps:$4 sm:$0xff]  }
 0x337   :  { %7819 = vmatpush1.bf16.msra.mxu1 %v11106_v52  ;;  %v11192_v52 = vld [vmem:[%s15329_s1 + $0x171c] ss:$24 sps:$4 sm:$0xff]  }
 0x338   :  { %8311 = vmatpush1.bf16.msra.mxu0 %v11109_v35  ;;  %7820 = vmatprep.subr.bf16.mxu1 %v11114_v54  ;;  %v11195_v35 = vld [vmem:[%s15329_s1 + $0x1724] ss:$24 sps:$4 sm:$0xff]   ;;  %v11190_v54 = vld [vmem:[%s15329_s1 + $0x1718] ss:$24 sps:$4 sm:$0xff]  }
 0x339   :  { %8312 = vmatprep.subr.bf16.mxu0 %v11117_v55  ;;  %v11193_v55 = vld [vmem:[%s15329_s1 + $0x1720] ss:$24 sps:$4 sm:$0xff]  }
 0x33b   :  { %7821 = vmatpush1.bf16.msra.mxu1 %v11112_v56  ;;  %v11198_v56 = vld [vmem:[%s15329_s1 + $0x174c] ss:$24 sps:$4 sm:$0xff]  }
 0x33c   :  { %8313 = vmatpush1.bf16.msra.mxu0 %v11115_v57  ;;  %7822 = vmatprep.subr.bf16.mxu1 %v11120_v62  ;;  %v11201_v57 = vld [vmem:[%s15329_s1 + $0x1754] ss:$24 sps:$4 sm:$0xff]   ;;  %v11196_v62 = vld [vmem:[%s15329_s1 + $0x1748] ss:$24 sps:$4 sm:$0xff]  }
 0x33d   :  { %8314 = vmatprep.subr.bf16.mxu0 %v11123_v2  ;;  %v11199_v2 = vld [vmem:[%s15329_s1 + $0x1750] ss:$24 sps:$4 sm:$0xff]  }
 0x33f   :  { %7823 = vmatpush1.bf16.msra.mxu1 %v11118_v40  ;;  %v11204_v40 = vld [vmem:[%s15329_s1 + $0x177c] ss:$24 sps:$4 sm:$0xff]  }
 0x340   :  { %8315 = vmatpush1.bf16.msra.mxu0 %v11121_v41  ;;  %7833 = vmatprep.subr.bf16.mxu1 %v11126_v63  ;;  %v11207_v41 = vld [vmem:[%s15329_s1 + $0x1784] ss:$24 sps:$4 sm:$0xff]   ;;  %v11202_v63 = vld [vmem:[%s15329_s1 + $0x1778] ss:$24 sps:$4 sm:$0xff]  }
 0x341   :  { %8325 = vmatprep.subr.bf16.mxu0 %v11129_v53  ;;  %v11205_v53 = vld [vmem:[%s15329_s1 + $0x1780] ss:$24 sps:$4 sm:$0xff]  }
 0x342   :  { %7825 = vmatmul.mubr.bf16.vlgmr.msra.gmra.mrb[4].mxu1 %v11837_v7 }
 0x343   :  { %8317 = vmatmul.mubr.bf16.vlgmr.msra.gmra.mrb[4].mxu0 %v11837_v7  ;;  %7834 = vmatpush1.bf16.msra.mxu1 %v11124_v4  ;;  %v11141_v7 = vld [vmem:[%s15329_s1 + $0x1574] ss:$24 sps:$4 sm:$0xff]  }
 0x344   :  { %8326 = vmatpush1.bf16.msra.mxu0 %v11127_v5  ;;  %7835 = vmatprep.subr.bf16.mxu1 %v11132_v25  ;;  %v11210_v4 = vld [vmem:[%s15329_s1 + $0x17ac] ss:$24 sps:$4 sm:$0xff]   ;;  %v11208_v25 = vld [vmem:[%s15329_s1 + $0x17a8] ss:$24 sps:$4 sm:$0xff]  }
 0x345   :  { %8327 = vmatprep.subr.bf16.mxu0 %v11135_v26  ;;  %7865 = vmatprep.mubr.bf16.mxu1 %v11938_v38  ;;  %v11213_v5 = vld [vmem:[%s15329_s1 + $0x17b4] ss:$24 sps:$4 sm:$0xff]   ;;  %v11211_v26 = vld [vmem:[%s15329_s1 + $0x17b0] ss:$24 sps:$4 sm:$0xff]  }
 0x346   :  { %8357 = vmatprep.mubr.bf16.mxu0 %v11938_v38  ;;  %v11147_v38 = vld [vmem:[%s15329_s1 + $0x15a4] ss:$24 sps:$4 sm:$0xff]  }
 0x347   :  { %7836 = vmatpush1.bf16.msra.mxu1 %v11130_v8  ;;  %v11216_v8 = vld [vmem:[%s15329_s1 + $0x17dc] ss:$24 sps:$4 sm:$0xff]  }
 0x348   :  { %8328 = vmatpush1.bf16.msra.mxu0 %v11133_v9  ;;  %7837 = vmatprep.subr.bf16.mxu1 %v11138_v10  ;;  %v11219_v9 = vld [vmem:[%s15329_s1 + $0x17e4] ss:$24 sps:$4 sm:$0xff]   ;;  %v11214_v10 = vld [vmem:[%s15329_s1 + $0x17d8] ss:$24 sps:$4 sm:$0xff]  }
 0x349   :  { %8329 = vmatprep.subr.bf16.mxu0 %v11141_v7  ;;  %v11217_v7 = vld [vmem:[%s15329_s1 + $0x17e0] ss:$24 sps:$4 sm:$0xff]  }
 0x34b   :  { %7838 = vmatpush1.bf16.msra.mxu1 %v11136_v11  ;;  %v11222_v11 = vld [vmem:[%s15329_s1 + $0x180c] ss:$24 sps:$4 sm:$0xff]  }
 0x34c   :  { %8330 = vmatpush1.bf16.msra.mxu0 %v11139_v16  ;;  %7839 = vmatprep.subr.bf16.mxu1 %v11144_v12  ;;  %v11225_v16 = vld [vmem:[%s15329_s1 + $0x1814] ss:$24 sps:$4 sm:$0xff]   ;;  %v11220_v12 = vld [vmem:[%s15329_s1 + $0x1808] ss:$24 sps:$4 sm:$0xff]  }
 0x34d   :  { %8331 = vmatprep.subr.bf16.mxu0 %v11147_v38  ;;  %v11223_v38 = vld [vmem:[%s15329_s1 + $0x1810] ss:$24 sps:$4 sm:$0xff]  }
 0x34f   :  { %7840 = vmatpush1.bf16.msra.mxu1 %v11142_v13  ;;  %v11228_v13 = vld [vmem:[%s15329_s1 + $0x183c] ss:$24 sps:$4 sm:$0xff]  }
 0x350   :  { %8332 = vmatpush1.bf16.msra.mxu0 %v11145_v14  ;;  %7841 = vmatprep.subr.bf16.mxu1 %v11150_v23  ;;  %v11231_v14 = vld [vmem:[%s15329_s1 + $0x1844] ss:$24 sps:$4 sm:$0xff]   ;;  %v11226_v23 = vld [vmem:[%s15329_s1 + $0x1838] ss:$24 sps:$4 sm:$0xff]  }
 0x351   :  { %8333 = vmatprep.subr.bf16.mxu0 %v11153_v48  ;;  %v11229_v48 = vld [vmem:[%s15329_s1 + $0x1840] ss:$24 sps:$4 sm:$0xff]  }
 0x353   :  { %7842 = vmatpush1.bf16.msra.mxu1 %v11148_v15  ;;  %v11234_v15 = vld [vmem:[%s15329_s1 + $0x186c] ss:$24 sps:$4 sm:$0xff]  }
 0x354   :  { %8334 = vmatpush1.bf16.msra.mxu0 %v11151_v17  ;;  %7843 = vmatprep.subr.bf16.mxu1 %v11156_v19  ;;  %v11232_v17 = vld [vmem:[%s15329_s1 + $0x1868] ss:$24 sps:$4 sm:$0xff]  }
 0x355   :  { %8335 = vmatprep.subr.bf16.mxu0 %v11159_v59  ;;  %v11235_v19 = vld [vmem:[%s15329_s1 + $0x1870] ss:$24 sps:$4 sm:$0xff]   ;;  %v11240_v59 = vld [vmem:[%s15329_s1 + $0x189c] ss:$24 sps:$4 sm:$0xff]  }
 0x357   :  { %7844 = vmatpush1.bf16.msra.mxu1 %v11154_v20  ;;  %v11238_v20 = vld [vmem:[%s15329_s1 + $0x1898] ss:$24 sps:$4 sm:$0xff]  }
 0x358   :  { %8336 = vmatpush1.bf16.msra.mxu0 %v11157_v21  ;;  %7845 = vmatprep.subr.bf16.mxu1 %v11162_v30  ;;  %v11241_v21 = vld [vmem:[%s15329_s1 + $0x18a0] ss:$24 sps:$4 sm:$0xff]   ;;  %v11246_v30 = vld [vmem:[%s15329_s1 + $0x18cc] ss:$24 sps:$4 sm:$0xff]  }
 0x359   :  { %8337 = vmatprep.subr.bf16.mxu0 %v11165_v0  ;;  %v11249_v0 = vld [vmem:[%s15329_s1 + $0x18d4] ss:$24 sps:$4 sm:$0xff]  }
 0x35b   :  { %7846 = vmatpush1.bf16.msra.mxu1 %v11160_v31  ;;  %v11244_v31 = vld [vmem:[%s15329_s1 + $0x18c8] ss:$24 sps:$4 sm:$0xff]  }
 0x35c   :  { %8338 = vmatpush1.bf16.msra.mxu0 %v11163_v58  ;;  %7847 = vmatprep.subr.bf16.mxu1 %v11168_v61  ;;  %v11247_v58 = vld [vmem:[%s15329_s1 + $0x18d0] ss:$24 sps:$4 sm:$0xff]   ;;  %v11252_v61 = vld [vmem:[%s15329_s1 + $0x18fc] ss:$24 sps:$4 sm:$0xff]  }
 0x35d   :  { %8339 = vmatprep.subr.bf16.mxu0 %v11171_v34  ;;  %v11255_v34 = vld [vmem:[%s15329_s1 + $0x1904] ss:$24 sps:$4 sm:$0xff]  }
 0x35f   :  { %7848 = vmatpush1.bf16.msra.mxu1 %v11166_v36  ;;  %v11250_v36 = vld [vmem:[%s15329_s1 + $0x18f8] ss:$24 sps:$4 sm:$0xff]  }
 0x360   :  { %8340 = vmatpush1.bf16.msra.mxu0 %v11169_v22  ;;  %7849 = vmatprep.subr.bf16.mxu1 %v11174_v24  ;;  %v11253_v22 = vld [vmem:[%s15329_s1 + $0x1900] ss:$24 sps:$4 sm:$0xff]   ;;  %v11258_v24 = vld [vmem:[%s15329_s1 + $0x192c] ss:$24 sps:$4 sm:$0xff]  }
 0x361   :  { %8341 = vmatprep.subr.bf16.mxu0 %v11177_v37  ;;  %v11261_v37 = vld [vmem:[%s15329_s1 + $0x1934] ss:$24 sps:$4 sm:$0xff]  }
 0x363   :  { %7850 = vmatpush1.bf16.msra.mxu1 %v11172_v44  ;;  %v11256_v44 = vld [vmem:[%s15329_s1 + $0x1928] ss:$24 sps:$4 sm:$0xff]  }
 0x364   :  { %8342 = vmatpush1.bf16.msra.mxu0 %v11175_v45  ;;  %7851 = vmatprep.subr.bf16.mxu1 %v11180_v46  ;;  %v11259_v45 = vld [vmem:[%s15329_s1 + $0x1930] ss:$24 sps:$4 sm:$0xff]   ;;  %v11264_v46 = vld [vmem:[%s15329_s1 + $0x195c] ss:$24 sps:$4 sm:$0xff]  }
 0x365   :  { %8343 = vmatprep.subr.bf16.mxu0 %v11183_v28  ;;  %v11267_v28 = vld [vmem:[%s15329_s1 + $0x1964] ss:$24 sps:$4 sm:$0xff]  }
 0x367   :  { %7852 = vmatpush1.bf16.msra.mxu1 %v11178_v47  ;;  %v11262_v47 = vld [vmem:[%s15329_s1 + $0x1958] ss:$24 sps:$4 sm:$0xff]  }
 0x368   :  { %8344 = vmatpush1.bf16.msra.mxu0 %v11181_v42  ;;  %7853 = vmatprep.subr.bf16.mxu1 %v11186_v6  ;;  %v11265_v42 = vld [vmem:[%s15329_s1 + $0x1960] ss:$24 sps:$4 sm:$0xff]   ;;  %v11270_v6 = vld [vmem:[%s15329_s1 + $0x198c] ss:$24 sps:$4 sm:$0xff]  }
 0x369   :  { %8345 = vmatprep.subr.bf16.mxu0 %v11189_v32  ;;  %v11273_v32 = vld [vmem:[%s15329_s1 + $0x1994] ss:$24 sps:$4 sm:$0xff]  }
 0x36b   :  { %7854 = vmatpush1.bf16.msra.mxu1 %v11184_v50  ;;  %v11268_v50 = vld [vmem:[%s15329_s1 + $0x1988] ss:$24 sps:$4 sm:$0xff]  }
 0x36c   :  { %8346 = vmatpush1.bf16.msra.mxu0 %v11187_v51  ;;  %7855 = vmatprep.subr.bf16.mxu1 %v11192_v52  ;;  %v11271_v51 = vld [vmem:[%s15329_s1 + $0x1990] ss:$24 sps:$4 sm:$0xff]   ;;  %v11276_v52 = vld [vmem:[%s15329_s1 + $0x19bc] ss:$24 sps:$4 sm:$0xff]  }
 0x36d   :  { %8347 = vmatprep.subr.bf16.mxu0 %v11195_v35  ;;  %v11279_v35 = vld [vmem:[%s15329_s1 + $0x19c4] ss:$24 sps:$4 sm:$0xff]  }
 0x36f   :  { %7856 = vmatpush1.bf16.msra.mxu1 %v11190_v54  ;;  %v11274_v54 = vld [vmem:[%s15329_s1 + $0x19b8] ss:$24 sps:$4 sm:$0xff]  }
 0x370   :  { %8348 = vmatpush1.bf16.msra.mxu0 %v11193_v55  ;;  %7857 = vmatprep.subr.bf16.mxu1 %v11198_v56  ;;  %v11277_v55 = vld [vmem:[%s15329_s1 + $0x19c0] ss:$24 sps:$4 sm:$0xff]   ;;  %v11282_v56 = vld [vmem:[%s15329_s1 + $0x19ec] ss:$24 sps:$4 sm:$0xff]  }
 0x371   :  { %8349 = vmatprep.subr.bf16.mxu0 %v11201_v57  ;;  %v11285_v57 = vld [vmem:[%s15329_s1 + $0x19f4] ss:$24 sps:$4 sm:$0xff]  }
 0x373   :  { %7858 = vmatpush1.bf16.msra.mxu1 %v11196_v62  ;;  %v11280_v62 = vld [vmem:[%s15329_s1 + $0x19e8] ss:$24 sps:$4 sm:$0xff]  }
 0x374   :  { %8350 = vmatpush1.bf16.msra.mxu0 %v11199_v2  ;;  %7859 = vmatprep.subr.bf16.mxu1 %v11204_v40  ;;  %v11283_v2 = vld [vmem:[%s15329_s1 + $0x19f0] ss:$24 sps:$4 sm:$0xff]   ;;  %v11288_v40 = vld [vmem:[%s15329_s1 + $0x1a1c] ss:$24 sps:$4 sm:$0xff]  }
 0x375   :  { %8351 = vmatprep.subr.bf16.mxu0 %v11207_v41  ;;  %v11291_v41 = vld [vmem:[%s15329_s1 + $0x1a24] ss:$24 sps:$4 sm:$0xff]  }
 0x377   :  { %7860 = vmatpush1.bf16.msra.mxu1 %v11202_v63  ;;  %v11286_v63 = vld [vmem:[%s15329_s1 + $0x1a18] ss:$24 sps:$4 sm:$0xff]  }
 0x378   :  { %8352 = vmatpush1.bf16.msra.mxu0 %v11205_v53  ;;  %7861 = vmatprep.subr.bf16.mxu1 %v11210_v4  ;;  %v11289_v53 = vld [vmem:[%s15329_s1 + $0x1a20] ss:$24 sps:$4 sm:$0xff]   ;;  %v11294_v4 = vld [vmem:[%s15329_s1 + $0x1a4c] ss:$24 sps:$4 sm:$0xff]  }
 0x379   :  { %8353 = vmatprep.subr.bf16.mxu0 %v11213_v5  ;;  %v11297_v5 = vld [vmem:[%s15329_s1 + $0x1a54] ss:$24 sps:$4 sm:$0xff]  }
 0x37b   :  { %7862 = vmatpush1.bf16.msra.mxu1 %v11208_v25  ;;  %v11292_v25 = vld [vmem:[%s15329_s1 + $0x1a48] ss:$24 sps:$4 sm:$0xff]  }
 0x37c   :  { %8354 = vmatpush1.bf16.msra.mxu0 %v11211_v26  ;;  %7863 = vmatprep.subr.bf16.mxu1 %v11216_v8  ;;  %v11295_v26 = vld [vmem:[%s15329_s1 + $0x1a50] ss:$24 sps:$4 sm:$0xff]   ;;  %v11300_v8 = vld [vmem:[%s15329_s1 + $0x1a7c] ss:$24 sps:$4 sm:$0xff]  }
 0x37d   :  { %8355 = vmatprep.subr.bf16.mxu0 %v11219_v9  ;;  %v11303_v9 = vld [vmem:[%s15329_s1 + $0x1a84] ss:$24 sps:$4 sm:$0xff]  }
 0x37f   :  { %7864 = vmatpush1.bf16.msra.mxu1 %v11214_v10  ;;  %v11298_v10 = vld [vmem:[%s15329_s1 + $0x1a78] ss:$24 sps:$4 sm:$0xff]  }
 0x380   :  { %8356 = vmatpush1.bf16.msra.mxu0 %v11217_v7  ;;  %7874 = vmatprep.subr.bf16.mxu1 %v11222_v11  ;;  %v11301_v7 = vld [vmem:[%s15329_s1 + $0x1a80] ss:$24 sps:$4 sm:$0xff]   ;;  %v11306_v11 = vld [vmem:[%s15329_s1 + $0x1aac] ss:$24 sps:$4 sm:$0xff]  }
 0x381   :  { %8366 = vmatprep.subr.bf16.mxu0 %v11225_v16  ;;  %v11309_v16 = vld [vmem:[%s15329_s1 + $0x1ab4] ss:$24 sps:$4 sm:$0xff]  }
 0x382   :  { %7866 = vmatmul.mubr.bf16.vlgmr.msra.gmra.mrb[4].mxu1 %v12062_v18 }
 0x383   :  { %8358 = vmatmul.mubr.bf16.vlgmr.msra.gmra.mrb[4].mxu0 %v12062_v18  ;;  %7875 = vmatpush1.bf16.msra.mxu1 %v11220_v12  ;;  %v11237_v18 = vld [vmem:[%s15329_s1 + $0x1874] ss:$24 sps:$4 sm:$0xff]   ;;  %v11304_v12 = vld [vmem:[%s15329_s1 + $0x1aa8] ss:$24 sps:$4 sm:$0xff]  }
 0x384   :  { %8367 = vmatpush1.bf16.msra.mxu0 %v11223_v38  ;;  %7876 = vmatprep.subr.bf16.mxu1 %v11228_v13  ;;  %v11307_v38 = vld [vmem:[%s15329_s1 + $0x1ab0] ss:$24 sps:$4 sm:$0xff]   ;;  %v11312_v13 = vld [vmem:[%s15329_s1 + $0x1adc] ss:$24 sps:$4 sm:$0xff]  }
 0x385   :  { %8368 = vmatprep.subr.bf16.mxu0 %v11231_v14  ;;  %7906 = vmatprep.mubr.bf16.mxu1 %v12097_v27  ;;  %v11315_v14 = vld [vmem:[%s15329_s1 + $0x1ae4] ss:$24 sps:$4 sm:$0xff]  }
 0x386   :  { %8398 = vmatprep.mubr.bf16.mxu0 %v12097_v27  ;;  %v11243_v27 = vld [vmem:[%s15329_s1 + $0x18a4] ss:$24 sps:$4 sm:$0xff]  }
 0x387   :  { %7877 = vmatpush1.bf16.msra.mxu1 %v11226_v23  ;;  %v11310_v23 = vld [vmem:[%s15329_s1 + $0x1ad8] ss:$24 sps:$4 sm:$0xff]  }
 0x388   :  { %8369 = vmatpush1.bf16.msra.mxu0 %v11229_v48  ;;  %7878 = vmatprep.subr.bf16.mxu1 %v11234_v15  ;;  %v11313_v48 = vld [vmem:[%s15329_s1 + $0x1ae0] ss:$24 sps:$4 sm:$0xff]   ;;  %v11318_v15 = vld [vmem:[%s15329_s1 + $0x1b0c] ss:$24 sps:$4 sm:$0xff]  }
 0x389   :  { %8370 = vmatprep.subr.bf16.mxu0 %v11237_v18  ;;  %v11321_v18 = vld [vmem:[%s15329_s1 + $0x1b14] ss:$24 sps:$4 sm:$0xff]  }
 0x38b   :  { %7879 = vmatpush1.bf16.msra.mxu1 %v11232_v17  ;;  %v11316_v17 = vld [vmem:[%s15329_s1 + $0x1b08] ss:$24 sps:$4 sm:$0xff]  }
 0x38c   :  { %8371 = vmatpush1.bf16.msra.mxu0 %v11235_v19  ;;  %7880 = vmatprep.subr.bf16.mxu1 %v11240_v59  ;;  %v11319_v19 = vld [vmem:[%s15329_s1 + $0x1b10] ss:$24 sps:$4 sm:$0xff]   ;;  %v11324_v59 = vld [vmem:[%s15329_s1 + $0x1b3c] ss:$24 sps:$4 sm:$0xff]  }
 0x38d   :  { %8372 = vmatprep.subr.bf16.mxu0 %v11243_v27  ;;  %v11327_v27 = vld [vmem:[%s15329_s1 + $0x1b44] ss:$24 sps:$4 sm:$0xff]  }
 0x38f   :  { %7881 = vmatpush1.bf16.msra.mxu1 %v11238_v20  ;;  %v11322_v20 = vld [vmem:[%s15329_s1 + $0x1b38] ss:$24 sps:$4 sm:$0xff]  }
 0x390   :  { %8373 = vmatpush1.bf16.msra.mxu0 %v11241_v21  ;;  %7882 = vmatprep.subr.bf16.mxu1 %v11246_v30  ;;  %v11325_v21 = vld [vmem:[%s15329_s1 + $0x1b40] ss:$24 sps:$4 sm:$0xff]   ;;  %v11330_v30 = vld [vmem:[%s15329_s1 + $0x1b6c] ss:$24 sps:$4 sm:$0xff]  }
 0x391   :  { %8374 = vmatprep.subr.bf16.mxu0 %v11249_v0  ;;  %v11328_v0 = vld [vmem:[%s15329_s1 + $0x1b68] ss:$24 sps:$4 sm:$0xff]  }
 0x393   :  { %7883 = vmatpush1.bf16.msra.mxu1 %v11244_v31  ;;  %v11331_v31 = vld [vmem:[%s15329_s1 + $0x1b70] ss:$24 sps:$4 sm:$0xff]  }
 0x394   :  { %8375 = vmatpush1.bf16.msra.mxu0 %v11247_v58  ;;  %7884 = vmatprep.subr.bf16.mxu1 %v11252_v61  ;;  %v11336_v58 = vld [vmem:[%s15329_s1 + $0x1b9c] ss:$24 sps:$4 sm:$0xff]   ;;  %v11334_v61 = vld [vmem:[%s15329_s1 + $0x1b98] ss:$24 sps:$4 sm:$0xff]  }
 0x395   :  { %8376 = vmatprep.subr.bf16.mxu0 %v11255_v34  ;;  %v11337_v34 = vld [vmem:[%s15329_s1 + $0x1ba0] ss:$24 sps:$4 sm:$0xff]  }
 0x397   :  { %7885 = vmatpush1.bf16.msra.mxu1 %v11250_v36  ;;  %v11342_v36 = vld [vmem:[%s15329_s1 + $0x1bcc] ss:$24 sps:$4 sm:$0xff]  }
 0x398   :  { %8377 = vmatpush1.bf16.msra.mxu0 %v11253_v22  ;;  %7886 = vmatprep.subr.bf16.mxu1 %v11258_v24  ;;  %v11345_v22 = vld [vmem:[%s15329_s1 + $0x1bd4] ss:$24 sps:$4 sm:$0xff]   ;;  %v11340_v24 = vld [vmem:[%s15329_s1 + $0x1bc8] ss:$24 sps:$4 sm:$0xff]  }
 0x399   :  { %8378 = vmatprep.subr.bf16.mxu0 %v11261_v37  ;;  %v11343_v37 = vld [vmem:[%s15329_s1 + $0x1bd0] ss:$24 sps:$4 sm:$0xff]  }
 0x39b   :  { %7887 = vmatpush1.bf16.msra.mxu1 %v11256_v44  ;;  %v11348_v44 = vld [vmem:[%s15329_s1 + $0x1bfc] ss:$24 sps:$4 sm:$0xff]  }
 0x39c   :  { %8379 = vmatpush1.bf16.msra.mxu0 %v11259_v45  ;;  %7888 = vmatprep.subr.bf16.mxu1 %v11264_v46  ;;  %v11351_v45 = vld [vmem:[%s15329_s1 + $0x1c04] ss:$24 sps:$4 sm:$0xff]   ;;  %v11346_v46 = vld [vmem:[%s15329_s1 + $0x1bf8] ss:$24 sps:$4 sm:$0xff]  }
 0x39d   :  { %8380 = vmatprep.subr.bf16.mxu0 %v11267_v28  ;;  %v11349_v28 = vld [vmem:[%s15329_s1 + $0x1c00] ss:$24 sps:$4 sm:$0xff]  }
 0x39f   :  { %7889 = vmatpush1.bf16.msra.mxu1 %v11262_v47  ;;  %v11354_v47 = vld [vmem:[%s15329_s1 + $0x1c2c] ss:$24 sps:$4 sm:$0xff]  }
 0x3a0   :  { %8381 = vmatpush1.bf16.msra.mxu0 %v11265_v42  ;;  %7890 = vmatprep.subr.bf16.mxu1 %v11270_v6  ;;  %v11357_v42 = vld [vmem:[%s15329_s1 + $0x1c34] ss:$24 sps:$4 sm:$0xff]   ;;  %v11352_v6 = vld [vmem:[%s15329_s1 + $0x1c28] ss:$24 sps:$4 sm:$0xff]  }
 0x3a1   :  { %8382 = vmatprep.subr.bf16.mxu0 %v11273_v32  ;;  %v11355_v32 = vld [vmem:[%s15329_s1 + $0x1c30] ss:$24 sps:$4 sm:$0xff]  }
 0x3a3   :  { %7891 = vmatpush1.bf16.msra.mxu1 %v11268_v50  ;;  %v11360_v50 = vld [vmem:[%s15329_s1 + $0x1c5c] ss:$24 sps:$4 sm:$0xff]  }
 0x3a4   :  { %8383 = vmatpush1.bf16.msra.mxu0 %v11271_v51  ;;  %7892 = vmatprep.subr.bf16.mxu1 %v11276_v52  ;;  %v11363_v51 = vld [vmem:[%s15329_s1 + $0x1c64] ss:$24 sps:$4 sm:$0xff]   ;;  %v11358_v52 = vld [vmem:[%s15329_s1 + $0x1c58] ss:$24 sps:$4 sm:$0xff]  }
 0x3a5   :  { %8384 = vmatprep.subr.bf16.mxu0 %v11279_v35  ;;  %v11361_v35 = vld [vmem:[%s15329_s1 + $0x1c60] ss:$24 sps:$4 sm:$0xff]  }
 0x3a7   :  { %7893 = vmatpush1.bf16.msra.mxu1 %v11274_v54  ;;  %v11366_v54 = vld [vmem:[%s15329_s1 + $0x1c8c] ss:$24 sps:$4 sm:$0xff]  }
 0x3a8   :  { %8385 = vmatpush1.bf16.msra.mxu0 %v11277_v55  ;;  %7894 = vmatprep.subr.bf16.mxu1 %v11282_v56  ;;  %v11369_v55 = vld [vmem:[%s15329_s1 + $0x1c94] ss:$24 sps:$4 sm:$0xff]   ;;  %v11364_v56 = vld [vmem:[%s15329_s1 + $0x1c88] ss:$24 sps:$4 sm:$0xff]  }
 0x3a9   :  { %8386 = vmatprep.subr.bf16.mxu0 %v11285_v57  ;;  %v11367_v57 = vld [vmem:[%s15329_s1 + $0x1c90] ss:$24 sps:$4 sm:$0xff]  }
 0x3ab   :  { %7895 = vmatpush1.bf16.msra.mxu1 %v11280_v62  ;;  %v11372_v62 = vld [vmem:[%s15329_s1 + $0x1cbc] ss:$24 sps:$4 sm:$0xff]  }
 0x3ac   :  { %8387 = vmatpush1.bf16.msra.mxu0 %v11283_v2  ;;  %7896 = vmatprep.subr.bf16.mxu1 %v11288_v40  ;;  %v11375_v2 = vld [vmem:[%s15329_s1 + $0x1cc4] ss:$24 sps:$4 sm:$0xff]   ;;  %v11370_v40 = vld [vmem:[%s15329_s1 + $0x1cb8] ss:$24 sps:$4 sm:$0xff]  }
 0x3ad   :  { %8388 = vmatprep.subr.bf16.mxu0 %v11291_v41  ;;  %v11373_v41 = vld [vmem:[%s15329_s1 + $0x1cc0] ss:$24 sps:$4 sm:$0xff]  }
 0x3af   :  { %7897 = vmatpush1.bf16.msra.mxu1 %v11286_v63  ;;  %v11378_v63 = vld [vmem:[%s15329_s1 + $0x1cec] ss:$24 sps:$4 sm:$0xff]  }
 0x3b0   :  { %8389 = vmatpush1.bf16.msra.mxu0 %v11289_v53  ;;  %7898 = vmatprep.subr.bf16.mxu1 %v11294_v4  ;;  %v11381_v53 = vld [vmem:[%s15329_s1 + $0x1cf4] ss:$24 sps:$4 sm:$0xff]   ;;  %v11376_v4 = vld [vmem:[%s15329_s1 + $0x1ce8] ss:$24 sps:$4 sm:$0xff]  }
 0x3b1   :  { %8390 = vmatprep.subr.bf16.mxu0 %v11297_v5  ;;  %v11379_v5 = vld [vmem:[%s15329_s1 + $0x1cf0] ss:$24 sps:$4 sm:$0xff]  }
 0x3b3   :  { %7899 = vmatpush1.bf16.msra.mxu1 %v11292_v25  ;;  %v11384_v25 = vld [vmem:[%s15329_s1 + $0x1d1c] ss:$24 sps:$4 sm:$0xff]  }
 0x3b4   :  { %8391 = vmatpush1.bf16.msra.mxu0 %v11295_v26  ;;  %7900 = vmatprep.subr.bf16.mxu1 %v11300_v8  ;;  %v11387_v26 = vld [vmem:[%s15329_s1 + $0x1d24] ss:$24 sps:$4 sm:$0xff]   ;;  %v11382_v8 = vld [vmem:[%s15329_s1 + $0x1d18] ss:$24 sps:$4 sm:$0xff]  }
 0x3b5   :  { %8392 = vmatprep.subr.bf16.mxu0 %v11303_v9  ;;  %v11385_v9 = vld [vmem:[%s15329_s1 + $0x1d20] ss:$24 sps:$4 sm:$0xff]  }
 0x3b7   :  { %7901 = vmatpush1.bf16.msra.mxu1 %v11298_v10  ;;  %v11390_v10 = vld [vmem:[%s15329_s1 + $0x1d4c] ss:$24 sps:$4 sm:$0xff]  }
 0x3b8   :  { %8393 = vmatpush1.bf16.msra.mxu0 %v11301_v7  ;;  %7902 = vmatprep.subr.bf16.mxu1 %v11306_v11  ;;  %v11393_v7 = vld [vmem:[%s15329_s1 + $0x1d54] ss:$24 sps:$4 sm:$0xff]   ;;  %v11388_v11 = vld [vmem:[%s15329_s1 + $0x1d48] ss:$24 sps:$4 sm:$0xff]  }
 0x3b9   :  { %8394 = vmatprep.subr.bf16.mxu0 %v11309_v16  ;;  %v11391_v16 = vld [vmem:[%s15329_s1 + $0x1d50] ss:$24 sps:$4 sm:$0xff]  }
 0x3bb   :  { %7903 = vmatpush1.bf16.msra.mxu1 %v11304_v12  ;;  %v11396_v12 = vld [vmem:[%s15329_s1 + $0x1d7c] ss:$24 sps:$4 sm:$0xff]  }
 0x3bc   :  { %8395 = vmatpush1.bf16.msra.mxu0 %v11307_v38  ;;  %7904 = vmatprep.subr.bf16.mxu1 %v11312_v13  ;;  %v11399_v38 = vld [vmem:[%s15329_s1 + $0x1d84] ss:$24 sps:$4 sm:$0xff]   ;;  %v11394_v13 = vld [vmem:[%s15329_s1 + $0x1d78] ss:$24 sps:$4 sm:$0xff]  }
 0x3bd   :  { %8396 = vmatprep.subr.bf16.mxu0 %v11315_v14  ;;  %v11397_v14 = vld [vmem:[%s15329_s1 + $0x1d80] ss:$24 sps:$4 sm:$0xff]  }
 0x3bf   :  { %7905 = vmatpush1.bf16.msra.mxu1 %v11310_v23  ;;  %v11402_v23 = vld [vmem:[%s15329_s1 + $0x1dac] ss:$24 sps:$4 sm:$0xff]  }
 0x3c0   :  { %8397 = vmatpush1.bf16.msra.mxu0 %v11313_v48  ;;  %7915 = vmatprep.subr.bf16.mxu1 %v11318_v15  ;;  %v11405_v48 = vld [vmem:[%s15329_s1 + $0x1db4] ss:$24 sps:$4 sm:$0xff]   ;;  %v11400_v15 = vld [vmem:[%s15329_s1 + $0x1da8] ss:$24 sps:$4 sm:$0xff]  }
 0x3c1   :  { %8407 = vmatprep.subr.bf16.mxu0 %v11321_v18  ;;  %v11403_v18 = vld [vmem:[%s15329_s1 + $0x1db0] ss:$24 sps:$4 sm:$0xff]  }
 0x3c2   :  { %7907 = vmatmul.mubr.bf16.vlgmr.msra.gmra.mrb[4].mxu1 %v12287_v39 }
 0x3c3   :  { %8399 = vmatmul.mubr.bf16.vlgmr.msra.gmra.mrb[4].mxu0 %v12287_v39  ;;  %7916 = vmatpush1.bf16.msra.mxu1 %v11316_v17  ;;  %v11333_v39 = vld [vmem:[%s15329_s1 + $0x1b74] ss:$24 sps:$4 sm:$0xff]  }
 0x3c4   :  { %8408 = vmatpush1.bf16.msra.mxu0 %v11319_v19  ;;  %7917 = vmatprep.subr.bf16.mxu1 %v11324_v59  ;;  %v11408_v17 = vld [vmem:[%s15329_s1 + $0x1ddc] ss:$24 sps:$4 sm:$0xff]   ;;  %v11406_v59 = vld [vmem:[%s15329_s1 + $0x1dd8] ss:$24 sps:$4 sm:$0xff]  }
 0x3c5   :  { %8409 = vmatprep.subr.bf16.mxu0 %v11327_v27  ;;  %7947 = vmatprep.mubr.bf16.mxu1 %v12311_v43  ;;  %v11411_v19 = vld [vmem:[%s15329_s1 + $0x1de4] ss:$24 sps:$4 sm:$0xff]   ;;  %v11409_v27 = vld [vmem:[%s15329_s1 + $0x1de0] ss:$24 sps:$4 sm:$0xff]  }
 0x3c6   :  { %8439 = vmatprep.mubr.bf16.mxu0 %v12311_v43  ;;  %v11339_v43 = vld [vmem:[%s15329_s1 + $0x1ba4] ss:$24 sps:$4 sm:$0xff]  }
 0x3c7   :  { %7918 = vmatpush1.bf16.msra.mxu1 %v11322_v20  ;;  %v11414_v20 = vld [vmem:[%s15329_s1 + $0x1e0c] ss:$24 sps:$4 sm:$0xff]  }
 0x3c8   :  { %8410 = vmatpush1.bf16.msra.mxu0 %v11325_v21  ;;  %7919 = vmatprep.subr.bf16.mxu1 %v11330_v30  ;;  %v11417_v21 = vld [vmem:[%s15329_s1 + $0x1e14] ss:$24 sps:$4 sm:$0xff]   ;;  %v11412_v30 = vld [vmem:[%s15329_s1 + $0x1e08] ss:$24 sps:$4 sm:$0xff]  }
 0x3c9   :  { %8411 = vmatprep.subr.bf16.mxu0 %v11333_v39  ;;  %v11415_v39 = vld [vmem:[%s15329_s1 + $0x1e10] ss:$24 sps:$4 sm:$0xff]  }
 0x3cb   :  { %7920 = vmatpush1.bf16.msra.mxu1 %v11328_v0  ;;  %v11420_v0 = vld [vmem:[%s15329_s1 + $0x1e3c] ss:$24 sps:$4 sm:$0xff]  }
 0x3cc   :  { %8412 = vmatpush1.bf16.msra.mxu0 %v11331_v31  ;;  %7921 = vmatprep.subr.bf16.mxu1 %v11336_v58  ;;  %v11423_v31 = vld [vmem:[%s15329_s1 + $0x1e44] ss:$24 sps:$4 sm:$0xff]   ;;  %v11418_v58 = vld [vmem:[%s15329_s1 + $0x1e38] ss:$24 sps:$4 sm:$0xff]  }
 0x3cd   :  { %8413 = vmatprep.subr.bf16.mxu0 %v11339_v43  ;;  %v11421_v43 = vld [vmem:[%s15329_s1 + $0x1e40] ss:$24 sps:$4 sm:$0xff]  }
 0x3cf   :  { %7922 = vmatpush1.bf16.msra.mxu1 %v11334_v61  ;;  %v11426_v61 = vld [vmem:[%s15329_s1 + $0x1e6c] ss:$24 sps:$4 sm:$0xff]  }
 0x3d0   :  { %8414 = vmatpush1.bf16.msra.mxu0 %v11337_v34  ;;  %7923 = vmatprep.subr.bf16.mxu1 %v11342_v36  ;;  %v11424_v34 = vld [vmem:[%s15329_s1 + $0x1e68] ss:$24 sps:$4 sm:$0xff]  }
 0x3d1   :  { %8415 = vmatprep.subr.bf16.mxu0 %v11345_v22  ;;  %v11427_v36 = vld [vmem:[%s15329_s1 + $0x1e70] ss:$24 sps:$4 sm:$0xff]   ;;  %v11432_v22 = vld [vmem:[%s15329_s1 + $0x1e9c] ss:$24 sps:$4 sm:$0xff]  }
 0x3d3   :  { %7924 = vmatpush1.bf16.msra.mxu1 %v11340_v24  ;;  %v11430_v24 = vld [vmem:[%s15329_s1 + $0x1e98] ss:$24 sps:$4 sm:$0xff]  }
 0x3d4   :  { %8416 = vmatpush1.bf16.msra.mxu0 %v11343_v37  ;;  %7925 = vmatprep.subr.bf16.mxu1 %v11348_v44  ;;  %v11433_v37 = vld [vmem:[%s15329_s1 + $0x1ea0] ss:$24 sps:$4 sm:$0xff]   ;;  %v11438_v44 = vld [vmem:[%s15329_s1 + $0x1ecc] ss:$24 sps:$4 sm:$0xff]  }
 0x3d5   :  { %8417 = vmatprep.subr.bf16.mxu0 %v11351_v45  ;;  %v11441_v45 = vld [vmem:[%s15329_s1 + $0x1ed4] ss:$24 sps:$4 sm:$0xff]  }
 0x3d7   :  { %7926 = vmatpush1.bf16.msra.mxu1 %v11346_v46  ;;  %v11436_v46 = vld [vmem:[%s15329_s1 + $0x1ec8] ss:$24 sps:$4 sm:$0xff]  }
 0x3d8   :  { %8418 = vmatpush1.bf16.msra.mxu0 %v11349_v28  ;;  %7927 = vmatprep.subr.bf16.mxu1 %v11354_v47  ;;  %v11439_v28 = vld [vmem:[%s15329_s1 + $0x1ed0] ss:$24 sps:$4 sm:$0xff]   ;;  %v11444_v47 = vld [vmem:[%s15329_s1 + $0x1efc] ss:$24 sps:$4 sm:$0xff]  }
 0x3d9   :  { %8419 = vmatprep.subr.bf16.mxu0 %v11357_v42  ;;  %v11447_v42 = vld [vmem:[%s15329_s1 + $0x1f04] ss:$24 sps:$4 sm:$0xff]  }
 0x3db   :  { %7928 = vmatpush1.bf16.msra.mxu1 %v11352_v6  ;;  %v11442_v6 = vld [vmem:[%s15329_s1 + $0x1ef8] ss:$24 sps:$4 sm:$0xff]  }
 0x3dc   :  { %8420 = vmatpush1.bf16.msra.mxu0 %v11355_v32  ;;  %7929 = vmatprep.subr.bf16.mxu1 %v11360_v50  ;;  %v11445_v32 = vld [vmem:[%s15329_s1 + $0x1f00] ss:$24 sps:$4 sm:$0xff]   ;;  %v11450_v50 = vld [vmem:[%s15329_s1 + $0x1f2c] ss:$24 sps:$4 sm:$0xff]  }
 0x3dd   :  { %8421 = vmatprep.subr.bf16.mxu0 %v11363_v51  ;;  %v11453_v51 = vld [vmem:[%s15329_s1 + $0x1f34] ss:$24 sps:$4 sm:$0xff]  }
 0x3df   :  { %7930 = vmatpush1.bf16.msra.mxu1 %v11358_v52  ;;  %v11448_v52 = vld [vmem:[%s15329_s1 + $0x1f28] ss:$24 sps:$4 sm:$0xff]  }
 0x3e0   :  { %8422 = vmatpush1.bf16.msra.mxu0 %v11361_v35  ;;  %7931 = vmatprep.subr.bf16.mxu1 %v11366_v54  ;;  %v11451_v35 = vld [vmem:[%s15329_s1 + $0x1f30] ss:$24 sps:$4 sm:$0xff]   ;;  %v11456_v54 = vld [vmem:[%s15329_s1 + $0x1f5c] ss:$24 sps:$4 sm:$0xff]  }
 0x3e1   :  { %8423 = vmatprep.subr.bf16.mxu0 %v11369_v55  ;;  %v11459_v55 = vld [vmem:[%s15329_s1 + $0x1f64] ss:$24 sps:$4 sm:$0xff]  }
 0x3e3   :  { %7932 = vmatpush1.bf16.msra.mxu1 %v11364_v56  ;;  %v11454_v56 = vld [vmem:[%s15329_s1 + $0x1f58] ss:$24 sps:$4 sm:$0xff]  }
 0x3e4   :  { %8424 = vmatpush1.bf16.msra.mxu0 %v11367_v57  ;;  %7933 = vmatprep.subr.bf16.mxu1 %v11372_v62  ;;  %v11457_v57 = vld [vmem:[%s15329_s1 + $0x1f60] ss:$24 sps:$4 sm:$0xff]   ;;  %v11462_v62 = vld [vmem:[%s15329_s1 + $0x1f8c] ss:$24 sps:$4 sm:$0xff]  }
 0x3e5   :  { %8425 = vmatprep.subr.bf16.mxu0 %v11375_v2  ;;  %v11465_v2 = vld [vmem:[%s15329_s1 + $0x1f94] ss:$24 sps:$4 sm:$0xff]  }
 0x3e7   :  { %7934 = vmatpush1.bf16.msra.mxu1 %v11370_v40  ;;  %v11460_v40 = vld [vmem:[%s15329_s1 + $0x1f88] ss:$24 sps:$4 sm:$0xff]  }
 0x3e8   :  { %8426 = vmatpush1.bf16.msra.mxu0 %v11373_v41  ;;  %7935 = vmatprep.subr.bf16.mxu1 %v11378_v63  ;;  %v11463_v41 = vld [vmem:[%s15329_s1 + $0x1f90] ss:$24 sps:$4 sm:$0xff]   ;;  %v11468_v63 = vld [vmem:[%s15329_s1 + $0x1fbc] ss:$24 sps:$4 sm:$0xff]  }
 0x3e9   :  { %8427 = vmatprep.subr.bf16.mxu0 %v11381_v53  ;;  %v11471_v53 = vld [vmem:[%s15329_s1 + $0x1fc4] ss:$24 sps:$4 sm:$0xff]  }
 0x3eb   :  { %7936 = vmatpush1.bf16.msra.mxu1 %v11376_v4  ;;  %v11466_v4 = vld [vmem:[%s15329_s1 + $0x1fb8] ss:$24 sps:$4 sm:$0xff]  }
 0x3ec   :  { %8428 = vmatpush1.bf16.msra.mxu0 %v11379_v5  ;;  %7937 = vmatprep.subr.bf16.mxu1 %v11384_v25  ;;  %v11469_v5 = vld [vmem:[%s15329_s1 + $0x1fc0] ss:$24 sps:$4 sm:$0xff]   ;;  %v11474_v25 = vld [vmem:[%s15329_s1 + $0x1fec] ss:$24 sps:$4 sm:$0xff]  }
 0x3ed   :  { %8429 = vmatprep.subr.bf16.mxu0 %v11387_v26  ;;  %v11477_v26 = vld [vmem:[%s15329_s1 + $0x1ff4] ss:$24 sps:$4 sm:$0xff]  }
 0x3ef   :  { %7938 = vmatpush1.bf16.msra.mxu1 %v11382_v8  ;;  %v11472_v8 = vld [vmem:[%s15329_s1 + $0x1fe8] ss:$24 sps:$4 sm:$0xff]  }
 0x3f0   :  { %8430 = vmatpush1.bf16.msra.mxu0 %v11385_v9  ;;  %7939 = vmatprep.subr.bf16.mxu1 %v11390_v10  ;;  %v11475_v9 = vld [vmem:[%s15329_s1 + $0x1ff0] ss:$24 sps:$4 sm:$0xff]   ;;  %v11480_v10 = vld [vmem:[%s15329_s1 + $0x201c] ss:$24 sps:$4 sm:$0xff]  }
 0x3f1   :  { %8431 = vmatprep.subr.bf16.mxu0 %v11393_v7  ;;  %v11483_v7 = vld [vmem:[%s15329_s1 + $0x2024] ss:$24 sps:$4 sm:$0xff]  }
 0x3f3   :  { %7940 = vmatpush1.bf16.msra.mxu1 %v11388_v11  ;;  %v11478_v11 = vld [vmem:[%s15329_s1 + $0x2018] ss:$24 sps:$4 sm:$0xff]  }
 0x3f4   :  { %8432 = vmatpush1.bf16.msra.mxu0 %v11391_v16  ;;  %7941 = vmatprep.subr.bf16.mxu1 %v11396_v12  ;;  %v11481_v16 = vld [vmem:[%s15329_s1 + $0x2020] ss:$24 sps:$4 sm:$0xff]   ;;  %v11486_v12 = vld [vmem:[%s15329_s1 + $0x204c] ss:$24 sps:$4 sm:$0xff]  }
 0x3f5   :  { %8433 = vmatprep.subr.bf16.mxu0 %v11399_v38  ;;  %v11489_v38 = vld [vmem:[%s15329_s1 + $0x2054] ss:$24 sps:$4 sm:$0xff]  }
 0x3f7   :  { %7942 = vmatpush1.bf16.msra.mxu1 %v11394_v13  ;;  %v11484_v13 = vld [vmem:[%s15329_s1 + $0x2048] ss:$24 sps:$4 sm:$0xff]  }
 0x3f8   :  { %8434 = vmatpush1.bf16.msra.mxu0 %v11397_v14  ;;  %7943 = vmatprep.subr.bf16.mxu1 %v11402_v23  ;;  %v11487_v14 = vld [vmem:[%s15329_s1 + $0x2050] ss:$24 sps:$4 sm:$0xff]   ;;  %v11492_v23 = vld [vmem:[%s15329_s1 + $0x207c] ss:$24 sps:$4 sm:$0xff]  }
 0x3f9   :  { %8435 = vmatprep.subr.bf16.mxu0 %v11405_v48  ;;  %v11495_v48 = vld [vmem:[%s15329_s1 + $0x2084] ss:$24 sps:$4 sm:$0xff]  }
 0x3fb   :  { %7944 = vmatpush1.bf16.msra.mxu1 %v11400_v15  ;;  %v11490_v15 = vld [vmem:[%s15329_s1 + $0x2078] ss:$24 sps:$4 sm:$0xff]  }
 0x3fc   :  { %8436 = vmatpush1.bf16.msra.mxu0 %v11403_v18  ;;  %7945 = vmatprep.subr.bf16.mxu1 %v11408_v17  ;;  %v11493_v18 = vld [vmem:[%s15329_s1 + $0x2080] ss:$24 sps:$4 sm:$0xff]   ;;  %v11498_v17 = vld [vmem:[%s15329_s1 + $0x20ac] ss:$24 sps:$4 sm:$0xff]  }
 0x3fd   :  { %8437 = vmatprep.subr.bf16.mxu0 %v11411_v19  ;;  %v11501_v19 = vld [vmem:[%s15329_s1 + $0x20b4] ss:$24 sps:$4 sm:$0xff]  }
 0x3ff   :  { %7946 = vmatpush1.bf16.msra.mxu1 %v11406_v59  ;;  %v11496_v59 = vld [vmem:[%s15329_s1 + $0x20a8] ss:$24 sps:$4 sm:$0xff]  }
 0x400   :  { %8438 = vmatpush1.bf16.msra.mxu0 %v11409_v27  ;;  %7956 = vmatprep.subr.bf16.mxu1 %v11414_v20  ;;  %v11499_v27 = vld [vmem:[%s15329_s1 + $0x20b0] ss:$24 sps:$4 sm:$0xff]   ;;  %v11504_v20 = vld [vmem:[%s15329_s1 + $0x20dc] ss:$24 sps:$4 sm:$0xff]  }
 0x401   :  { %8448 = vmatprep.subr.bf16.mxu0 %v11417_v21  ;;  %v11507_v21 = vld [vmem:[%s15329_s1 + $0x20e4] ss:$24 sps:$4 sm:$0xff]  }
 0x402   :  { %7948 = vmatmul.mubr.bf16.vlgmr.msra.gmra.mrb[4].mxu1 %v12508_v60 }
 0x403   :  { %8440 = vmatmul.mubr.bf16.vlgmr.msra.gmra.mrb[4].mxu0 %v12508_v60  ;;  %7957 = vmatpush1.bf16.msra.mxu1 %v11412_v30  ;;  %v11429_v60 = vld [vmem:[%s15329_s1 + $0x1e74] ss:$24 sps:$4 sm:$0xff]   ;;  %v11502_v30 = vld [vmem:[%s15329_s1 + $0x20d8] ss:$24 sps:$4 sm:$0xff]  }
 0x404   :  { %8449 = vmatpush1.bf16.msra.mxu0 %v11415_v39  ;;  %7958 = vmatprep.subr.bf16.mxu1 %v11420_v0  ;;  %v11505_v39 = vld [vmem:[%s15329_s1 + $0x20e0] ss:$24 sps:$4 sm:$0xff]   ;;  %v11510_v0 = vld [vmem:[%s15329_s1 + $0x210c] ss:$24 sps:$4 sm:$0xff]  }
 0x405   :  { %8450 = vmatprep.subr.bf16.mxu0 %v11423_v31  ;;  %7988 = vmatprep.mubr.bf16.mxu1 %v12533_v1  ;;  %v11513_v31 = vld [vmem:[%s15329_s1 + $0x2114] ss:$24 sps:$4 sm:$0xff]  }
 0x406   :  { %8480 = vmatprep.mubr.bf16.mxu0 %v12533_v1  ;;  %v11435_v1 = vld [vmem:[%s15329_s1 + $0x1ea4] ss:$24 sps:$4 sm:$0xff]  }
 0x407   :  { %7959 = vmatpush1.bf16.msra.mxu1 %v11418_v58  ;;  %v11508_v58 = vld [vmem:[%s15329_s1 + $0x2108] ss:$24 sps:$4 sm:$0xff]  }
 0x408   :  { %8451 = vmatpush1.bf16.msra.mxu0 %v11421_v43  ;;  %7960 = vmatprep.subr.bf16.mxu1 %v11426_v61  ;;  %v11511_v43 = vld [vmem:[%s15329_s1 + $0x2110] ss:$24 sps:$4 sm:$0xff]   ;;  %v11516_v61 = vld [vmem:[%s15329_s1 + $0x213c] ss:$24 sps:$4 sm:$0xff]  }
 0x409   :  { %8452 = vmatprep.subr.bf16.mxu0 %v11429_v60  ;;  %v11519_v60 = vld [vmem:[%s15329_s1 + $0x2144] ss:$24 sps:$4 sm:$0xff]  }
 0x40b   :  { %7961 = vmatpush1.bf16.msra.mxu1 %v11424_v34  ;;  %v11514_v34 = vld [vmem:[%s15329_s1 + $0x2138] ss:$24 sps:$4 sm:$0xff]  }
 0x40c   :  { %8453 = vmatpush1.bf16.msra.mxu0 %v11427_v36  ;;  %7962 = vmatprep.subr.bf16.mxu1 %v11432_v22  ;;  %v11517_v36 = vld [vmem:[%s15329_s1 + $0x2140] ss:$24 sps:$4 sm:$0xff]   ;;  %v11522_v22 = vld [vmem:[%s15329_s1 + $0x216c] ss:$24 sps:$4 sm:$0xff]  }
 0x40d   :  { %8454 = vmatprep.subr.bf16.mxu0 %v11435_v1  ;;  %v11520_v1 = vld [vmem:[%s15329_s1 + $0x2168] ss:$24 sps:$4 sm:$0xff]  }
 0x40f   :  { %7963 = vmatpush1.bf16.msra.mxu1 %v11430_v24  ;;  %v11523_v24 = vld [vmem:[%s15329_s1 + $0x2170] ss:$24 sps:$4 sm:$0xff]  }
 0x410   :  { %8455 = vmatpush1.bf16.msra.mxu0 %v11433_v37  ;;  %7964 = vmatprep.subr.bf16.mxu1 %v11438_v44  ;;  %v11528_v37 = vld [vmem:[%s15329_s1 + $0x219c] ss:$24 sps:$4 sm:$0xff]   ;;  %v11526_v44 = vld [vmem:[%s15329_s1 + $0x2198] ss:$24 sps:$4 sm:$0xff]  }
 0x411   :  { %8456 = vmatprep.subr.bf16.mxu0 %v11441_v45  ;;  %v11529_v45 = vld [vmem:[%s15329_s1 + $0x21a0] ss:$24 sps:$4 sm:$0xff]  }
 0x413   :  { %7965 = vmatpush1.bf16.msra.mxu1 %v11436_v46  ;;  %v11534_v46 = vld [vmem:[%s15329_s1 + $0x21cc] ss:$24 sps:$4 sm:$0xff]  }
 0x414   :  { %8457 = vmatpush1.bf16.msra.mxu0 %v11439_v28  ;;  %7966 = vmatprep.subr.bf16.mxu1 %v11444_v47  ;;  %v11537_v28 = vld [vmem:[%s15329_s1 + $0x21d4] ss:$24 sps:$4 sm:$0xff]   ;;  %v11532_v47 = vld [vmem:[%s15329_s1 + $0x21c8] ss:$24 sps:$4 sm:$0xff]  }
 0x415   :  { %8458 = vmatprep.subr.bf16.mxu0 %v11447_v42  ;;  %v11535_v42 = vld [vmem:[%s15329_s1 + $0x21d0] ss:$24 sps:$4 sm:$0xff]  }
 0x417   :  { %7967 = vmatpush1.bf16.msra.mxu1 %v11442_v6  ;;  %v11540_v6 = vld [vmem:[%s15329_s1 + $0x21fc] ss:$24 sps:$4 sm:$0xff]  }
 0x418   :  { %8459 = vmatpush1.bf16.msra.mxu0 %v11445_v32  ;;  %7968 = vmatprep.subr.bf16.mxu1 %v11450_v50  ;;  %v11543_v32 = vld [vmem:[%s15329_s1 + $0x2204] ss:$24 sps:$4 sm:$0xff]   ;;  %v11538_v50 = vld [vmem:[%s15329_s1 + $0x21f8] ss:$24 sps:$4 sm:$0xff]  }
 0x419   :  { %8460 = vmatprep.subr.bf16.mxu0 %v11453_v51  ;;  %v11541_v51 = vld [vmem:[%s15329_s1 + $0x2200] ss:$24 sps:$4 sm:$0xff]  }
 0x41b   :  { %7969 = vmatpush1.bf16.msra.mxu1 %v11448_v52  ;;  %v11546_v52 = vld [vmem:[%s15329_s1 + $0x222c] ss:$24 sps:$4 sm:$0xff]  }
 0x41c   :  { %8461 = vmatpush1.bf16.msra.mxu0 %v11451_v35  ;;  %7970 = vmatprep.subr.bf16.mxu1 %v11456_v54  ;;  %v11549_v35 = vld [vmem:[%s15329_s1 + $0x2234] ss:$24 sps:$4 sm:$0xff]   ;;  %v11544_v54 = vld [vmem:[%s15329_s1 + $0x2228] ss:$24 sps:$4 sm:$0xff]  }
 0x41d   :  { %8462 = vmatprep.subr.bf16.mxu0 %v11459_v55  ;;  %v11547_v55 = vld [vmem:[%s15329_s1 + $0x2230] ss:$24 sps:$4 sm:$0xff]  }
 0x41f   :  { %7971 = vmatpush1.bf16.msra.mxu1 %v11454_v56  ;;  %v11552_v56 = vld [vmem:[%s15329_s1 + $0x225c] ss:$24 sps:$4 sm:$0xff]  }
 0x420   :  { %8463 = vmatpush1.bf16.msra.mxu0 %v11457_v57  ;;  %7972 = vmatprep.subr.bf16.mxu1 %v11462_v62  ;;  %v11555_v57 = vld [vmem:[%s15329_s1 + $0x2264] ss:$24 sps:$4 sm:$0xff]   ;;  %v11550_v62 = vld [vmem:[%s15329_s1 + $0x2258] ss:$24 sps:$4 sm:$0xff]  }
 0x421   :  { %8464 = vmatprep.subr.bf16.mxu0 %v11465_v2  ;;  %v11553_v2 = vld [vmem:[%s15329_s1 + $0x2260] ss:$24 sps:$4 sm:$0xff]  }
 0x423   :  { %7973 = vmatpush1.bf16.msra.mxu1 %v11460_v40  ;;  %v11558_v40 = vld [vmem:[%s15329_s1 + $0x228c] ss:$24 sps:$4 sm:$0xff]  }
 0x424   :  { %8465 = vmatpush1.bf16.msra.mxu0 %v11463_v41  ;;  %7974 = vmatprep.subr.bf16.mxu1 %v11468_v63  ;;  %v11561_v41 = vld [vmem:[%s15329_s1 + $0x2294] ss:$24 sps:$4 sm:$0xff]   ;;  %v11556_v63 = vld [vmem:[%s15329_s1 + $0x2288] ss:$24 sps:$4 sm:$0xff]  }
 0x425   :  { %8466 = vmatprep.subr.bf16.mxu0 %v11471_v53  ;;  %v11559_v53 = vld [vmem:[%s15329_s1 + $0x2290] ss:$24 sps:$4 sm:$0xff]  }
 0x427   :  { %7975 = vmatpush1.bf16.msra.mxu1 %v11466_v4  ;;  %v11564_v4 = vld [vmem:[%s15329_s1 + $0x22bc] ss:$24 sps:$4 sm:$0xff]  }
 0x428   :  { %8467 = vmatpush1.bf16.msra.mxu0 %v11469_v5  ;;  %7976 = vmatprep.subr.bf16.mxu1 %v11474_v25  ;;  %v11567_v5 = vld [vmem:[%s15329_s1 + $0x22c4] ss:$24 sps:$4 sm:$0xff]   ;;  %v11562_v25 = vld [vmem:[%s15329_s1 + $0x22b8] ss:$24 sps:$4 sm:$0xff]  }
 0x429   :  { %8468 = vmatprep.subr.bf16.mxu0 %v11477_v26  ;;  %v11565_v26 = vld [vmem:[%s15329_s1 + $0x22c0] ss:$24 sps:$4 sm:$0xff]  }
 0x42b   :  { %7977 = vmatpush1.bf16.msra.mxu1 %v11472_v8  ;;  %v11570_v8 = vld [vmem:[%s15329_s1 + $0x22ec] ss:$24 sps:$4 sm:$0xff]  }
 0x42c   :  { %8469 = vmatpush1.bf16.msra.mxu0 %v11475_v9  ;;  %7978 = vmatprep.subr.bf16.mxu1 %v11480_v10  ;;  %v11573_v9 = vld [vmem:[%s15329_s1 + $0x22f4] ss:$24 sps:$4 sm:$0xff]   ;;  %v11568_v10 = vld [vmem:[%s15329_s1 + $0x22e8] ss:$24 sps:$4 sm:$0xff]  }
 0x42d   :  { %8470 = vmatprep.subr.bf16.mxu0 %v11483_v7  ;;  %v11571_v7 = vld [vmem:[%s15329_s1 + $0x22f0] ss:$24 sps:$4 sm:$0xff]  }
 0x42f   :  { %7979 = vmatpush1.bf16.msra.mxu1 %v11478_v11  ;;  %v11576_v11 = vld [vmem:[%s15329_s1 + $0x231c] ss:$24 sps:$4 sm:$0xff]  }
 0x430   :  { %8471 = vmatpush1.bf16.msra.mxu0 %v11481_v16  ;;  %7980 = vmatprep.subr.bf16.mxu1 %v11486_v12  ;;  %v11579_v16 = vld [vmem:[%s15329_s1 + $0x2324] ss:$24 sps:$4 sm:$0xff]   ;;  %v11574_v12 = vld [vmem:[%s15329_s1 + $0x2318] ss:$24 sps:$4 sm:$0xff]  }
 0x431   :  { %8472 = vmatprep.subr.bf16.mxu0 %v11489_v38  ;;  %v11577_v38 = vld [vmem:[%s15329_s1 + $0x2320] ss:$24 sps:$4 sm:$0xff]  }
 0x433   :  { %7981 = vmatpush1.bf16.msra.mxu1 %v11484_v13  ;;  %v11582_v13 = vld [vmem:[%s15329_s1 + $0x234c] ss:$24 sps:$4 sm:$0xff]  }
 0x434   :  { %8473 = vmatpush1.bf16.msra.mxu0 %v11487_v14  ;;  %7982 = vmatprep.subr.bf16.mxu1 %v11492_v23  ;;  %v11585_v14 = vld [vmem:[%s15329_s1 + $0x2354] ss:$24 sps:$4 sm:$0xff]   ;;  %v11580_v23 = vld [vmem:[%s15329_s1 + $0x2348] ss:$24 sps:$4 sm:$0xff]  }
 0x435   :  { %8474 = vmatprep.subr.bf16.mxu0 %v11495_v48  ;;  %v11583_v48 = vld [vmem:[%s15329_s1 + $0x2350] ss:$24 sps:$4 sm:$0xff]  }
 0x437   :  { %7983 = vmatpush1.bf16.msra.mxu1 %v11490_v15  ;;  %v11588_v15 = vld [vmem:[%s15329_s1 + $0x237c] ss:$24 sps:$4 sm:$0xff]  }
 0x438   :  { %8475 = vmatpush1.bf16.msra.mxu0 %v11493_v18  ;;  %7984 = vmatprep.subr.bf16.mxu1 %v11498_v17  ;;  %v11591_v18 = vld [vmem:[%s15329_s1 + $0x2384] ss:$24 sps:$4 sm:$0xff]   ;;  %v11586_v17 = vld [vmem:[%s15329_s1 + $0x2378] ss:$24 sps:$4 sm:$0xff]  }
 0x439   :  { %8476 = vmatprep.subr.bf16.mxu0 %v11501_v19  ;;  %v11589_v19 = vld [vmem:[%s15329_s1 + $0x2380] ss:$24 sps:$4 sm:$0xff]  }
 0x43b   :  { %7985 = vmatpush1.bf16.msra.mxu1 %v11496_v59  ;;  %v11594_v59 = vld [vmem:[%s15329_s1 + $0x23ac] ss:$24 sps:$4 sm:$0xff]  }
 0x43c   :  { %8477 = vmatpush1.bf16.msra.mxu0 %v11499_v27  ;;  %7986 = vmatprep.subr.bf16.mxu1 %v11504_v20  ;;  %v11597_v27 = vld [vmem:[%s15329_s1 + $0x23b4] ss:$24 sps:$4 sm:$0xff]   ;;  %v11592_v20 = vld [vmem:[%s15329_s1 + $0x23a8] ss:$24 sps:$4 sm:$0xff]  }
 0x43d   :  { %8478 = vmatprep.subr.bf16.mxu0 %v11507_v21  ;;  %v11595_v21 = vld [vmem:[%s15329_s1 + $0x23b0] ss:$24 sps:$4 sm:$0xff]  }
 0x43f   :  { %7987 = vmatpush1.bf16.msra.mxu1 %v11502_v30  ;;  %v11600_v30 = vld [vmem:[%s15329_s1 + $0x23dc] ss:$24 sps:$4 sm:$0xff]  }
 0x440   :  { %8479 = vmatpush1.bf16.msra.mxu0 %v11505_v39  ;;  %7997 = vmatprep.subr.bf16.mxu1 %v11510_v0  ;;  %v11603_v39 = vld [vmem:[%s15329_s1 + $0x23e4] ss:$24 sps:$4 sm:$0xff]   ;;  %v11598_v0 = vld [vmem:[%s15329_s1 + $0x23d8] ss:$24 sps:$4 sm:$0xff]  }
 0x441   :  { %8489 = vmatprep.subr.bf16.mxu0 %v11513_v31  ;;  %v11601_v31 = vld [vmem:[%s15329_s1 + $0x23e0] ss:$24 sps:$4 sm:$0xff]  }
 0x442   :  { %7989 = vmatmul.mubr.bf16.vlgmr.msra.gmra.mrb[4].mxu1 %v12735_v29 }
 0x443   :  { %8481 = vmatmul.mubr.bf16.vlgmr.msra.gmra.mrb[4].mxu0 %v12735_v29  ;;  %7998 = vmatpush1.bf16.msra.mxu1 %v11508_v58  ;;  %v11525_v29 = vld [vmem:[%s15329_s1 + $0x2174] ss:$24 sps:$4 sm:$0xff]   ;;  %v1190_v58 = vsub.s32 2, %v13577_v49 }
 0x444   :  { %8490 = vmatpush1.bf16.msra.mxu0 %v11511_v43  ;;  %7999 = vmatprep.subr.bf16.mxu1 %v11516_v61  ;;  %v1198_v43 = vsub.s32 4, %v13577_v49  ;;  %v1194_v61 = vsub.s32 3, %v13577_v49 }
 0x445   :  { %8491 = vmatprep.subr.bf16.mxu0 %v11519_v60  ;;  %8029 = vmatprep.mubr.bf16.mxu1 %v12755_v33  ;;  %v1202_v60 = vsub.s32 5, %v13577_v49 }
 0x446   :  { %8521 = vmatprep.mubr.bf16.mxu0 %v12755_v33  ;;  %v11531_v33 = vld [vmem:[%s15329_s1 + $0x21a4] ss:$24 sps:$4 sm:$0xff]  }
 0x447   :  { %8000 = vmatpush1.bf16.msra.mxu1 %v11514_v34  ;;  %v11604_v34 = vld [vmem:[%s15331_s2] sm:$0x3f] }
 0x448   :  { %8492 = vmatpush1.bf16.msra.mxu0 %v11517_v36  ;;  %8001 = vmatprep.subr.bf16.mxu1 %v11522_v22  ;;  %v1191_v36 = vrot.slane %v11604_v34, %v1190_v58  ;;  %v1199_v22 = vrot.slane %v11604_v34, %v1198_v43 }
 0x449   :  { %8493 = vmatprep.subr.bf16.mxu0 %v11525_v29  ;;  %v1195_v29 = vrot.slane %v11604_v34, %v1194_v61 }
 0x44b   :  { %8002 = vmatpush1.bf16.msra.mxu1 %v11520_v1  ;;  %v1203_v1 = vrot.slane %v11604_v34, %v1202_v60 }
 0x44c   :  { %8494 = vmatpush1.bf16.msra.mxu0 %v11523_v24  ;;  %8003 = vmatprep.subr.bf16.mxu1 %v11528_v37 }
 0x44d   :  { %8495 = vmatprep.subr.bf16.mxu0 %v11531_v33 }
 0x44f   :  { %8004 = vmatpush1.bf16.msra.mxu1 %v11526_v44 }
 0x450   :  { %8496 = vmatpush1.bf16.msra.mxu0 %v11529_v45  ;;  %8005 = vmatprep.subr.bf16.mxu1 %v11534_v46 }
 0x451   :  { %8497 = vmatprep.subr.bf16.mxu0 %v11537_v28 }
 0x453   :  { %8006 = vmatpush1.bf16.msra.mxu1 %v11532_v47 }
 0x454   :  { %8498 = vmatpush1.bf16.msra.mxu0 %v11535_v42  ;;  %8007 = vmatprep.subr.bf16.mxu1 %v11540_v6 }
 0x455   :  { %8499 = vmatprep.subr.bf16.mxu0 %v11543_v32 }
 0x457   :  { %8008 = vmatpush1.bf16.msra.mxu1 %v11538_v50 }
 0x458   :  { %8500 = vmatpush1.bf16.msra.mxu0 %v11541_v51  ;;  %8009 = vmatprep.subr.bf16.mxu1 %v11546_v52 }
 0x459   :  { %8501 = vmatprep.subr.bf16.mxu0 %v11549_v35 }
 0x45b   :  { %8010 = vmatpush1.bf16.msra.mxu1 %v11544_v54 }
 0x45c   :  { %8502 = vmatpush1.bf16.msra.mxu0 %v11547_v55  ;;  %8011 = vmatprep.subr.bf16.mxu1 %v11552_v56 }
 0x45d   :  { %8503 = vmatprep.subr.bf16.mxu0 %v11555_v57 }
 0x45f   :  { %8012 = vmatpush1.bf16.msra.mxu1 %v11550_v62 }
 0x460   :  { %8504 = vmatpush1.bf16.msra.mxu0 %v11553_v2  ;;  %8013 = vmatprep.subr.bf16.mxu1 %v11558_v40 }
 0x461   :  { %8505 = vmatprep.subr.bf16.mxu0 %v11561_v41 }
 0x463   :  { %8014 = vmatpush1.bf16.msra.mxu1 %v11556_v63 }
 0x464   :  { %8506 = vmatpush1.bf16.msra.mxu0 %v11559_v53  ;;  %8015 = vmatprep.subr.bf16.mxu1 %v11564_v4 }
 0x465   :  { %8507 = vmatprep.subr.bf16.mxu0 %v11567_v5 }
 0x467   :  { %8016 = vmatpush1.bf16.msra.mxu1 %v11562_v25 }
 0x468   :  { %8508 = vmatpush1.bf16.msra.mxu0 %v11565_v26  ;;  %8017 = vmatprep.subr.bf16.mxu1 %v11570_v8 }
 0x469   :  { %8509 = vmatprep.subr.bf16.mxu0 %v11573_v9 }
 0x46b   :  { %8018 = vmatpush1.bf16.msra.mxu1 %v11568_v10 }
 0x46c   :  { %8510 = vmatpush1.bf16.msra.mxu0 %v11571_v7  ;;  %8019 = vmatprep.subr.bf16.mxu1 %v11576_v11 }
 0x46d   :  { %8511 = vmatprep.subr.bf16.mxu0 %v11579_v16 }
 0x46f   :  { %8020 = vmatpush1.bf16.msra.mxu1 %v11574_v12 }
 0x470   :  { %8512 = vmatpush1.bf16.msra.mxu0 %v11577_v38  ;;  %8021 = vmatprep.subr.bf16.mxu1 %v11582_v13 }
 0x471   :  { %8513 = vmatprep.subr.bf16.mxu0 %v11585_v14 }
 0x473   :  { %8022 = vmatpush1.bf16.msra.mxu1 %v11580_v23 }
 0x474   :  { %8514 = vmatpush1.bf16.msra.mxu0 %v11583_v48  ;;  %8023 = vmatprep.subr.bf16.mxu1 %v11588_v15 }
 0x475   :  { %8515 = vmatprep.subr.bf16.mxu0 %v11591_v18 }
 0x477   :  { %8024 = vmatpush1.bf16.msra.mxu1 %v11586_v17 }
 0x478   :  { %8516 = vmatpush1.bf16.msra.mxu0 %v11589_v19  ;;  %8025 = vmatprep.subr.bf16.mxu1 %v11594_v59 }
 0x479   :  { %8517 = vmatprep.subr.bf16.mxu0 %v11597_v27 }
 0x47b   :  { %8026 = vmatpush1.bf16.msra.mxu1 %v11592_v20 }
 0x47c   :  { %8518 = vmatpush1.bf16.msra.mxu0 %v11595_v21  ;;  %8027 = vmatprep.subr.bf16.mxu1 %v11600_v30 }
 0x47d   :  { %8519 = vmatprep.subr.bf16.mxu0 %v11603_v39 }
 0x47f   :  { %8028 = vmatpush1.bf16.msra.mxu1 %v11598_v0 }
 0x480   :  { %8520 = vmatpush1.bf16.msra.mxu0 %v11601_v31 }
 0x482   :  { %8030 = vmatmul.mubr.bf16.vlgmr.msra.gmra.mrb[4].mxu1 %v12947_v3 }
 0x483   :  { %8522 = vmatmul.mubr.bf16.vlgmr.msra.gmra.mrb[4].mxu0 %v12947_v3 }
 0x555   :  { %v8031_v24 = vpop.f32.mrb[4].mxu1 }
 0x556   :  { %v8523_v37 = vpop.f32.mrb[4].mxu0  ;;  %v9720_v33 = vadd.f32 %v8031_v24, %v1191_v36  ;;  %v8033_v44 = vpop.f32.mrb[5].mxu1 }
 0x557   :  { %v9722_v3 = vadd.f32 %v8523_v37, %v1199_v22  ;;  %v8525_v45 = vpop.f32.mrb[5].mxu0  ;;  %v9721_v46 = vadd.f32 %v8033_v44, %v1195_v29  ;;  %v8035_v47 = vpop.f32.mrb[6].mxu1 }
 0x558   :  { %v9723_v28 = vadd.f32 %v8525_v45, %v1203_v1  ;;  %v8527_v42 = vpop.f32.mrb[6].mxu0  ;;  %8532 = vst [vmem:[%s15332_s3 + $0x10] sm:$0xff] %v9720_v33  ;;  %v8036_v49 = vpop.f32.mrb[7].mxu1 }
 0x559   :  { %8534 = vst [vmem:[%s15332_s3 + $0x20] sm:$0xff] %v9722_v3  ;;  %v8528_v6 = vpop.f32.mrb[7].mxu0  ;;  %8533 = vst [vmem:[%s15332_s3 + $0x18] sm:$0xff] %v9721_v46 }
 0x55a   :  { %8535 = vst [vmem:[%s15332_s3 + $0x28] sm:$0xff] %v9723_v28 }

</bundles_post_ra>
